<compile_context>
chip_gen: v7x
topology: tpu7x:2x2x1
jax: 0.10.0
libtpu: 0.0.40
codegen_flags: <defaults>
</compile_context>

<pallas_src>
import functools

import jax
import jax.numpy as jnp
from jax.experimental import pallas as pl
from jax.experimental.pallas import tpu as pltpu


_LANE = 128
# VMEM budget: worst tile here is conv2 with bm=512 -> 4 patch streams x
# (512x500) bf16 x 3 buffers (~3 MiB) + resident (500x128) weights + (512x128)
# output double-buffered: well under the 32 MiB v7x scoped default.
_VMEM_LIMIT = 32 * 1024 * 1024


def _round_up(n, m):
    return -(-n // m) * m


def _pad2d(a, rows, cols):
    """Zero-pad a 2-D array up to (rows, cols)."""
    r, c = a.shape
    if r == rows and c == cols:
        return a
    return jnp.pad(a, ((0, rows - r), (0, cols - c)))


def _choose_bm(m):
    """Row-tile size for the GEMM grid (rows = pooled pixels / batch rows)."""
    if m > 512:
        # Memory-bound GEMMs: 512-row tiles reach ~85% of HBM roofline vs ~29%
        # at 128; remainder blocks are handled by the cdiv grid.
        return 512
    if m > 8:
        # Small problem: split into two sublane-aligned tiles so both v7x
        # TensorCores get work on the "parallel" grid axis.
        half = -(-m // 2)
        half = -(-half // 8) * 8
        if half < m:
            return half
    return m


# ---------------------------------------------------------------------------
# Kernels
# ---------------------------------------------------------------------------

def _conv_pool_kernel(x0_ref, x1_ref, x2_ref, x3_ref, w_ref, scale_ref,
                      shift_ref, o_ref):
    """Fused conv (im2col GEMM) + folded BN + ReLU + 2x2/2 max pool.

    Each x?_ref holds the im2col patches of one of the four positions of the
    2x2 pooling window, for the same pooled output pixels, so
        out = relu(max_k((x_k @ w) * scale + shift))
    equals conv -> bn -> relu -> maxpool for this row tile (relu and max
    commute).  Weights/scale/shift stay VMEM-resident across grid steps; the
    pre-pool conv activation never touches HBM.
    """
    w = w_ref[...]
    scale = scale_ref[...]
    shift = shift_ref[...]

    def win(x_ref):
        acc = jnp.dot(x_ref[...], w, preferred_element_type=jnp.float32)
        return acc * scale + shift

    y = jnp.maximum(jnp.maximum(win(x0_ref), win(x1_ref)),
                    jnp.maximum(win(x2_ref), win(x3_ref)))
    o_ref[...] = jnp.maximum(y, 0.0).astype(o_ref.dtype)


def _gemm_bias_kernel(x_ref, w_ref, bias_ref, o_ref, *, apply_relu):
    """o = relu_opt(x @ w + bias)  (no BN scale on the FC layers)."""
    y = jnp.dot(x_ref[...], w_ref[...], preferred_element_type=jnp.float32)
    y = y + bias_ref[...]
    if apply_relu:
        y = jnp.maximum(y, 0.0)
    o_ref[...] = y.astype(o_ref.dtype)


# ---------------------------------------------------------------------------
# pallas_call wrappers
# ---------------------------------------------------------------------------

def _row_tiled_specs(m, k, n_streams):
    """Row-tiled BlockSpecs for the activation stream(s)."""
    bm = _choose_bm(m)
    nblocks = pl.cdiv(m, bm)
    if nblocks >= 3:
        # Deepen input pipelining once there are enough steps to hide DMA.
        specs = [pl.BlockSpec((bm, k), lambda i: (i, 0),
                              pipeline_mode=pl.Buffered(3))
                 for _ in range(n_streams)]
    else:
        specs = [pl.BlockSpec((bm, k), lambda i: (i, 0))
                 for _ in range(n_streams)]
    return bm, nblocks, specs


def _conv_gemm_pool(patches4, w_pad, scale_pad, shift_pad, *, out_dtype):
    m, k = patches4[0].shape
    n_pad = w_pad.shape[1]
    bm, nblocks, x_specs = _row_tiled_specs(m, k, 4)
    return pl.pallas_call(
        _conv_pool_kernel,
        out_shape=jax.ShapeDtypeStruct((m, n_pad), out_dtype),
        grid=(nblocks,),
        in_specs=x_specs + [
            pl.BlockSpec((k, n_pad), lambda i: (0, 0)),   # weights: resident
            pl.BlockSpec((1, n_pad), lambda i: (0, 0)),   # folded BN scale
            pl.BlockSpec((1, n_pad), lambda i: (0, 0)),   # folded BN shift+bias
        ],
        out_specs=pl.BlockSpec((bm, n_pad), lambda i: (i, 0)),
        compiler_params=pltpu.CompilerParams(
            dimension_semantics=("parallel",),
            vmem_limit_bytes=_VMEM_LIMIT),
    )(*patches4, w_pad, scale_pad, shift_pad)


def _gemm_bias(x, w_pad, bias_pad, *, apply_relu, out_dtype):
    m, k = x.shape
    n_pad = w_pad.shape[1]
    bm, nblocks, x_specs = _row_tiled_specs(m, k, 1)
    kernel = functools.partial(_gemm_bias_kernel, apply_relu=apply_relu)
    return pl.pallas_call(
        kernel,
        out_shape=jax.ShapeDtypeStruct((m, n_pad), out_dtype),
        grid=(nblocks,),
        in_specs=x_specs + [
            pl.BlockSpec((k, n_pad), lambda i: (0, 0)),
            pl.BlockSpec((1, n_pad), lambda i: (0, 0)),
        ],
        out_specs=pl.BlockSpec((bm, n_pad), lambda i: (i, 0)),
        compiler_params=pltpu.CompilerParams(
            dimension_semantics=("parallel",),
            vmem_limit_bytes=_VMEM_LIMIT),
    )(x, w_pad, bias_pad)


# ---------------------------------------------------------------------------
# Layout plumbing (wrapper-side, no arithmetic) + stage wrappers
# ---------------------------------------------------------------------------

def _fold_bn(gamma, beta, mean, var, conv_bias, eps):
    """Inference-mode BatchNorm (+ conv bias) -> per-channel scale/shift."""
    scale = gamma * jax.lax.rsqrt(var + eps)
    shift = beta + (conv_bias - mean) * scale
    return scale, shift


def _im2col_pooled(x_nhwc, kh, kw):
    """Four im2col patch matrices, one per 2x2 pooling-window position.

    p4[di*2+dj] row (n, ph, pw) is the (kh*kw*C) patch feeding the conv output
    pixel (2*ph+di, 2*pw+dj).  Pure slices/concat, fused by XLA into a single
    gather; no arithmetic.
    """
    n, h, w, c = x_nhwc.shape
    ho, wo = h - kh + 1, w - kw + 1
    hp, wp = ho // 2, wo // 2
    cols = [x_nhwc[:, i:i + ho, j:j + wo, :]
            for i in range(kh) for j in range(kw)]
    patches = jnp.concatenate(cols, axis=-1)          # (n, ho, wo, kh*kw*c)
    p4 = [patches[:, di::2, dj::2, :].reshape(n * hp * wp, kh * kw * c)
          for di in (0, 1) for dj in (0, 1)]
    return p4, (n, hp, wp)


def _conv_bn_relu_pool(x_nhwc, w_oihw, conv_b, gamma, beta, mean, var, eps, *,
                       compute_dtype):
    """One fused Pallas stage: conv + BN + ReLU + 2x2 max pool."""
    cout, cin, kh, kw = w_oihw.shape
    scale, shift = _fold_bn(gamma, beta, mean, var, conv_b, eps)
    n_pad = _round_up(cout, _LANE)                      # lane-dense output

    w_mat = jnp.transpose(w_oihw, (2, 3, 1, 0)).reshape(kh * kw * cin, cout)
    w_pad = _pad2d(w_mat, kh * kw * cin, n_pad).astype(compute_dtype)
    scale_pad = _pad2d(scale.reshape(1, cout), 1, n_pad).astype(jnp.float32)
    shift_pad = _pad2d(shift.reshape(1, cout), 1, n_pad).astype(jnp.float32)

    patches4, (n, hp, wp) = _im2col_pooled(x_nhwc.astype(compute_dtype), kh, kw)
    out = _conv_gemm_pool(patches4, w_pad, scale_pad, shift_pad,
                          out_dtype=compute_dtype)      # (n*hp*wp, n_pad)
    return out[:, :cout].reshape(n, hp, wp, cout)


def backbone2_forward(x_nchw, p, eps=1e-5, use_bf16=True):
    """Forward pass of BackboneModel2 (BatchNorm in inference mode).

    use_bf16=True feeds the MXU bf16 operands (f32 accumulate + f32 epilogue);
    use_bf16=False keeps f32 operands end-to-end for tight numerical checks.
    """
    cdt = jnp.bfloat16 if use_bf16 else jnp.float32
    n = x_nchw.shape[0]
    x = jnp.transpose(x_nchw, (0, 2, 3, 1))                        # NHWC

    # Stage 1: conv1 + bn1 + relu + 2x2 pool (one fused kernel).
    y = _conv_bn_relu_pool(x, p["w1"], p["b1"], p["g1"], p["beta1"],
                           p["m1"], p["v1"], eps, compute_dtype=cdt)
    # Stage 2: conv2 + bn2 + relu + 2x2 pool.
    y = _conv_bn_relu_pool(y, p["w2"], p["b2"], p["g2"], p["beta2"],
                           p["m2"], p["v2"], eps, compute_dtype=cdt)

    # Flatten in PyTorch's NCHW order, then the two FC layers.
    flat = jnp.transpose(y, (0, 3, 1, 2)).reshape(n, -1).astype(cdt)

    # fc1: output stays padded to 512 lanes (padded columns are exactly zero),
    # fc2 consumes the padded width directly via zero-padded K rows.
    n1, k1 = p["fc1_w"].shape                    # (500, 800)
    n1_pad = _round_up(n1, _LANE)                # 512
    w1 = _pad2d(p["fc1_w"].T, k1, n1_pad).astype(cdt)
    b1 = _pad2d(p["fc1_b"].reshape(1, n1), 1, n1_pad).astype(jnp.float32)
    h1 = _gemm_bias(flat, w1, b1, apply_relu=True, out_dtype=cdt)

    n2 = p["fc2_w"].shape[0]                     # 10
    n2_pad = _round_up(n2, _LANE)                # 128
    w2 = _pad2d(p["fc2_w"].T, n1_pad, n2_pad).astype(cdt)
    b2 = _pad2d(p["fc2_b"].reshape(1, n2), 1, n2_pad).astype(jnp.float32)
    out = _gemm_bias(h1, w2, b2, apply_relu=False, out_dtype=jnp.float32)
    return out[:, :n2]


# ---------------------------------------------------------------------------
# Pure-JAX reference (independent formulation: direct conv + reduce_window)
# ---------------------------------------------------------------------------

def _reference_forward(x, p, eps=1e-5):
    prec = jax.lax.Precision.HIGHEST

    def bn(y, g, b, m, v):
        inv = jax.lax.rsqrt(v + eps)
        return ((g * inv)[None, :, None, None] * (y - m[None, :, None, None])
                + b[None, :, None, None])

    y = jax.lax.conv_general_dilated(
        x, p["w1"], (1, 1), "VALID",
        dimension_numbers=("NCHW", "OIHW", "NCHW"), precision=prec)
    y = y + p["b1"][None, :, None, None]
    y = jnp.maximum(bn(y, p["g1"], p["beta1"], p["m1"], p["v1"]), 0.0)
    y = jax.lax.reduce_window(y, -jnp.inf, jax.lax.max,
                              (1, 1, 2, 2), (1, 1, 2, 2), "VALID")
    y = jax.lax.conv_general_dilated(
        y, p["w2"], (1, 1), "VALID",
        dimension_numbers=("NCHW", "OIHW", "NCHW"), precision=prec)
    y = y + p["b2"][None, :, None, None]
    y = jnp.maximum(bn(y, p["g2"], p["beta2"], p["m2"], p["v2"]), 0.0)
    y = jax.lax.reduce_window(y, -jnp.inf, jax.lax.max,
                              (1, 1, 2, 2), (1, 1, 2, 2), "VALID")
    y = y.reshape(y.shape[0], -1)
    y = jnp.maximum(jnp.dot(y, p["fc1_w"].T, precision=prec) + p["fc1_b"], 0.0)
    y = jnp.dot(y, p["fc2_w"].T, precision=prec) + p["fc2_b"]
    return y


if __name__ == "__main__":
    key = jax.random.PRNGKey(0)
    ks = jax.random.split(key, 16)

    # BackboneModel2 requires 28x28 single-channel input:
    # fc1 = Linear(4*4*50, 500) after two 5x5 VALID convs and two 2x2 pools.
    x = jax.random.normal(ks[0], (2, 1, 28, 28), dtype=jnp.float32)

    p = {
        "w1": jax.random.normal(ks[1], (20, 1, 5, 5), jnp.float32) * 0.2,
        "b1": jax.random.normal(ks[2], (20,), jnp.float32) * 0.1,
        "g1": 1.0 + 0.1 * jax.random.normal(ks[3], (20,), jnp.float32),
        "beta1": 0.1 * jax.random.normal(ks[4], (20,), jnp.float32),
        "m1": 0.1 * jax.random.normal(ks[5], (20,), jnp.float32),
        "v1": jax.random.uniform(ks[6], (20,), jnp.float32, 0.5, 1.5),
        "w2": jax.random.normal(ks[7], (50, 20, 5, 5), jnp.float32) * 0.05,
        "b2": jax.random.normal(ks[8], (50,), jnp.float32) * 0.1,
        "g2": 1.0 + 0.1 * jax.random.normal(ks[9], (50,), jnp.float32),
        "beta2": 0.1 * jax.random.normal(ks[10], (50,), jnp.float32),
        "m2": 0.1 * jax.random.normal(ks[11], (50,), jnp.float32),
        "v2": jax.random.uniform(ks[12], (50,), jnp.float32, 0.5, 1.5),
        "fc1_w": jax.random.normal(ks[13], (500, 800), jnp.float32) * 0.04,
        "fc1_b": 0.1 * jax.random.normal(ks[14], (500,), jnp.float32),
        "fc2_w": jax.random.normal(ks[15], (10, 500), jnp.float32) * 0.05,
        "fc2_b": jnp.zeros((10,), jnp.float32),
    }

    fwd = jax.jit(backbone2_forward, static_argnames=("use_bf16",))
    y_ref = _reference_forward(x, p)

    # Strict layout/indexing gate: f32 operands through the SAME kernels.
    y_f32 = jax.block_until_ready(fwd(x, p, use_bf16=False))
    assert y_f32.shape == (2, 10)
    err_f32 = float(jnp.max(jnp.abs(y_f32 - y_ref)))
    assert jnp.allclose(y_f32, y_ref, atol=2e-2, rtol=2e-2), err_f32

    # Performance path: bf16 MXU operands (f32 accumulate + f32 epilogue).
    # Loose tolerance only absorbs bf16 operand rounding over the K=800/500
    # reductions; layout bugs are caught by the f32-operand check above.
    y_bf16 = jax.block_until_ready(fwd(x, p, use_bf16=True))
    assert y_bf16.shape == (2, 10)
    err_bf16 = float(jnp.max(jnp.abs(y_bf16 - y_ref)))
    assert jnp.allclose(y_bf16, y_ref, atol=2.5e-1, rtol=5e-2), err_bf16

    print("KERNEL_OK")
</pallas_src>

<mosaic_0001>
module attributes {stable_mosaic.version = 11 : i64} {
  func.func @_conv_pool_kernel(%arg0: i32, %arg1: memref<144x25xf32, #tpu.memory_space<vmem>>, %arg2: memref<144x25xf32, #tpu.memory_space<vmem>>, %arg3: memref<144x25xf32, #tpu.memory_space<vmem>>, %arg4: memref<144x25xf32, #tpu.memory_space<vmem>>, %arg5: memref<25x128xf32, #tpu.memory_space<vmem>>, %arg6: memref<1x128xf32, #tpu.memory_space<vmem>>, %arg7: memref<1x128xf32, #tpu.memory_space<vmem>>, %arg8: memref<144x128xf32, #tpu.memory_space<vmem>>) attributes {dimension_semantics = [#tpu.dimension_semantics<parallel>], iteration_bounds = array<i64: 2>, scalar_prefetch = 0 : i64, scratch_operands = 0 : i64, tpu.core_type = #tpu.core_type<tc>, window_params = [{transform_indices = @transform_0, window_bounds = array<i64: 144, 25>}, {transform_indices = @transform_1, window_bounds = array<i64: 144, 25>}, {transform_indices = @transform_2, window_bounds = array<i64: 144, 25>}, {transform_indices = @transform_3, window_bounds = array<i64: 144, 25>}, {pipeline_mode = #tpu.pipeline_mode<synchronous>, transform_indices = @transform_4, window_bounds = array<i64: 25, 128>}, {pipeline_mode = #tpu.pipeline_mode<synchronous>, transform_indices = @transform_5, window_bounds = array<i64: 1, 128>}, {pipeline_mode = #tpu.pipeline_mode<synchronous>, transform_indices = @transform_6, window_bounds = array<i64: 1, 128>}, {transform_indices = @transform_7, window_bounds = array<i64: 144, 128>}]} {
    %c0 = arith.constant 0 : index
    %c0_0 = arith.constant 0 : index
    %0 = vector.load %arg5[%c0, %c0_0] : memref<25x128xf32, #tpu.memory_space<vmem>>, vector<25x128xf32>
    %c0_1 = arith.constant 0 : index
    %c0_2 = arith.constant 0 : index
    %1 = vector.load %arg6[%c0_1, %c0_2] : memref<1x128xf32, #tpu.memory_space<vmem>>, vector<1x128xf32>
    %c0_3 = arith.constant 0 : index
    %c0_4 = arith.constant 0 : index
    %2 = vector.load %arg7[%c0_3, %c0_4] : memref<1x128xf32, #tpu.memory_space<vmem>>, vector<1x128xf32>
    %c0_5 = arith.constant 0 : index
    %c0_6 = arith.constant 0 : index
    %3 = vector.load %arg1[%c0_5, %c0_6] : memref<144x25xf32, #tpu.memory_space<vmem>>, vector<144x25xf32>
    %cst = arith.constant dense<0.000000e+00> : vector<144x128xf32>
    %4 = tpu.matmul %3, %0, %cst {dimension_numbers = #tpu.dot_dimension_numbers<[1], [0], [0], [1], [0, 0, 1, 1], [], []>} : vector<144x25xf32>, vector<25x128xf32>, vector<144x128xf32> -> vector<144x128xf32>
    %5 = vector.broadcast %1 : vector<1x128xf32> to vector<144x128xf32>
    %6 = arith.mulf %4, %5 : vector<144x128xf32>
    %7 = vector.broadcast %2 : vector<1x128xf32> to vector<144x128xf32>
    %8 = arith.addf %6, %7 : vector<144x128xf32>
    %c0_7 = arith.constant 0 : index
    %c0_8 = arith.constant 0 : index
    %9 = vector.load %arg2[%c0_7, %c0_8] : memref<144x25xf32, #tpu.memory_space<vmem>>, vector<144x25xf32>
    %cst_9 = arith.constant dense<0.000000e+00> : vector<144x128xf32>
    %10 = tpu.matmul %9, %0, %cst_9 {dimension_numbers = #tpu.dot_dimension_numbers<[1], [0], [0], [1], [0, 0, 1, 1], [], []>} : vector<144x25xf32>, vector<25x128xf32>, vector<144x128xf32> -> vector<144x128xf32>
    %11 = vector.broadcast %1 : vector<1x128xf32> to vector<144x128xf32>
    %12 = arith.mulf %10, %11 : vector<144x128xf32>
    %13 = vector.broadcast %2 : vector<1x128xf32> to vector<144x128xf32>
    %14 = arith.addf %12, %13 : vector<144x128xf32>
    %15 = arith.maximumf %8, %14 : vector<144x128xf32>
    %c0_10 = arith.constant 0 : index
    %c0_11 = arith.constant 0 : index
    %16 = vector.load %arg3[%c0_10, %c0_11] : memref<144x25xf32, #tpu.memory_space<vmem>>, vector<144x25xf32>
    %cst_12 = arith.constant dense<0.000000e+00> : vector<144x128xf32>
    %17 = tpu.matmul %16, %0, %cst_12 {dimension_numbers = #tpu.dot_dimension_numbers<[1], [0], [0], [1], [0, 0, 1, 1], [], []>} : vector<144x25xf32>, vector<25x128xf32>, vector<144x128xf32> -> vector<144x128xf32>
    %18 = vector.broadcast %1 : vector<1x128xf32> to vector<144x128xf32>
    %19 = arith.mulf %17, %18 : vector<144x128xf32>
    %20 = vector.broadcast %2 : vector<1x128xf32> to vector<144x128xf32>
    %21 = arith.addf %19, %20 : vector<144x128xf32>
    %c0_13 = arith.constant 0 : index
    %c0_14 = arith.constant 0 : index
    %22 = vector.load %arg4[%c0_13, %c0_14] : memref<144x25xf32, #tpu.memory_space<vmem>>, vector<144x25xf32>
    %cst_15 = arith.constant dense<0.000000e+00> : vector<144x128xf32>
    %23 = tpu.matmul %22, %0, %cst_15 {dimension_numbers = #tpu.dot_dimension_numbers<[1], [0], [0], [1], [0, 0, 1, 1], [], []>} : vector<144x25xf32>, vector<25x128xf32>, vector<144x128xf32> -> vector<144x128xf32>
    %24 = vector.broadcast %1 : vector<1x128xf32> to vector<144x128xf32>
    %25 = arith.mulf %23, %24 : vector<144x128xf32>
    %26 = vector.broadcast %2 : vector<1x128xf32> to vector<144x128xf32>
    %27 = arith.addf %25, %26 : vector<144x128xf32>
    %28 = arith.maximumf %21, %27 : vector<144x128xf32>
    %29 = arith.maximumf %15, %28 : vector<144x128xf32>
    %cst_16 = arith.constant 0.000000e+00 : f32
    %30 = vector.broadcast %cst_16 : f32 to vector<144x128xf32>
    %31 = arith.maximumf %29, %30 : vector<144x128xf32>
    %c0_17 = arith.constant 0 : index
    %c0_18 = arith.constant 0 : index
    %32 = vector.load %arg8[%c0_17, %c0_18] : memref<144x128xf32, #tpu.memory_space<vmem>>, vector<144x128xf32>
    tpu.vector_store %arg8[%c0_17, %c0_18], %31 {strides = array<i32>} : memref<144x128xf32, #tpu.memory_space<vmem>>, vector<144x128xf32>,
    return
  }
  func.func @transform_0(%arg0: i32) -> (i32, i32) {
    %c0_i32 = arith.constant 0 : i32
    %c0_i32_0 = arith.constant 0 : i32
    return %arg0, %c0_i32 : i32, i32
  }
  func.func @transform_1(%arg0: i32) -> (i32, i32) {
    %c0_i32 = arith.constant 0 : i32
    %c0_i32_0 = arith.constant 0 : i32
    return %arg0, %c0_i32 : i32, i32
  }
  func.func @transform_2(%arg0: i32) -> (i32, i32) {
    %c0_i32 = arith.constant 0 : i32
    %c0_i32_0 = arith.constant 0 : i32
    return %arg0, %c0_i32 : i32, i32
  }
  func.func @transform_3(%arg0: i32) -> (i32, i32) {
    %c0_i32 = arith.constant 0 : i32
    %c0_i32_0 = arith.constant 0 : i32
    return %arg0, %c0_i32 : i32, i32
  }
  func.func @transform_4(%arg0: i32) -> (i32, i32) {
    %c0_i32 = arith.constant 0 : i32
    %c0_i32_0 = arith.constant 0 : i32
    %c0_i32_1 = arith.constant 0 : i32
    return %c0_i32, %c0_i32_0 : i32, i32
  }
  func.func @transform_5(%arg0: i32) -> (i32, i32) {
    %c0_i32 = arith.constant 0 : i32
    %c0_i32_0 = arith.constant 0 : i32
    %c0_i32_1 = arith.constant 0 : i32
    return %c0_i32, %c0_i32_0 : i32, i32
  }
  func.func @transform_6(%arg0: i32) -> (i32, i32) {
    %c0_i32 = arith.constant 0 : i32
    %c0_i32_0 = arith.constant 0 : i32
    %c0_i32_1 = arith.constant 0 : i32
    return %c0_i32, %c0_i32_0 : i32, i32
  }
  func.func @transform_7(%arg0: i32) -> (i32, i32) {
    %c0_i32 = arith.constant 0 : i32
    %c0_i32_0 = arith.constant 0 : i32
    return %arg0, %c0_i32 : i32, i32
  }
}

module attributes {stable_mosaic.version = 11 : i64} {
  func.func @_conv_pool_kernel(%arg0: i32, %arg1: memref<16x500xf32, #tpu.memory_space<vmem>>, %arg2: memref<16x500xf32, #tpu.memory_space<vmem>>, %arg3: memref<16x500xf32, #tpu.memory_space<vmem>>, %arg4: memref<16x500xf32, #tpu.memory_space<vmem>>, %arg5: memref<500x128xf32, #tpu.memory_space<vmem>>, %arg6: memref<1x128xf32, #tpu.memory_space<vmem>>, %arg7: memref<1x128xf32, #tpu.memory_space<vmem>>, %arg8: memref<16x128xf32, #tpu.memory_space<vmem>>) attributes {dimension_semantics = [#tpu.dimension_semantics<parallel>], iteration_bounds = array<i64: 2>, scalar_prefetch = 0 : i64, scratch_operands = 0 : i64, tpu.core_type = #tpu.core_type<tc>, window_params = [{transform_indices = @transform_0, window_bounds = array<i64: 16, 500>}, {transform_indices = @transform_1, window_bounds = array<i64: 16, 500>}, {transform_indices = @transform_2, window_bounds = array<i64: 16, 500>}, {transform_indices = @transform_3, window_bounds = array<i64: 16, 500>}, {pipeline_mode = #tpu.pipeline_mode<synchronous>, transform_indices = @transform_4, window_bounds = array<i64: 500, 128>}, {pipeline_mode = #tpu.pipeline_mode<synchronous>, transform_indices = @transform_5, window_bounds = array<i64: 1, 128>}, {pipeline_mode = #tpu.pipeline_mode<synchronous>, transform_indices = @transform_6, window_bounds = array<i64: 1, 128>}, {transform_indices = @transform_7, window_bounds = array<i64: 16, 128>}]} {
    %c0 = arith.constant 0 : index
    %c0_0 = arith.constant 0 : index
    %0 = vector.load %arg5[%c0, %c0_0] : memref<500x128xf32, #tpu.memory_space<vmem>>, vector<500x128xf32>
    %c0_1 = arith.constant 0 : index
    %c0_2 = arith.constant 0 : index
    %1 = vector.load %arg6[%c0_1, %c0_2] : memref<1x128xf32, #tpu.memory_space<vmem>>, vector<1x128xf32>
    %c0_3 = arith.constant 0 : index
    %c0_4 = arith.constant 0 : index
    %2 = vector.load %arg7[%c0_3, %c0_4] : memref<1x128xf32, #tpu.memory_space<vmem>>, vector<1x128xf32>
    %c0_5 = arith.constant 0 : index
    %c0_6 = arith.constant 0 : index
    %3 = vector.load %arg1[%c0_5, %c0_6] : memref<16x500xf32, #tpu.memory_space<vmem>>, vector<16x500xf32>
    %cst = arith.constant dense<0.000000e+00> : vector<16x128xf32>
    %4 = tpu.matmul %3, %0, %cst {dimension_numbers = #tpu.dot_dimension_numbers<[1], [0], [0], [1], [0, 0, 1, 1], [], []>} : vector<16x500xf32>, vector<500x128xf32>, vector<16x128xf32> -> vector<16x128xf32>
    %5 = vector.broadcast %1 : vector<1x128xf32> to vector<16x128xf32>
    %6 = arith.mulf %4, %5 : vector<16x128xf32>
    %7 = vector.broadcast %2 : vector<1x128xf32> to vector<16x128xf32>
    %8 = arith.addf %6, %7 : vector<16x128xf32>
    %c0_7 = arith.constant 0 : index
    %c0_8 = arith.constant 0 : index
    %9 = vector.load %arg2[%c0_7, %c0_8] : memref<16x500xf32, #tpu.memory_space<vmem>>, vector<16x500xf32>
    %cst_9 = arith.constant dense<0.000000e+00> : vector<16x128xf32>
    %10 = tpu.matmul %9, %0, %cst_9 {dimension_numbers = #tpu.dot_dimension_numbers<[1], [0], [0], [1], [0, 0, 1, 1], [], []>} : vector<16x500xf32>, vector<500x128xf32>, vector<16x128xf32> -> vector<16x128xf32>
    %11 = vector.broadcast %1 : vector<1x128xf32> to vector<16x128xf32>
    %12 = arith.mulf %10, %11 : vector<16x128xf32>
    %13 = vector.broadcast %2 : vector<1x128xf32> to vector<16x128xf32>
    %14 = arith.addf %12, %13 : vector<16x128xf32>
    %15 = arith.maximumf %8, %14 : vector<16x128xf32>
    %c0_10 = arith.constant 0 : index
    %c0_11 = arith.constant 0 : index
    %16 = vector.load %arg3[%c0_10, %c0_11] : memref<16x500xf32, #tpu.memory_space<vmem>>, vector<16x500xf32>
    %cst_12 = arith.constant dense<0.000000e+00> : vector<16x128xf32>
    %17 = tpu.matmul %16, %0, %cst_12 {dimension_numbers = #tpu.dot_dimension_numbers<[1], [0], [0], [1], [0, 0, 1, 1], [], []>} : vector<16x500xf32>, vector<500x128xf32>, vector<16x128xf32> -> vector<16x128xf32>
    %18 = vector.broadcast %1 : vector<1x128xf32> to vector<16x128xf32>
    %19 = arith.mulf %17, %18 : vector<16x128xf32>
    %20 = vector.broadcast %2 : vector<1x128xf32> to vector<16x128xf32>
    %21 = arith.addf %19, %20 : vector<16x128xf32>
    %c0_13 = arith.constant 0 : index
    %c0_14 = arith.constant 0 : index
    %22 = vector.load %arg4[%c0_13, %c0_14] : memref<16x500xf32, #tpu.memory_space<vmem>>, vector<16x500xf32>
    %cst_15 = arith.constant dense<0.000000e+00> : vector<16x128xf32>
    %23 = tpu.matmul %22, %0, %cst_15 {dimension_numbers = #tpu.dot_dimension_numbers<[1], [0], [0], [1], [0, 0, 1, 1], [], []>} : vector<16x500xf32>, vector<500x128xf32>, vector<16x128xf32> -> vector<16x128xf32>
    %24 = vector.broadcast %1 : vector<1x128xf32> to vector<16x128xf32>
    %25 = arith.mulf %23, %24 : vector<16x128xf32>
    %26 = vector.broadcast %2 : vector<1x128xf32> to vector<16x128xf32>
    %27 = arith.addf %25, %26 : vector<16x128xf32>
    %28 = arith.maximumf %21, %27 : vector<16x128xf32>
    %29 = arith.maximumf %15, %28 : vector<16x128xf32>
    %cst_16 = arith.constant 0.000000e+00 : f32
    %30 = vector.broadcast %cst_16 : f32 to vector<16x128xf32>
    %31 = arith.maximumf %29, %30 : vector<16x128xf32>
    %c0_17 = arith.constant 0 : index
    %c0_18 = arith.constant 0 : index
    %32 = vector.load %arg8[%c0_17, %c0_18] : memref<16x128xf32, #tpu.memory_space<vmem>>, vector<16x128xf32>
    tpu.vector_store %arg8[%c0_17, %c0_18], %31 {strides = array<i32>} : memref<16x128xf32, #tpu.memory_space<vmem>>, vector<16x128xf32>,
    return
  }
  func.func @transform_0(%arg0: i32) -> (i32, i32) {
    %c0_i32 = arith.constant 0 : i32
    %c0_i32_0 = arith.constant 0 : i32
    return %arg0, %c0_i32 : i32, i32
  }
  func.func @transform_1(%arg0: i32) -> (i32, i32) {
    %c0_i32 = arith.constant 0 : i32
    %c0_i32_0 = arith.constant 0 : i32
    return %arg0, %c0_i32 : i32, i32
  }
  func.func @transform_2(%arg0: i32) -> (i32, i32) {
    %c0_i32 = arith.constant 0 : i32
    %c0_i32_0 = arith.constant 0 : i32
    return %arg0, %c0_i32 : i32, i32
  }
  func.func @transform_3(%arg0: i32) -> (i32, i32) {
    %c0_i32 = arith.constant 0 : i32
    %c0_i32_0 = arith.constant 0 : i32
    return %arg0, %c0_i32 : i32, i32
  }
  func.func @transform_4(%arg0: i32) -> (i32, i32) {
    %c0_i32 = arith.constant 0 : i32
    %c0_i32_0 = arith.constant 0 : i32
    %c0_i32_1 = arith.constant 0 : i32
    return %c0_i32, %c0_i32_0 : i32, i32
  }
  func.func @transform_5(%arg0: i32) -> (i32, i32) {
    %c0_i32 = arith.constant 0 : i32
    %c0_i32_0 = arith.constant 0 : i32
    %c0_i32_1 = arith.constant 0 : i32
    return %c0_i32, %c0_i32_0 : i32, i32
  }
  func.func @transform_6(%arg0: i32) -> (i32, i32) {
    %c0_i32 = arith.constant 0 : i32
    %c0_i32_0 = arith.constant 0 : i32
    %c0_i32_1 = arith.constant 0 : i32
    return %c0_i32, %c0_i32_0 : i32, i32
  }
  func.func @transform_7(%arg0: i32) -> (i32, i32) {
    %c0_i32 = arith.constant 0 : i32
    %c0_i32_0 = arith.constant 0 : i32
    return %arg0, %c0_i32 : i32, i32
  }
}

module attributes {stable_mosaic.version = 11 : i64} {
  func.func @_gemm_bias_kernel(%arg0: i32, %arg1: memref<2x800xf32, #tpu.memory_space<vmem>>, %arg2: memref<800x512xf32, #tpu.memory_space<vmem>>, %arg3: memref<1x512xf32, #tpu.memory_space<vmem>>, %arg4: memref<2x512xf32, #tpu.memory_space<vmem>>) attributes {dimension_semantics = [#tpu.dimension_semantics<parallel>], iteration_bounds = array<i64: 1>, scalar_prefetch = 0 : i64, scratch_operands = 0 : i64, tpu.core_type = #tpu.core_type<tc>, window_params = [{transform_indices = @transform_0, window_bounds = array<i64: 2, 800>}, {pipeline_mode = #tpu.pipeline_mode<synchronous>, transform_indices = @transform_1, window_bounds = array<i64: 800, 512>}, {pipeline_mode = #tpu.pipeline_mode<synchronous>, transform_indices = @transform_2, window_bounds = array<i64: 1, 512>}, {transform_indices = @transform_3, window_bounds = array<i64: 2, 512>}]} {
    %c0 = arith.constant 0 : index
    %c0_0 = arith.constant 0 : index
    %0 = vector.load %arg1[%c0, %c0_0] : memref<2x800xf32, #tpu.memory_space<vmem>>, vector<2x800xf32>
    %c0_1 = arith.constant 0 : index
    %c0_2 = arith.constant 0 : index
    %1 = vector.load %arg2[%c0_1, %c0_2] : memref<800x512xf32, #tpu.memory_space<vmem>>, vector<800x512xf32>
    %cst = arith.constant dense<0.000000e+00> : vector<2x512xf32>
    %2 = tpu.matmul %0, %1, %cst {dimension_numbers = #tpu.dot_dimension_numbers<[1], [0], [0], [1], [0, 0, 1, 1], [], []>} : vector<2x800xf32>, vector<800x512xf32>, vector<2x512xf32> -> vector<2x512xf32>
    %c0_3 = arith.constant 0 : index
    %c0_4 = arith.constant 0 : index
    %3 = vector.load %arg3[%c0_3, %c0_4] : memref<1x512xf32, #tpu.memory_space<vmem>>, vector<1x512xf32>
    %4 = vector.broadcast %3 : vector<1x512xf32> to vector<2x512xf32>
    %5 = arith.addf %2, %4 : vector<2x512xf32>
    %cst_5 = arith.constant 0.000000e+00 : f32
    %6 = vector.broadcast %cst_5 : f32 to vector<2x512xf32>
    %7 = arith.maximumf %5, %6 : vector<2x512xf32>
    %c0_6 = arith.constant 0 : index
    %c0_7 = arith.constant 0 : index
    %8 = vector.load %arg4[%c0_6, %c0_7] : memref<2x512xf32, #tpu.memory_space<vmem>>, vector<2x512xf32>
    tpu.vector_store %arg4[%c0_6, %c0_7], %7 {strides = array<i32>} : memref<2x512xf32, #tpu.memory_space<vmem>>, vector<2x512xf32>,
    return
  }
  func.func @transform_0(%arg0: i32) -> (i32, i32) {
    %c0_i32 = arith.constant 0 : i32
    %c0_i32_0 = arith.constant 0 : i32
    return %arg0, %c0_i32 : i32, i32
  }
  func.func @transform_1(%arg0: i32) -> (i32, i32) {
    %c0_i32 = arith.constant 0 : i32
    %c0_i32_0 = arith.constant 0 : i32
    %c0_i32_1 = arith.constant 0 : i32
    return %c0_i32, %c0_i32_0 : i32, i32
  }
  func.func @transform_2(%arg0: i32) -> (i32, i32) {
    %c0_i32 = arith.constant 0 : i32
    %c0_i32_0 = arith.constant 0 : i32
    %c0_i32_1 = arith.constant 0 : i32
    return %c0_i32, %c0_i32_0 : i32, i32
  }
  func.func @transform_3(%arg0: i32) -> (i32, i32) {
    %c0_i32 = arith.constant 0 : i32
    %c0_i32_0 = arith.constant 0 : i32
    return %arg0, %c0_i32 : i32, i32
  }
}

module attributes {stable_mosaic.version = 11 : i64} {
  func.func @_gemm_bias_kernel(%arg0: i32, %arg1: memref<2x512xf32, #tpu.memory_space<vmem>>, %arg2: memref<512x128xf32, #tpu.memory_space<vmem>>, %arg3: memref<1x128xf32, #tpu.memory_space<vmem>>, %arg4: memref<2x128xf32, #tpu.memory_space<vmem>>) attributes {dimension_semantics = [#tpu.dimension_semantics<parallel>], iteration_bounds = array<i64: 1>, scalar_prefetch = 0 : i64, scratch_operands = 0 : i64, tpu.core_type = #tpu.core_type<tc>, window_params = [{transform_indices = @transform_0, window_bounds = array<i64: 2, 512>}, {pipeline_mode = #tpu.pipeline_mode<synchronous>, transform_indices = @transform_1, window_bounds = array<i64: 512, 128>}, {pipeline_mode = #tpu.pipeline_mode<synchronous>, transform_indices = @transform_2, window_bounds = array<i64: 1, 128>}, {transform_indices = @transform_3, window_bounds = array<i64: 2, 128>}]} {
    %c0 = arith.constant 0 : index
    %c0_0 = arith.constant 0 : index
    %0 = vector.load %arg1[%c0, %c0_0] : memref<2x512xf32, #tpu.memory_space<vmem>>, vector<2x512xf32>
    %c0_1 = arith.constant 0 : index
    %c0_2 = arith.constant 0 : index
    %1 = vector.load %arg2[%c0_1, %c0_2] : memref<512x128xf32, #tpu.memory_space<vmem>>, vector<512x128xf32>
    %cst = arith.constant dense<0.000000e+00> : vector<2x128xf32>
    %2 = tpu.matmul %0, %1, %cst {dimension_numbers = #tpu.dot_dimension_numbers<[1], [0], [0], [1], [0, 0, 1, 1], [], []>} : vector<2x512xf32>, vector<512x128xf32>, vector<2x128xf32> -> vector<2x128xf32>
    %c0_3 = arith.constant 0 : index
    %c0_4 = arith.constant 0 : index
    %3 = vector.load %arg3[%c0_3, %c0_4] : memref<1x128xf32, #tpu.memory_space<vmem>>, vector<1x128xf32>
    %4 = vector.broadcast %3 : vector<1x128xf32> to vector<2x128xf32>
    %5 = arith.addf %2, %4 : vector<2x128xf32>
    %c0_5 = arith.constant 0 : index
    %c0_6 = arith.constant 0 : index
    %6 = vector.load %arg4[%c0_5, %c0_6] : memref<2x128xf32, #tpu.memory_space<vmem>>, vector<2x128xf32>
    tpu.vector_store %arg4[%c0_5, %c0_6], %5 {strides = array<i32>} : memref<2x128xf32, #tpu.memory_space<vmem>>, vector<2x128xf32>,
    return
  }
  func.func @transform_0(%arg0: i32) -> (i32, i32) {
    %c0_i32 = arith.constant 0 : i32
    %c0_i32_0 = arith.constant 0 : i32
    return %arg0, %c0_i32 : i32, i32
  }
  func.func @transform_1(%arg0: i32) -> (i32, i32) {
    %c0_i32 = arith.constant 0 : i32
    %c0_i32_0 = arith.constant 0 : i32
    %c0_i32_1 = arith.constant 0 : i32
    return %c0_i32, %c0_i32_0 : i32, i32
  }
  func.func @transform_2(%arg0: i32) -> (i32, i32) {
    %c0_i32 = arith.constant 0 : i32
    %c0_i32_0 = arith.constant 0 : i32
    %c0_i32_1 = arith.constant 0 : i32
    return %c0_i32, %c0_i32_0 : i32, i32
  }
  func.func @transform_3(%arg0: i32) -> (i32, i32) {
    %c0_i32 = arith.constant 0 : i32
    %c0_i32_0 = arith.constant 0 : i32
    return %arg0, %c0_i32 : i32, i32
  }
}

</mosaic_0001>

<bundles_post_ra>
// kernel: backbone2_forward.4
= control target key start
LH: loop header
LB: loop body
LE: loop exit
PB: predicated region body
PF: predicated region fallthrough
CT: control target
= control target key end

     0   :  { %s2021_s24 = smov 0   ;;  %s2574_s0 = inlined_call_operand.vmem [shape: f32[288,25], index: 0, kind: input, shape index: {}]   ;;  %s2575_s1 = inlined_call_operand.vmem [shape: f32[288,25], index: 1, kind: input, shape index: {}]   ;;  %s2576_s2 = inlined_call_operand.vmem [shape: f32[288,25], index: 2, kind: input, shape index: {}]   ;;  %s2577_s3 = inlined_call_operand.vmem [shape: f32[288,25], index: 3, kind: input, shape index: {}]   ;;  %s2578_s4 = inlined_call_operand.vmem [shape: f32[25,128], index: 4, kind: input, shape index: {}]   ;;  %s2579_s5 = inlined_call_operand.vmem [shape: f32[1,128], index: 5, kind: input, shape index: {}]   ;;  %s2580_s6 = inlined_call_operand.vmem [shape: f32[1,128], index: 6, kind: input, shape index: {}]   ;;  %s2581_s7 = inlined_call_operand.vmem [shape: f32[288,128], index: 7, kind: output, shape index: {}]  }
   0x1 LB: > { %s1605_s25 = sadd.s32 4294967295, %s1978_s24   ;;  %p1609_p0 = scmp.ge.s32.totalorder %s1978_s24, 1  ;;  %s1978_s24 = sphi %s2021_s24, %s17_s24  }
   0x2   : > { %p271_p1 = scmp.lt.s32.totalorder %s1978_s24, 3 }
   0x4   : > { %p272_p2 = pnand %p1609_p0, %p271_p1 }
   0x5   : > { %v348_v0 = vld [vmem:[%s2578_s4] sm:$0xff] (!%p272_p2)  ;;  %v349_v1 = vld [vmem:[%s2578_s4 + $0x8] sm:$0xff] (!%p272_p2)  ;;  %v350_v2 = vld [vmem:[%s2578_s4 + $0x10] sm:$0xff] (!%p272_p2)  ;;  %vm427_vm0 = vcmask (!%p272_p2), 1040384   ;;  %s318_s9 = smul.u32 (!%p272_p2), 18, %s1605_s25  ;;  %vm1980_vm1 = vmmov (!%p272_p2), 1  }
   0x6   : > { %275 = sbr.rel (%p272_p2) target bundleno = 311 (0x137), region = 48  ;;  %v1923_v3 = vpack.c.bf16 (!%p272_p2), %v349_v1, %v348_v0  ;;  %v351_v4 = vld [vmem:[%s2578_s4 + $0x18] sm:$0x1] (!%p272_p2)  ;;  %vm2041_vm2 = vmpackc.low (!%p272_p2), %vm427_vm0, %vm1980_vm1  ;;  %vm372_vm3 = vcmask (!%p272_p2), 203776  }
   0x7   : > { %v1927_v5 = vpack.c.bf16 (!%p272_p2), %v351_v4, %v350_v2  ;;  %p319_p3 = scmp.lt.s32.totalorder (!%p272_p2), %s318_s9, 35 }
   0x8   : > { %1924 = vmatprep.subr.bf16.mxu0 (!%p272_p2), %v1923_v3  ;;  %1934 = vmatprep.subr.bf16.mxu1 (!%p272_p2), %v1923_v3 }
   0x9   : > { %1926 = vmatpush3.bf16.msra.mxu0 (!%p272_p2), %v1923_v3  ;;  %1936 = vmatpush3.bf16.msra.mxu1 (!%p272_p2), %v1923_v3 }
   0xa   : > { %1929 = vmatprep.subr.msk.bf16.mxu0 (!%p272_p2), %vm2041_vm2, %v1927_v5  ;;  %1939 = vmatprep.subr.msk.bf16.mxu1 (!%p272_p2), %vm2041_vm2, %v1927_v5 }
   0xd   : > { %s2594_s9 = smov (!%p319_p3, %s318_s9), 35  ;;  %1932 = vmatpush3.bf16.msk.msra.mxu0 %vm2041_vm2, %v1927_v5  ;;  %1942 = vmatpush3.bf16.msk.msra.mxu1 %vm2041_vm2, %v1927_v5 }
   0xe   : > { %s2049_s12 = sshll.u32 %s2594_s9, 3  ;;  %1944 = vmatprep.subr.bf16.mxu0 %v1923_v3  ;;  %1954 = vmatprep.subr.bf16.mxu1 %v1923_v3 }
   0xf   : > { %s2055_s15 = scalar_lea.vmem %s2574_s0, %s2049_s12  ;;  %s2061_s18 = scalar_lea.vmem %s2575_s1, %s2049_s12 }
  0x10   : > { %v354_v7 = vld [vmem:[%s2055_s15] sm:$0xff]  ;;  %v355_v9 = vld [vmem:[%s2055_s15 + $0x8] sm:$0xff]  ;;  %v356_v11 = vld [vmem:[%s2055_s15 + $0x10] sm:$0xff]  ;;  %s2143_s21 = scalar_lea.vmem %s2576_s2, %s2049_s12  ;;  %s2149_s25 = scalar_lea.vmem %s2577_s3, %s2049_s12 }
  0x11   : > { %v634_v8 = vld [vmem:[%s2061_s18] sm:$0xff]  ;;  %1791 = vmatprep.mubr.msk.f32.mxu0 %vm372_vm3, %v354_v7  ;;  %v635_v10 = vld [vmem:[%s2061_s18 + $0x8] sm:$0xff]  ;;  %v636_v12 = vld [vmem:[%s2061_s18 + $0x10] sm:$0xff]  ;;  %s2442_s9 = scalar_lea.vmem %s2581_s7, %s2049_s12 }
  0x12   : > { %1826 = vmatprep.mubr.msk.f32.mxu1 %vm372_vm3, %v634_v8  ;;  %1792 = vmatmul.mubr.msk.f32.vlgmr.msra.gmra.mrb[0].mxu0 %vm372_vm3, %v355_v9  ;;  %v357_v13 = vld [vmem:[%s2055_s15 + $0x18] sm:$0xff]  ;;  %v358_v15 = vld [vmem:[%s2055_s15 + $0x20] sm:$0xff]  ;;  %v359_v17 = vld [vmem:[%s2055_s15 + $0x28] sm:$0xff] }
  0x13   : > { %1827 = vmatmul.mubr.msk.f32.vlgmr.msra.gmra.mrb[0].mxu1 %vm372_vm3, %v635_v10  ;;  %1946 = vmatpush3.bf16.msra.mxu0 %v1923_v3  ;;  %v637_v14 = vld [vmem:[%s2061_s18 + $0x18] sm:$0xff]  ;;  %v638_v16 = vld [vmem:[%s2061_s18 + $0x20] sm:$0xff]  ;;  %v639_v18 = vld [vmem:[%s2061_s18 + $0x28] sm:$0xff] }
  0x14   : > { %1956 = vmatpush3.bf16.msra.mxu1 %v1923_v3  ;;  %1794 = vmatprep.mubr.msk.f32.mxu0 %vm372_vm3, %v356_v11  ;;  %v360_v19 = vld [vmem:[%s2055_s15 + $0x30] sm:$0xff]  ;;  %v361_v21 = vld [vmem:[%s2055_s15 + $0x38] sm:$0xff]  ;;  %v362_v23 = vld [vmem:[%s2055_s15 + $0x40] sm:$0xff] }
  0x15   : > { %1829 = vmatprep.mubr.msk.f32.mxu1 %vm372_vm3, %v636_v12  ;;  %1949 = vmatprep.subr.msk.bf16.mxu0 %vm2041_vm2, %v1927_v5  ;;  %v640_v20 = vld [vmem:[%s2061_s18 + $0x30] sm:$0xff]  ;;  %v641_v22 = vld [vmem:[%s2061_s18 + $0x38] sm:$0xff]  ;;  %v642_v24 = vld [vmem:[%s2061_s18 + $0x40] sm:$0xff] }
  0x16   : > { %1959 = vmatprep.subr.msk.bf16.mxu1 %vm2041_vm2, %v1927_v5  ;;  %1795 = vmatmul.mubr.msk.f32.gmra.mrb[2].mxu0 %vm372_vm3, %v357_v13  ;;  %v363_v25 = vld [vmem:[%s2055_s15 + $0x48] sm:$0xff]  ;;  %v364_v27 = vld [vmem:[%s2055_s15 + $0x50] sm:$0xff]  ;;  %v365_v29 = vld [vmem:[%s2055_s15 + $0x58] sm:$0xff] }
  0x17   : > { %1830 = vmatmul.mubr.msk.f32.gmra.mrb[2].mxu1 %vm372_vm3, %v637_v14  ;;  %1797 = vmatprep.mubr.msk.f32.mxu0 %vm372_vm3, %v358_v15  ;;  %v643_v26 = vld [vmem:[%s2061_s18 + $0x48] sm:$0xff]  ;;  %v644_v28 = vld [vmem:[%s2061_s18 + $0x50] sm:$0xff]  ;;  %v645_v30 = vld [vmem:[%s2061_s18 + $0x58] sm:$0xff] }
  0x18   : > { %1832 = vmatprep.mubr.msk.f32.mxu1 %vm372_vm3, %v638_v16  ;;  %1952 = vmatpush3.bf16.msk.msra.mxu0 %vm2041_vm2, %v1927_v5  ;;  %v366_v31 = vld [vmem:[%s2055_s15 + $0x60] sm:$0xff]  ;;  %v367_v33 = vld [vmem:[%s2055_s15 + $0x68] sm:$0xff]  ;;  %v368_v35 = vld [vmem:[%s2055_s15 + $0x70] sm:$0xff] }
  0x19   : > { %1962 = vmatpush3.bf16.msk.msra.mxu1 %vm2041_vm2, %v1927_v5  ;;  %v646_v32 = vld [vmem:[%s2061_s18 + $0x60] sm:$0xff]  ;;  %v647_v34 = vld [vmem:[%s2061_s18 + $0x68] sm:$0xff]  ;;  %v648_v36 = vld [vmem:[%s2061_s18 + $0x70] sm:$0xff] }
  0x1a   : > { %1798 = vmatmul.mubr.msk.f32.gmra.mrb[4].mxu0 %vm372_vm3, %v359_v17  ;;  %v369_v37 = vld [vmem:[%s2055_s15 + $0x78] sm:$0xff]  ;;  %v370_v39 = vld [vmem:[%s2055_s15 + $0x80] sm:$0xff]  ;;  %v371_v41 = vld [vmem:[%s2055_s15 + $0x88] sm:$0xff] }
  0x1b   : > { %1833 = vmatmul.mubr.msk.f32.gmra.mrb[4].mxu1 %vm372_vm3, %v639_v18  ;;  %1800 = vmatprep.mubr.msk.f32.mxu0 %vm372_vm3, %v360_v19  ;;  %v649_v38 = vld [vmem:[%s2061_s18 + $0x78] sm:$0xff]  ;;  %v650_v40 = vld [vmem:[%s2061_s18 + $0x80] sm:$0xff]  ;;  %v651_v42 = vld [vmem:[%s2061_s18 + $0x88] sm:$0xff] }
  0x1c   : > { %1835 = vmatprep.mubr.msk.f32.mxu1 %vm372_vm3, %v640_v20  ;;  %v915_v43 = vld [vmem:[%s2143_s21] sm:$0xff]  ;;  %v916_v45 = vld [vmem:[%s2143_s21 + $0x8] sm:$0xff]  ;;  %v917_v47 = vld [vmem:[%s2143_s21 + $0x10] sm:$0xff] }
  0x1d   : > { %v1178_v44 = vld [vmem:[%s2149_s25] sm:$0xff]  ;;  %v1179_v46 = vld [vmem:[%s2149_s25 + $0x8] sm:$0xff]  ;;  %v1180_v48 = vld [vmem:[%s2149_s25 + $0x10] sm:$0xff] }
  0x1e   : > { %1801 = vmatmul.mubr.msk.f32.gmra.mrb[6].mxu0 %vm372_vm3, %v361_v21  ;;  %v918_v49 = vld [vmem:[%s2143_s21 + $0x18] sm:$0xff]  ;;  %v919_v51 = vld [vmem:[%s2143_s21 + $0x20] sm:$0xff]  ;;  %v920_v53 = vld [vmem:[%s2143_s21 + $0x28] sm:$0xff] }
  0x1f   : > { %1836 = vmatmul.mubr.msk.f32.gmra.mrb[6].mxu1 %vm372_vm3, %v641_v22  ;;  %1803 = vmatprep.mubr.msk.f32.mxu0 %vm372_vm3, %v362_v23  ;;  %v1181_v50 = vld [vmem:[%s2149_s25 + $0x18] sm:$0xff]  ;;  %v1182_v52 = vld [vmem:[%s2149_s25 + $0x20] sm:$0xff]  ;;  %v1183_v54 = vld [vmem:[%s2149_s25 + $0x28] sm:$0xff] }
  0x20   : > { %1838 = vmatprep.mubr.msk.f32.mxu1 %vm372_vm3, %v642_v24  ;;  %v921_v55 = vld [vmem:[%s2143_s21 + $0x30] sm:$0xff]  ;;  %v922_v57 = vld [vmem:[%s2143_s21 + $0x38] sm:$0xff]  ;;  %v923_v59 = vld [vmem:[%s2143_s21 + $0x40] sm:$0xff] }
  0x21   : > { %v1184_v56 = vld [vmem:[%s2149_s25 + $0x30] sm:$0xff]  ;;  %v1185_v58 = vld [vmem:[%s2149_s25 + $0x38] sm:$0xff]  ;;  %v1186_v60 = vld [vmem:[%s2149_s25 + $0x40] sm:$0xff] }
  0x22   : > { %1804 = vmatmul.mubr.msk.f32.gmra.mrb[8].mxu0 %vm372_vm3, %v363_v25  ;;  %v924_v61 = vld [vmem:[%s2143_s21 + $0x48] sm:$0xff]  ;;  %v925_v63 = vld [vmem:[%s2143_s21 + $0x50] sm:$0xff]  ;;  %v926_v1 = vld [vmem:[%s2143_s21 + $0x58] sm:$0xff] }
  0x23   : > { %1839 = vmatmul.mubr.msk.f32.gmra.mrb[8].mxu1 %vm372_vm3, %v643_v26  ;;  %1806 = vmatprep.mubr.msk.f32.mxu0 %vm372_vm3, %v364_v27  ;;  %v1187_v62 = vld [vmem:[%s2149_s25 + $0x48] sm:$0xff]  ;;  %v1188_v0 = vld [vmem:[%s2149_s25 + $0x50] sm:$0xff]  ;;  %v1189_v2 = vld [vmem:[%s2149_s25 + $0x58] sm:$0xff] }
  0x24   : > { %1841 = vmatprep.mubr.msk.f32.mxu1 %vm372_vm3, %v644_v28  ;;  %v927_v3 = vld [vmem:[%s2143_s21 + $0x60] sm:$0xff]  ;;  %v928_v5 = vld [vmem:[%s2143_s21 + $0x68] sm:$0xff]  ;;  %v929_v7 = vld [vmem:[%s2143_s21 + $0x70] sm:$0xff] }
  0x25   : > { %v1190_v4 = vld [vmem:[%s2149_s25 + $0x60] sm:$0xff]  ;;  %v1191_v6 = vld [vmem:[%s2149_s25 + $0x68] sm:$0xff]  ;;  %v1192_v8 = vld [vmem:[%s2149_s25 + $0x70] sm:$0xff] }
  0x26   : > { %1807 = vmatmul.mubr.msk.f32.gmra.mrb[10].mxu0 %vm372_vm3, %v365_v29  ;;  %v930_v9 = vld [vmem:[%s2143_s21 + $0x78] sm:$0xff]  ;;  %v931_v11 = vld [vmem:[%s2143_s21 + $0x80] sm:$0xff]  ;;  %v932_v13 = vld [vmem:[%s2143_s21 + $0x88] sm:$0xff] }
  0x27   : > { %1842 = vmatmul.mubr.msk.f32.gmra.mrb[10].mxu1 %vm372_vm3, %v645_v30  ;;  %1809 = vmatprep.mubr.msk.f32.mxu0 %vm372_vm3, %v366_v31  ;;  %v1193_v10 = vld [vmem:[%s2149_s25 + $0x78] sm:$0xff]  ;;  %v1194_v12 = vld [vmem:[%s2149_s25 + $0x80] sm:$0xff]  ;;  %v1195_v14 = vld [vmem:[%s2149_s25 + $0x88] sm:$0xff] }
  0x28   : > { %1844 = vmatprep.mubr.msk.f32.mxu1 %vm372_vm3, %v646_v32  ;;  %v2234_v15 = vld [vmem:[%s2579_s5] ss:$0 sm:$0xff] }
  0x29   : > { %v2239_v16 = vld [vmem:[%s2580_s6] ss:$0 sm:$0xff] }
  0x2a   : > { %1810 = vmatmul.mubr.msk.f32.gmra.mrb[12].mxu0 %vm372_vm3, %v367_v33 }
  0x2b   : > { %1845 = vmatmul.mubr.msk.f32.gmra.mrb[12].mxu1 %vm372_vm3, %v647_v34  ;;  %1812 = vmatprep.mubr.msk.f32.mxu0 %vm372_vm3, %v368_v35 }
  0x2c   : > { %1847 = vmatprep.mubr.msk.f32.mxu1 %vm372_vm3, %v648_v36 }
  0x2e   : > { %1813 = vmatmul.mubr.msk.f32.gmra.mrb[14].mxu0 %vm372_vm3, %v369_v37 }
  0x2f   : > { %1848 = vmatmul.mubr.msk.f32.gmra.mrb[14].mxu1 %vm372_vm3, %v649_v38  ;;  %1815 = vmatprep.mubr.msk.f32.mxu0 %vm372_vm3, %v370_v39 }
  0x30   : > { %1850 = vmatprep.mubr.msk.f32.mxu1 %vm372_vm3, %v650_v40 }
  0x32   : > { %1816 = vmatmul.mubr.msk.f32.gmra.mrb[16].mxu0 %vm372_vm3, %v371_v41 }
  0x33   : > { %1851 = vmatmul.mubr.msk.f32.gmra.mrb[16].mxu1 %vm372_vm3, %v651_v42  ;;  %1861 = vmatprep.mubr.msk.f32.mxu0 %vm372_vm3, %v915_v43 }
  0x34   : > { %1896 = vmatprep.mubr.msk.f32.mxu1 %vm372_vm3, %v1178_v44 }
  0x36   : > { %1862 = vmatmul.mubr.msk.f32.vlgmr.msra.gmra.mrb[18].mxu0 %vm372_vm3, %v916_v45 }
  0x37   : > { %1897 = vmatmul.mubr.msk.f32.vlgmr.msra.gmra.mrb[18].mxu1 %vm372_vm3, %v1179_v46  ;;  %1864 = vmatprep.mubr.msk.f32.mxu0 %vm372_vm3, %v917_v47 }
  0x38   : > { %1899 = vmatprep.mubr.msk.f32.mxu1 %vm372_vm3, %v1180_v48 }
  0x3a   : > { %1865 = vmatmul.mubr.msk.f32.gmra.mrb[20].mxu0 %vm372_vm3, %v918_v49 }
  0x3b   : > { %1900 = vmatmul.mubr.msk.f32.gmra.mrb[20].mxu1 %vm372_vm3, %v1181_v50  ;;  %1867 = vmatprep.mubr.msk.f32.mxu0 %vm372_vm3, %v919_v51 }
  0x3c   : > { %1902 = vmatprep.mubr.msk.f32.mxu1 %vm372_vm3, %v1182_v52 }
  0x3e   : > { %1868 = vmatmul.mubr.msk.f32.gmra.mrb[22].mxu0 %vm372_vm3, %v920_v53 }
  0x3f   : > { %1903 = vmatmul.mubr.msk.f32.gmra.mrb[22].mxu1 %vm372_vm3, %v1183_v54  ;;  %1870 = vmatprep.mubr.msk.f32.mxu0 %vm372_vm3, %v921_v55 }
  0x40   : > { %1905 = vmatprep.mubr.msk.f32.mxu1 %vm372_vm3, %v1184_v56 }
  0x42   : > { %1871 = vmatmul.mubr.msk.f32.gmra.mrb[24].mxu0 %vm372_vm3, %v922_v57 }
  0x43   : > { %1906 = vmatmul.mubr.msk.f32.gmra.mrb[24].mxu1 %vm372_vm3, %v1185_v58  ;;  %1873 = vmatprep.mubr.msk.f32.mxu0 %vm372_vm3, %v923_v59 }
  0x44   : > { %1908 = vmatprep.mubr.msk.f32.mxu1 %vm372_vm3, %v1186_v60 }
  0x46   : > { %1874 = vmatmul.mubr.msk.f32.gmra.mrb[26].mxu0 %vm372_vm3, %v924_v61 }
  0x47   : > { %1909 = vmatmul.mubr.msk.f32.gmra.mrb[26].mxu1 %vm372_vm3, %v1187_v62  ;;  %1876 = vmatprep.mubr.msk.f32.mxu0 %vm372_vm3, %v925_v63 }
  0x48   : > { %1911 = vmatprep.mubr.msk.f32.mxu1 %vm372_vm3, %v1188_v0 }
  0x4a   : > { %1877 = vmatmul.mubr.msk.f32.gmra.mrb[28].mxu0 %vm372_vm3, %v926_v1 }
  0x4b   : > { %1912 = vmatmul.mubr.msk.f32.gmra.mrb[28].mxu1 %vm372_vm3, %v1189_v2  ;;  %1879 = vmatprep.mubr.msk.f32.mxu0 %vm372_vm3, %v927_v3 }
  0x4c   : > { %1914 = vmatprep.mubr.msk.f32.mxu1 %vm372_vm3, %v1190_v4 }
  0x4e   : > { %1880 = vmatmul.mubr.msk.f32.gmra.mrb[30].mxu0 %vm372_vm3, %v928_v5 }
  0x4f   : > { %1915 = vmatmul.mubr.msk.f32.gmra.mrb[30].mxu1 %vm372_vm3, %v1191_v6  ;;  %1882 = vmatprep.mubr.msk.f32.mxu0 %vm372_vm3, %v929_v7 }
  0x50   : > { %1917 = vmatprep.mubr.msk.f32.mxu1 %vm372_vm3, %v1192_v8 }
  0x52   : > { %1883 = vmatmul.mubr.msk.f32.gmra.mrb[32].mxu0 %vm372_vm3, %v930_v9 }
  0x53   : > { %1918 = vmatmul.mubr.msk.f32.gmra.mrb[32].mxu1 %vm372_vm3, %v1193_v10  ;;  %1885 = vmatprep.mubr.msk.f32.mxu0 %vm372_vm3, %v931_v11 }
  0x54   : > { %1920 = vmatprep.mubr.msk.f32.mxu1 %vm372_vm3, %v1194_v12 }
  0x56   : > { %1886 = vmatmul.mubr.msk.f32.gmra.mrb[34].mxu0 %vm372_vm3, %v932_v13 }
  0x57   : > { %1921 = vmatmul.mubr.msk.f32.gmra.mrb[34].mxu1 %vm372_vm3, %v1195_v14 }
  0xe5   : > { %v1793_v17 = vpop.f32.mrb[0].mxu0 }
  0xe6   : > { %v1828_v18 = vpop.f32.mrb[0].mxu1  ;;  %v593_v19 = vmul.f32 %v1793_v17, %v2234_v15  ;;  %v497_v21 = vpop.f32.mrb[1].mxu0 }
  0xe7   : > { %v862_v20 = vmul.f32 %v1828_v18, %v2234_v15  ;;  %v772_v22 = vpop.f32.mrb[1].mxu1  ;;  %v592_v23 = vmul.f32 %v2234_v15, %v497_v21 }
  0xe8   : > { %v861_v24 = vmul.f32 %v2234_v15, %v772_v22  ;;  %v2246_v25 = vadd.f32 %v2239_v16, %v593_v19 }
  0xe9   : > { %v2249_v26 = vadd.f32 %v2239_v16, %v862_v20  ;;  %v2252_v27 = vadd.f32 %v2239_v16, %v592_v23  ;;  %v1796_v29 = vpop.f32.mrb[2].mxu0 }
  0xea   : > { %v2255_v28 = vadd.f32 %v2239_v16, %v861_v24  ;;  %v1831_v30 = vpop.f32.mrb[2].mxu1  ;;  %v595_v32 = vmul.f32 %v1796_v29, %v2234_v15  ;;  %v507_v34 = vpop.f32.mrb[3].mxu0 }
  0xeb   : > { %v898_v31 = vmax.f32 %v2246_v25, %v2249_v26  ;;  %v864_v33 = vmul.f32 %v1831_v30, %v2234_v15  ;;  %v782_v35 = vpop.f32.mrb[3].mxu1  ;;  %v594_v37 = vmul.f32 %v2234_v15, %v507_v34 }
  0xec   : > { %v897_v36 = vmax.f32 %v2252_v27, %v2255_v28  ;;  %v863_v38 = vmul.f32 %v2234_v15, %v782_v35  ;;  %v2266_v39 = vadd.f32 %v2239_v16, %v595_v32 }
  0xed   : > { %v2269_v40 = vadd.f32 %v2239_v16, %v864_v33  ;;  %v2272_v41 = vadd.f32 %v2239_v16, %v594_v37  ;;  %v1799_v43 = vpop.f32.mrb[4].mxu0 }
  0xee   : > { %v2275_v42 = vadd.f32 %v2239_v16, %v863_v38  ;;  %v1834_v44 = vpop.f32.mrb[4].mxu1  ;;  %v597_v46 = vmul.f32 %v1799_v43, %v2234_v15  ;;  %v517_v48 = vpop.f32.mrb[5].mxu0 }
  0xef   : > { %v900_v45 = vmax.f32 %v2266_v39, %v2269_v40  ;;  %v866_v47 = vmul.f32 %v1834_v44, %v2234_v15  ;;  %v792_v49 = vpop.f32.mrb[5].mxu1  ;;  %v596_v51 = vmul.f32 %v2234_v15, %v517_v48 }
  0xf0   : > { %v899_v50 = vmax.f32 %v2272_v41, %v2275_v42  ;;  %v865_v52 = vmul.f32 %v2234_v15, %v792_v49  ;;  %v2286_v53 = vadd.f32 %v2239_v16, %v597_v46 }
  0xf1   : > { %v2289_v54 = vadd.f32 %v2239_v16, %v866_v47  ;;  %v2292_v55 = vadd.f32 %v2239_v16, %v596_v51  ;;  %v1802_v57 = vpop.f32.mrb[6].mxu0 }
  0xf2   : > { %v2295_v56 = vadd.f32 %v2239_v16, %v865_v52  ;;  %v1837_v58 = vpop.f32.mrb[6].mxu1  ;;  %v599_v60 = vmul.f32 %v1802_v57, %v2234_v15  ;;  %v527_v62 = vpop.f32.mrb[7].mxu0 }
  0xf3   : > { %v902_v59 = vmax.f32 %v2286_v53, %v2289_v54  ;;  %v868_v61 = vmul.f32 %v1837_v58, %v2234_v15  ;;  %v802_v63 = vpop.f32.mrb[7].mxu1  ;;  %v598_v1 = vmul.f32 %v2234_v15, %v527_v62 }
  0xf4   : > { %v901_v0 = vmax.f32 %v2292_v55, %v2295_v56  ;;  %v867_v2 = vmul.f32 %v2234_v15, %v802_v63  ;;  %v2306_v3 = vadd.f32 %v2239_v16, %v599_v60 }
  0xf5   : > { %v2309_v4 = vadd.f32 %v2239_v16, %v868_v61  ;;  %v2312_v5 = vadd.f32 %v2239_v16, %v598_v1  ;;  %v1805_v7 = vpop.f32.mrb[8].mxu0 }
  0xf6   : > { %v2315_v6 = vadd.f32 %v2239_v16, %v867_v2  ;;  %v1840_v8 = vpop.f32.mrb[8].mxu1  ;;  %v601_v10 = vmul.f32 %v1805_v7, %v2234_v15  ;;  %v537_v12 = vpop.f32.mrb[9].mxu0 }
  0xf7   : > { %v904_v9 = vmax.f32 %v2306_v3, %v2309_v4  ;;  %v870_v11 = vmul.f32 %v1840_v8, %v2234_v15  ;;  %v812_v13 = vpop.f32.mrb[9].mxu1  ;;  %v600_v17 = vmul.f32 %v2234_v15, %v537_v12 }
  0xf8   : > { %v903_v14 = vmax.f32 %v2312_v5, %v2315_v6  ;;  %v869_v18 = vmul.f32 %v2234_v15, %v812_v13  ;;  %v2326_v19 = vadd.f32 %v2239_v16, %v601_v10 }
  0xf9   : > { %v2329_v20 = vadd.f32 %v2239_v16, %v870_v11  ;;  %v2332_v21 = vadd.f32 %v2239_v16, %v600_v17  ;;  %v1808_v23 = vpop.f32.mrb[10].mxu0 }
  0xfa   : > { %v2335_v22 = vadd.f32 %v2239_v16, %v869_v18  ;;  %v1843_v24 = vpop.f32.mrb[10].mxu1  ;;  %v603_v30 = vmul.f32 %v1808_v23, %v2234_v15  ;;  %v547_v33 = vpop.f32.mrb[11].mxu0 }
  0xfb   : > { %v906_v29 = vmax.f32 %v2326_v19, %v2329_v20  ;;  %v872_v32 = vmul.f32 %v1843_v24, %v2234_v15  ;;  %v822_v34 = vpop.f32.mrb[11].mxu1  ;;  %v602_v37 = vmul.f32 %v2234_v15, %v547_v33 }
  0xfc   : > { %v871_v38 = vmul.f32 %v2234_v15, %v822_v34  ;;  %v2346_v43 = vadd.f32 %v2239_v16, %v603_v30 }
  0xfd   : > { %v2349_v44 = vadd.f32 %v2239_v16, %v872_v32  ;;  %v2352_v46 = vadd.f32 %v2239_v16, %v602_v37  ;;  %v1811_v48 = vpop.f32.mrb[12].mxu0 }
  0xfe   : > { %v2355_v47 = vadd.f32 %v2239_v16, %v871_v38  ;;  %v1846_v49 = vpop.f32.mrb[12].mxu1  ;;  %v605_v52 = vmul.f32 %v1811_v48, %v2234_v15  ;;  %v557_v58 = vpop.f32.mrb[13].mxu0 }
  0xff   : > { %v874_v57 = vmul.f32 %v1846_v49, %v2234_v15  ;;  %v832_v60 = vpop.f32.mrb[13].mxu1  ;;  %v604_v62 = vmul.f32 %v2234_v15, %v557_v58 }
 0x100   : > { %v873_v63 = vmul.f32 %v2234_v15, %v832_v60  ;;  %v2366_v1 = vadd.f32 %v2239_v16, %v605_v52 }
 0x101   : > { %v2369_v2 = vadd.f32 %v2239_v16, %v874_v57  ;;  %v2372_v7 = vadd.f32 %v2239_v16, %v604_v62  ;;  %v1814_v10 = vpop.f32.mrb[14].mxu0 }
 0x102   : > { %v2375_v8 = vadd.f32 %v2239_v16, %v873_v63  ;;  %v1849_v11 = vpop.f32.mrb[14].mxu1  ;;  %v607_v13 = vmul.f32 %v1814_v10, %v2234_v15  ;;  %v567_v18 = vpop.f32.mrb[15].mxu0 }
 0x103   : > { %v876_v17 = vmul.f32 %v1849_v11, %v2234_v15  ;;  %v842_v23 = vpop.f32.mrb[15].mxu1  ;;  %v606_v30 = vmul.f32 %v2234_v15, %v567_v18 }
 0x104   : > { %v875_v32 = vmul.f32 %v2234_v15, %v842_v23  ;;  %v2386_v33 = vadd.f32 %v2239_v16, %v607_v13 }
 0x105   : > { %v2389_v34 = vadd.f32 %v2239_v16, %v876_v17  ;;  %v2392_v37 = vadd.f32 %v2239_v16, %v606_v30  ;;  %v1817_v48 = vpop.f32.mrb[16].mxu0 }
 0x106   : > { %v2395_v38 = vadd.f32 %v2239_v16, %v875_v32  ;;  %v1852_v49 = vpop.f32.mrb[16].mxu1  ;;  %v609_v57 = vmul.f32 %v1817_v48, %v2234_v15  ;;  %v577_v60 = vpop.f32.mrb[17].mxu0 }
 0x107   : > { %v878_v58 = vmul.f32 %v1852_v49, %v2234_v15  ;;  %v852_v62 = vpop.f32.mrb[17].mxu1  ;;  %v608_v10 = vmul.f32 %v2234_v15, %v577_v60 }
 0x108   : > { %v877_v11 = vmul.f32 %v2234_v15, %v852_v62  ;;  %v2406_v13 = vadd.f32 %v2239_v16, %v609_v57 }
 0x109   : > { %v2409_v17 = vadd.f32 %v2239_v16, %v878_v58  ;;  %v2412_v18 = vadd.f32 %v2239_v16, %v608_v10  ;;  %v1863_v30 = vpop.f32.mrb[18].mxu0 }
 0x10a   : > { %v2415_v23 = vadd.f32 %v2239_v16, %v877_v11  ;;  %v1898_v32 = vpop.f32.mrb[18].mxu1  ;;  %v1143_v49 = vmul.f32 %v1863_v30, %v2234_v15  ;;  %v1053_v57 = vpop.f32.mrb[19].mxu0 }
 0x10b   : > { %v1406_v60 = vmul.f32 %v1898_v32, %v2234_v15  ;;  %v1316_v62 = vpop.f32.mrb[19].mxu1  ;;  %v1142_v10 = vmul.f32 %v2234_v15, %v1053_v57 }
 0x10c   : > { %v1405_v63 = vmul.f32 %v2234_v15, %v1316_v62  ;;  %v1161_v11 = vadd.f32 %v2239_v16, %v1143_v49 }
 0x10d   : > { %v1424_v52 = vadd.f32 %v2239_v16, %v1406_v60  ;;  %v1160_v48 = vadd.f32 %v2239_v16, %v1142_v10  ;;  %v1866_v24 = vpop.f32.mrb[20].mxu0 }
 0x10e   : > { %v1423_v30 = vadd.f32 %v2239_v16, %v1405_v63  ;;  %v1901_v32 = vpop.f32.mrb[20].mxu1  ;;  %v1145_v61 = vmul.f32 %v1866_v24, %v2234_v15  ;;  %v1063_v51 = vpop.f32.mrb[21].mxu0 }
 0x10f   : > { %v1442_v12 = vmax.f32 %v1161_v11, %v1424_v52  ;;  %v1408_v58 = vmul.f32 %v1901_v32, %v2234_v15  ;;  %v1326_v57 = vpop.f32.mrb[21].mxu1  ;;  %v1144_v62 = vmul.f32 %v2234_v15, %v1063_v51 }
 0x110   : > { %v1441_v35 = vmax.f32 %v1160_v48, %v1423_v30  ;;  %v1407_v49 = vmul.f32 %v2234_v15, %v1326_v57  ;;  %v1163_v63 = vadd.f32 %v2239_v16, %v1145_v61 }
 0x111   : > { %v1460_v60 = vmax.f32 %v898_v31, %v1442_v12  ;;  %v1426_v10 = vadd.f32 %v2239_v16, %v1408_v58  ;;  %v1162_v24 = vadd.f32 %v2239_v16, %v1144_v62  ;;  %v1869_v25 = vpop.f32.mrb[22].mxu0 }
 0x112   : > { %v1459_v51 = vmax.f32 %v897_v36, %v1441_v35  ;;  %v1425_v52 = vadd.f32 %v2239_v16, %v1407_v49  ;;  %v1904_v26 = vpop.f32.mrb[22].mxu1  ;;  %v1147_v12 = vmul.f32 %v1869_v25, %v2234_v15  ;;  %v1073_v58 = vpop.f32.mrb[23].mxu0 }
 0x113   : > { %v1478_v31 = vmax.f32 %v1460_v60, 0.0  ;;  %v1444_v61 = vmax.f32 %v1163_v63, %v1426_v10  ;;  %v1410_v48 = vmul.f32 %v1904_v26, %v2234_v15  ;;  %v1336_v11 = vpop.f32.mrb[23].mxu1  ;;  %v1146_v27 = vmul.f32 %v2234_v15, %v1073_v58 }
 0x114   : > { %v1477_v30 = vmax.f32 %v1459_v51, 0.0  ;;  %v1443_v32 = vmax.f32 %v1162_v24, %v1425_v52  ;;  %v1409_v28 = vmul.f32 %v2234_v15, %v1336_v11  ;;  %v1165_v35 = vadd.f32 %v2239_v16, %v1147_v12 }
 0x115   : > { %1496 = vst [vmem:[%s2442_s9 + $0x8] sm:$0xff] %v1478_v31  ;;  %v1462_v36 = vmax.f32 %v900_v45, %v1444_v61  ;;  %v1428_v57 = vadd.f32 %v2239_v16, %v1410_v48  ;;  %v1164_v49 = vadd.f32 %v2239_v16, %v1146_v27  ;;  %v1872_v63 = vpop.f32.mrb[24].mxu0 }
 0x116   : > { %1495 = vst [vmem:[%s2442_s9] sm:$0xff] %v1477_v30  ;;  %v1461_v62 = vmax.f32 %v899_v50, %v1443_v32  ;;  %v1427_v60 = vadd.f32 %v2239_v16, %v1409_v28  ;;  %v1907_v10 = vpop.f32.mrb[24].mxu1  ;;  %v1149_v40 = vmul.f32 %v1872_v63, %v2234_v15  ;;  %v1083_v24 = vpop.f32.mrb[25].mxu0 }
 0x117   : > { %v1480_v51 = vmax.f32 %v1462_v36, 0.0  ;;  %v1446_v39 = vmax.f32 %v1165_v35, %v1428_v57  ;;  %v1412_v45 = vmul.f32 %v1907_v10, %v2234_v15  ;;  %v1346_v52 = vpop.f32.mrb[25].mxu1  ;;  %v1148_v41 = vmul.f32 %v2234_v15, %v1083_v24 }
 0x118   : > { %v1479_v25 = vmax.f32 %v1461_v62, 0.0  ;;  %v1445_v26 = vmax.f32 %v1164_v49, %v1427_v60  ;;  %v1411_v42 = vmul.f32 %v2234_v15, %v1346_v52  ;;  %v1167_v31 = vadd.f32 %v2239_v16, %v1149_v40 }
 0x119   : > { %1498 = vst [vmem:[%s2442_s9 + $0x18] sm:$0xff] %v1480_v51  ;;  %v1464_v50 = vmax.f32 %v902_v59, %v1446_v39  ;;  %v1430_v61 = vadd.f32 %v2239_v16, %v1412_v45  ;;  %v1166_v48 = vadd.f32 %v2239_v16, %v1148_v41  ;;  %v1875_v11 = vpop.f32.mrb[26].mxu0  ;;  %v2584_v41 = vmax.f32 %v2332_v21, %v2335_v22 }
 0x11a   : > { %1497 = vst [vmem:[%s2442_s9 + $0x10] sm:$0xff] %v1479_v25  ;;  %v1463_v12 = vmax.f32 %v901_v0, %v1445_v26  ;;  %v1429_v58 = vadd.f32 %v2239_v16, %v1411_v42  ;;  %v1910_v30 = vpop.f32.mrb[26].mxu1  ;;  %v1151_v54 = vmul.f32 %v1875_v11, %v2234_v15  ;;  %v1093_v27 = vpop.f32.mrb[27].mxu0 }
 0x11b   : > { %v1482_v32 = vmax.f32 %v1464_v50, 0.0  ;;  %v1448_v53 = vmax.f32 %v1167_v31, %v1430_v61  ;;  %v1414_v59 = vmul.f32 %v1910_v30, %v2234_v15  ;;  %v1356_v28 = vpop.f32.mrb[27].mxu1  ;;  %v1150_v55 = vmul.f32 %v2234_v15, %v1093_v27 }
 0x11c   : > { %v1481_v36 = vmax.f32 %v1463_v12, 0.0  ;;  %v1447_v35 = vmax.f32 %v1166_v48, %v1429_v58  ;;  %v1413_v56 = vmul.f32 %v2234_v15, %v1356_v28  ;;  %v1169_v57 = vadd.f32 %v2239_v16, %v1151_v54 }
 0x11d   : > { %1500 = vst [vmem:[%s2442_s9 + $0x28] sm:$0xff] %v1482_v32  ;;  %v1466_v0 = vmax.f32 %v904_v9, %v1448_v53  ;;  %v1432_v62 = vadd.f32 %v2239_v16, %v1414_v59  ;;  %v1168_v60 = vadd.f32 %v2239_v16, %v1150_v55  ;;  %v1878_v10 = vpop.f32.mrb[28].mxu0  ;;  %v2585_v53 = vmax.f32 %v2346_v43, %v2349_v44 }
 0x11e   : > { %1499 = vst [vmem:[%s2442_s9 + $0x20] sm:$0xff] %v1481_v36  ;;  %v1465_v49 = vmax.f32 %v903_v14, %v1447_v35  ;;  %v1431_v63 = vadd.f32 %v2239_v16, %v1413_v56  ;;  %v1913_v51 = vpop.f32.mrb[28].mxu1  ;;  %v1153_v4 = vmul.f32 %v1878_v10, %v2234_v15  ;;  %v1103_v40 = vpop.f32.mrb[29].mxu0  ;;  %v2586_v28 = vmax.f32 %v2352_v46, %v2355_v47 }
 0x11f   : > { %v1484_v39 = vmax.f32 %v1466_v0, 0.0  ;;  %v1450_v3 = vmax.f32 %v1169_v57, %v1432_v62  ;;  %v1416_v9 = vmul.f32 %v1913_v51, %v2234_v15  ;;  %v1366_v45 = vpop.f32.mrb[29].mxu1  ;;  %v1152_v5 = vmul.f32 %v2234_v15, %v1103_v40 }
 0x120   : > { %v1483_v24 = vmax.f32 %v1465_v49, 0.0  ;;  %v1449_v52 = vmax.f32 %v1168_v60, %v1431_v63  ;;  %v1415_v6 = vmul.f32 %v2234_v15, %v1366_v45  ;;  %v1171_v25 = vadd.f32 %v2239_v16, %v1153_v4 }
 0x121   : > { %1502 = vst [vmem:[%s2442_s9 + $0x38] sm:$0xff] %v1484_v39  ;;  %v1468_v14 = vmax.f32 %v906_v29, %v1450_v3  ;;  %v1434_v26 = vadd.f32 %v2239_v16, %v1416_v9  ;;  %v1170_v50 = vadd.f32 %v2239_v16, %v1152_v5  ;;  %v1881_v61 = vpop.f32.mrb[30].mxu0  ;;  %v2587_v51 = vmax.f32 %v2366_v1, %v2369_v2 }
 0x122   : > { %1501 = vst [vmem:[%s2442_s9 + $0x30] sm:$0xff] %v1483_v24  ;;  %v1467_v42 = vmax.f32 %v2584_v41, %v1449_v52  ;;  %v1433_v31 = vadd.f32 %v2239_v16, %v1415_v6  ;;  %v1916_v12 = vpop.f32.mrb[30].mxu1  ;;  %v1155_v20 = vmul.f32 %v1881_v61, %v2234_v15  ;;  %v1113_v58 = vpop.f32.mrb[31].mxu0  ;;  %v2588_v9 = vmax.f32 %v2372_v7, %v2375_v8 }
 0x123   : > { %v1486_v48 = vmax.f32 %v1468_v14, 0.0  ;;  %v1452_v19 = vmax.f32 %v1171_v25, %v1434_v26  ;;  %v1418_v29 = vmul.f32 %v1916_v12, %v2234_v15  ;;  %v1376_v11 = vpop.f32.mrb[31].mxu1  ;;  %v1154_v21 = vmul.f32 %v2234_v15, %v1113_v58 }
 0x124   : > { %v1485_v30 = vmax.f32 %v1467_v42, 0.0  ;;  %v1451_v32 = vmax.f32 %v1170_v50, %v1433_v31  ;;  %v1417_v22 = vmul.f32 %v2234_v15, %v1376_v11  ;;  %v1173_v59 = vadd.f32 %v2239_v16, %v1155_v20 }
 0x125   : > { %1504 = vst [vmem:[%s2442_s9 + $0x48] sm:$0xff] %v1486_v48  ;;  %v1470_v54 = vmax.f32 %v2585_v53, %v1452_v19  ;;  %v1436_v27 = vadd.f32 %v2239_v16, %v1418_v29  ;;  %v1172_v35 = vadd.f32 %v2239_v16, %v1154_v21  ;;  %v1884_v56 = vpop.f32.mrb[32].mxu0  ;;  %v2589_v50 = vmax.f32 %v2386_v33, %v2389_v34 }
 0x126   : > { %1503 = vst [vmem:[%s2442_s9 + $0x40] sm:$0xff] %v1485_v30  ;;  %v1469_v36 = vmax.f32 %v2586_v28, %v1451_v32  ;;  %v1435_v55 = vadd.f32 %v2239_v16, %v1417_v22  ;;  %v1919_v0 = vpop.f32.mrb[32].mxu1  ;;  %v1157_v44 = vmul.f32 %v1884_v56, %v2234_v15  ;;  %v1123_v49 = vpop.f32.mrb[33].mxu0  ;;  %v2590_v48 = vmax.f32 %v2392_v37, %v2395_v38 }
 0x127   : > { %v1488_v57 = vmax.f32 %v1470_v54, 0.0  ;;  %v1454_v43 = vmax.f32 %v1173_v59, %v1436_v27  ;;  %v1420_v62 = vmul.f32 %v1919_v0, %v2234_v15  ;;  %v1386_v60 = vpop.f32.mrb[33].mxu1  ;;  %v1156_v46 = vmul.f32 %v2234_v15, %v1123_v49 }
 0x128   : > { %v1487_v63 = vmax.f32 %v1469_v36, 0.0  ;;  %v1453_v10 = vmax.f32 %v1172_v35, %v1435_v55  ;;  %v1419_v47 = vmul.f32 %v2234_v15, %v1386_v60  ;;  %v1175_v3 = vadd.f32 %v2239_v16, %v1157_v44 }
 0x129   : > { %1506 = vst [vmem:[%s2442_s9 + $0x58] sm:$0xff] %v1488_v57  ;;  %v1472_v39 = vmax.f32 %v2587_v51, %v1454_v43  ;;  %v1438_v4 = vadd.f32 %v2239_v16, %v1420_v62  ;;  %v1174_v45 = vadd.f32 %v2239_v16, %v1156_v46  ;;  %v1887_v52 = vpop.f32.mrb[34].mxu0  ;;  %v2591_v34 = vmax.f32 %v2406_v13, %v2409_v17 }
 0x12a   : > { %1505 = vst [vmem:[%s2442_s9 + $0x50] sm:$0xff] %v1487_v63  ;;  %v1471_v40 = vmax.f32 %v2588_v9, %v1453_v10  ;;  %v1437_v24 = vadd.f32 %v2239_v16, %v1419_v47  ;;  %v1922_v5 = vpop.f32.mrb[34].mxu1  ;;  %v1159_v2 = vmul.f32 %v1887_v52, %v2234_v15  ;;  %v1133_v25 = vpop.f32.mrb[35].mxu0  ;;  %v2592_v32 = vmax.f32 %v2412_v18, %v2415_v23 }
 0x12b   : > { %v1490_v6 = vmax.f32 %v1472_v39, 0.0  ;;  %v1456_v1 = vmax.f32 %v1175_v3, %v1438_v4  ;;  %v1422_v14 = vmul.f32 %v1922_v5, %v2234_v15  ;;  %v1396_v26 = vpop.f32.mrb[35].mxu1  ;;  %v1158_v8 = vmul.f32 %v2234_v15, %v1133_v25 }
 0x12c   : > { %v1489_v41 = vmax.f32 %v1471_v40, 0.0  ;;  %v1455_v7 = vmax.f32 %v1174_v45, %v1437_v24  ;;  %v1421_v42 = vmul.f32 %v2234_v15, %v1396_v26  ;;  %v1177_v61 = vadd.f32 %v2239_v16, %v1159_v2 }
 0x12d   : > { %1508 = vst [vmem:[%s2442_s9 + $0x68] sm:$0xff] %v1490_v6  ;;  %v1474_v31 = vmax.f32 %v2589_v50, %v1456_v1  ;;  %v1440_v12 = vadd.f32 %v2239_v16, %v1422_v14  ;;  %v1176_v20 = vadd.f32 %v2239_v16, %v1158_v8 }
 0x12e   : > { %1507 = vst [vmem:[%s2442_s9 + $0x60] sm:$0xff] %v1489_v41  ;;  %v1473_v19 = vmax.f32 %v2590_v48, %v1455_v7  ;;  %v1439_v15 = vadd.f32 %v2239_v16, %v1421_v42 }
 0x12f   : > { %v1492_v29 = vmax.f32 %v1474_v31, 0.0  ;;  %v1458_v58 = vmax.f32 %v1177_v61, %v1440_v12 }
 0x130   : > { %v1491_v11 = vmax.f32 %v1473_v19, 0.0  ;;  %v1457_v33 = vmax.f32 %v1176_v20, %v1439_v15 }
 0x131   : > { %1510 = vst [vmem:[%s2442_s9 + $0x78] sm:$0xff] %v1492_v29  ;;  %v1476_v30 = vmax.f32 %v2591_v34, %v1458_v58 }
 0x132   : > { %1509 = vst [vmem:[%s2442_s9 + $0x70] sm:$0xff] %v1491_v11  ;;  %v1475_v21 = vmax.f32 %v2592_v32, %v1457_v33 }
 0x133   : > { %v1494_v37 = vmax.f32 %v1476_v30, 0.0 }
 0x134   : > { %v1493_v38 = vmax.f32 %v1475_v21, 0.0 }
 0x135   : > { %1512 = vst [vmem:[%s2442_s9 + $0x88] sm:$0xff] %v1494_v37 }
 0x136   : > { %1511 = vst [vmem:[%s2442_s9 + $0x80] sm:$0xff] %v1493_v38 }
 0x137 PF: > { %s17_s24 = sadd.s32 1, %s1978_s24  }
 0x138   : > { %p14_p4 = scmp.ge.s32.totalorder %s17_s24, 4  }
 0x13a   :  { %16 = sbr.rel (!%p14_p4) target bundleno = 1 (0x1), region = 87 }

// kernel: backbone2_forward.5
= control target key start
LH: loop header
LB: loop body
LE: loop exit
PB: predicated region body
PF: predicated region fallthrough
CT: control target
= control target key end

     0   :  { %s1775_s24 = smov 0   ;;  %s2320_s0 = inlined_call_operand.vmem [shape: f32[32,500], index: 0, kind: input, shape index: {}]   ;;  %s2321_s1 = inlined_call_operand.vmem [shape: f32[32,500], index: 1, kind: input, shape index: {}]   ;;  %s2322_s2 = inlined_call_operand.vmem [shape: f32[32,500], index: 2, kind: input, shape index: {}]   ;;  %s2323_s3 = inlined_call_operand.vmem [shape: f32[32,500], index: 3, kind: input, shape index: {}]   ;;  %s2324_s4 = inlined_call_operand.vmem [shape: f32[500,128], index: 4, kind: input, shape index: {}]   ;;  %s2325_s5 = inlined_call_operand.vmem [shape: f32[1,128], index: 5, kind: input, shape index: {}]   ;;  %s2326_s6 = inlined_call_operand.vmem [shape: f32[1,128], index: 6, kind: input, shape index: {}]   ;;  %s2327_s7 = inlined_call_operand.vmem [shape: f32[32,128], index: 7, kind: output, shape index: {}]  }
   0x1 LB: > { %s1216_s25 = sadd.s32 4294967295, %s1731_s24   ;;  %p1220_p0 = scmp.ge.s32.totalorder %s1731_s24, 1  ;;  %s1731_s24 = sphi %s1775_s24, %s17_s24  }
   0x2   : > { %p275_p1 = scmp.lt.s32.totalorder %s1731_s24, 3 }
   0x4   : > { %p276_p2 = pnand %p1220_p0, %p275_p1 }
   0x5   : > { %v376_v0 = vld [vmem:[%s2324_s4 + $0x80] sm:$0xff] (!%p276_p2)  ;;  %v377_v1 = vld [vmem:[%s2324_s4 + $0x88] sm:$0xff] (!%p276_p2)  ;;  %s1792_s9 = sshll.u32 (!%p276_p2), %s1216_s25, 1  ;;  %v1733_v3 = vmov (!%p276_p2), 0.0|0.0   ;;  %v378_v10 = vld [vmem:[%s2324_s4 + $0x90] sm:$0xff] (!%p276_p2)  ;;  %vm433_vm0 = vcmask (!%p276_p2), 949248  }
   0x6   : > { %279 = sbr.rel (%p276_p2) target bundleno = 431 (0x1af), region = 48  ;;  %v392_v2 = vld [vmem:[%s2324_s4 + $0x100] sm:$0xff] (!%p276_p2)  ;;  %1439 = vmatprep.subr.bf16.mxu1 (!%p276_p2), %v1733_v3  ;;  %v1795_v4 = vpack.c.bf16 (!%p276_p2), %v377_v1, %v376_v0  ;;  %v393_v5 = vld [vmem:[%s2324_s4 + $0x108] sm:$0xff] (!%p276_p2)  ;;  %v379_v11 = vld [vmem:[%s2324_s4 + $0x98] sm:$0xff] (!%p276_p2)  ;;  %p327_p3 = scmp.lt.s32.totalorder (!%p276_p2), %s1792_s9, 3  ;;  %vm440_vm1 = vcmask (!%p276_p2), 1043456  }
   0x7   : > { %v360_v6 = vld [vmem:[%s2324_s4] sm:$0xff] (!%p276_p2)  ;;  %v361_v7 = vld [vmem:[%s2324_s4 + $0x8] sm:$0xff] (!%p276_p2)  ;;  %v1806_v8 = vpack.c.bf16 (!%p276_p2), %v393_v5, %v392_v2  ;;  %v394_v12 = vld [vmem:[%s2324_s4 + $0x110] sm:$0xff] (!%p276_p2)  ;;  %v1821_v13 = vpack.c.bf16 (!%p276_p2), %v379_v11, %v378_v10 }
   0x8   : > { %v1808_v9 = vpack.c.bf16 (!%p276_p2), %v361_v7, %v360_v6  ;;  %1408 = vmatprep.subr.bf16.mxu0 (!%p276_p2), %v1795_v4  ;;  %v395_v14 = vld [vmem:[%s2324_s4 + $0x118] sm:$0xff] (!%p276_p2)  ;;  %v362_v15 = vld [vmem:[%s2324_s4 + $0x10] sm:$0xff] (!%p276_p2)  ;;  %v380_v19 = vld [vmem:[%s2324_s4 + $0xa0] sm:$0xff] (!%p276_p2) }
   0x9   : > { %v363_v16 = vld [vmem:[%s2324_s4 + $0x18] sm:$0xff] (!%p276_p2)  ;;  %1441 = vmatpush1.bf16.msra.mxu1 (!%p276_p2), %v1806_v8  ;;  %v1834_v17 = vpack.c.bf16 (!%p276_p2), %v395_v14, %v394_v12  ;;  %v381_v20 = vld [vmem:[%s2324_s4 + $0xa8] sm:$0xff] (!%p276_p2)  ;;  %v396_v21 = vld [vmem:[%s2324_s4 + $0x120] sm:$0xff] (!%p276_p2) }
   0xa   : > { %1410 = vmatpush3.bf16.msra.mxu0 (!%p276_p2), %v1808_v9  ;;  %v1836_v18 = vpack.c.bf16 (!%p276_p2), %v363_v16, %v362_v15  ;;  %1442 = vmatprep.subr.bf16.mxu1 (!%p276_p2), %v1733_v3  ;;  %v1849_v22 = vpack.c.bf16 (!%p276_p2), %v381_v20, %v380_v19  ;;  %v397_v23 = vld [vmem:[%s2324_s4 + $0x128] sm:$0xff] (!%p276_p2)  ;;  %v364_v24 = vld [vmem:[%s2324_s4 + $0x20] sm:$0xff] (!%p276_p2)  ;;  %v382_v26 = vld [vmem:[%s2324_s4 + $0xb0] sm:$0xff] (!%p276_p2) }
   0xb   : > { %1412 = vmatprep.subr.bf16.mxu0 (!%p276_p2), %v1821_v13  ;;  %v365_v25 = vld [vmem:[%s2324_s4 + $0x28] sm:$0xff] (!%p276_p2)  ;;  %v383_v27 = vld [vmem:[%s2324_s4 + $0xb8] sm:$0xff] (!%p276_p2)  ;;  %v1873_v28 = vpack.c.bf16 (!%p276_p2), %v397_v23, %v396_v21  ;;  %v398_v30 = vld [vmem:[%s2324_s4 + $0x130] sm:$0xff] (!%p276_p2) }
   0xc   : > { %v1875_v29 = vpack.c.bf16 (!%p276_p2), %v365_v25, %v364_v24  ;;  %v1882_v31 = vpack.c.bf16 (!%p276_p2), %v383_v27, %v382_v26  ;;  %v399_v32 = vld [vmem:[%s2324_s4 + $0x138] sm:$0xff] (!%p276_p2)  ;;  %v366_v33 = vld [vmem:[%s2324_s4 + $0x30] sm:$0xff] (!%p276_p2)  ;;  %v384_v35 = vld [vmem:[%s2324_s4 + $0xc0] sm:$0xff] (!%p276_p2) }
   0xd   : > { %s2329_s9 = smov (!%p327_p3, %s1792_s9), 3  ;;  %1444 = vmatpush1.bf16.msra.mxu1 %v1834_v17  ;;  %v367_v34 = vld [vmem:[%s2324_s4 + $0x38] sm:$0xff]  ;;  %v385_v36 = vld [vmem:[%s2324_s4 + $0xc8] sm:$0xff]  ;;  %v1904_v37 = vpack.c.bf16 %v399_v32, %v398_v30  ;;  %v400_v39 = vld [vmem:[%s2324_s4 + $0x140] sm:$0xff] }
   0xe   : > { %1414 = vmatpush3.bf16.msra.mxu0 %v1836_v18  ;;  %1445 = vmatprep.subr.bf16.mxu1 %v1733_v3  ;;  %s1900_s14 = sshll.u32 %s2329_s9, 5  ;;  %v1906_v38 = vpack.c.bf16 %v367_v34, %v366_v33  ;;  %v1913_v40 = vpack.c.bf16 %v385_v36, %v384_v35  ;;  %v401_v41 = vld [vmem:[%s2324_s4 + $0x148] sm:$0xff]  ;;  %v368_v42 = vld [vmem:[%s2324_s4 + $0x40] sm:$0xff]  ;;  %v386_v44 = vld [vmem:[%s2324_s4 + $0xd0] sm:$0xff]  ;;  %s1234_s28 = sshll.u32 %s2329_s9, 3 }
   0xf   : > { %1416 = vmatprep.subr.bf16.mxu0 %v1849_v22  ;;  %v369_v43 = vld [vmem:[%s2324_s4 + $0x48] sm:$0xff]  ;;  %s1928_s26 = scalar_lea.vmem %s2320_s0, %s1900_s14  ;;  %v387_v45 = vld [vmem:[%s2324_s4 + $0xd8] sm:$0xff]  ;;  %v1938_v46 = vpack.c.bf16 %v401_v41, %v400_v39  ;;  %v402_v48 = vld [vmem:[%s2324_s4 + $0x150] sm:$0xff]  ;;  %s2054_s13 = scalar_lea.vmem %s2321_s1, %s1900_s14 }
  0x10   : > { %v1940_v47 = vpack.c.bf16 %v369_v43, %v368_v42  ;;  %v426_v49 = vld [vmem:[%s1928_s26 + $0x8] sm:$0xff]  ;;  %v1948_v50 = vpack.c.bf16 %v387_v45, %v386_v44  ;;  %v403_v51 = vld [vmem:[%s2324_s4 + $0x158] sm:$0xff]  ;;  %v370_v52 = vld [vmem:[%s2324_s4 + $0x50] sm:$0xff]  ;;  %s2142_s21 = scalar_lea.vmem %s2322_s2, %s1900_s14  ;;  %s2226_s23 = scalar_lea.vmem %s2323_s3, %s1900_s14 }
  0x11   : > { %1447 = vmatpush1.bf16.msra.mxu1 %v1873_v28  ;;  %v371_v53 = vld [vmem:[%s2324_s4 + $0x58] sm:$0xff]  ;;  %v388_v54 = vld [vmem:[%s2324_s4 + $0xe0] sm:$0xff]  ;;  %v389_v55 = vld [vmem:[%s2324_s4 + $0xe8] sm:$0xff]  ;;  %508 = vmatprep.mubr.f32.mxu0 %v426_v49  ;;  %v1967_v56 = vpack.c.bf16 %v403_v51, %v402_v48  ;;  %s358_s8 = scalar_lea.vmem %s2327_s7, %s1234_s28 }
  0x12   : > { %1418 = vmatpush3.bf16.msra.mxu0 %v1875_v29  ;;  %1448 = vmatprep.subr.bf16.mxu1 %v1733_v3  ;;  %v1969_v57 = vpack.c.bf16 %v371_v53, %v370_v52  ;;  %v404_v58 = vld [vmem:[%s2324_s4 + $0x160] sm:$0xff]  ;;  %v1976_v59 = vpack.c.bf16 %v389_v55, %v388_v54  ;;  %v405_v60 = vld [vmem:[%s2324_s4 + $0x168] sm:$0xff]  ;;  %v390_v63 = vld [vmem:[%s2324_s4 + $0xf0] sm:$0xff]  ;;  %v1734_v53 = vmov 0.0  }
  0x13   : > { %1420 = vmatprep.subr.bf16.mxu0 %v1882_v31  ;;  %v372_v61 = vld [vmem:[%s2324_s4 + $0x60] sm:$0xff]  ;;  %v373_v62 = vld [vmem:[%s2324_s4 + $0x68] sm:$0xff]  ;;  %v391_v0 = vld [vmem:[%s2324_s4 + $0xf8] sm:$0xff]  ;;  %v1997_v2 = vpack.c.bf16 %v405_v60, %v404_v58 }
  0x14   : > { %v428_v1 = vld [vmem:[%s1928_s26 + $0x18] sm:$0xff]  ;;  %v1999_v5 = vpack.c.bf16 %v373_v62, %v372_v61  ;;  %v406_v6 = vld [vmem:[%s2324_s4 + $0x170] sm:$0xff]  ;;  %v2006_v7 = vpack.c.bf16 %v391_v0, %v390_v63  ;;  %v408_v16 = vld [vmem:[%s2324_s4 + $0x180] sm:$0xff] }
  0x15   : > { %1450 = vmatpush1.bf16.msra.mxu1 %v1904_v37  ;;  %1236 = vmatprep.mubr.msk.f32.mxu1 %vm433_vm0, %v428_v1  ;;  %v407_v10 = vld [vmem:[%s2324_s4 + $0x178] sm:$0xff]  ;;  %v374_v11 = vld [vmem:[%s2324_s4 + $0x70] sm:$0xff]  ;;  %v409_v19 = vld [vmem:[%s2324_s4 + $0x188] sm:$0xff] }
  0x16   : > { %1422 = vmatpush3.bf16.msra.mxu0 %v1906_v38  ;;  %1451 = vmatprep.subr.bf16.mxu1 %v1733_v3  ;;  %v375_v12 = vld [vmem:[%s2324_s4 + $0x78] sm:$0xff]  ;;  %v2019_v14 = vpack.c.bf16 %v407_v10, %v406_v6  ;;  %v425_v20 = vld [vmem:[%s1928_s26] sm:$0xff]  ;;  %v2034_v21 = vpack.c.bf16 %v409_v19, %v408_v16  ;;  %v410_v23 = vld [vmem:[%s2324_s4 + $0x190] sm:$0xff] }
  0x17   : > { %1424 = vmatprep.subr.bf16.mxu0 %v1913_v40  ;;  %v2021_v15 = vpack.c.bf16 %v375_v12, %v374_v11  ;;  %v411_v24 = vld [vmem:[%s2324_s4 + $0x198] sm:$0xff]  ;;  %v430_v25 = vld [vmem:[%s1928_s26 + $0x28] sm:$0xff]  ;;  %v429_v27 = vld [vmem:[%s1928_s26 + $0x20] sm:$0xff] }
  0x18   : > { %v2047_v26 = vpack.c.bf16 %v411_v24, %v410_v23  ;;  %v412_v30 = vld [vmem:[%s2324_s4 + $0x1a0] sm:$0xff]  ;;  %v413_v32 = vld [vmem:[%s2324_s4 + $0x1a8] sm:$0xff]  ;;  %v414_v35 = vld [vmem:[%s2324_s4 + $0x1b0] sm:$0xff] }
  0x19   : > { %1453 = vmatpush1.bf16.msra.mxu1 %v1938_v46  ;;  %v611_v33 = vld [vmem:[%s2054_s13 + $0x8] sm:$0xff]  ;;  %v2067_v34 = vpack.c.bf16 %v413_v32, %v412_v30  ;;  %v415_v36 = vld [vmem:[%s2324_s4 + $0x1b8] sm:$0xff]  ;;  %v416_v41 = vld [vmem:[%s2324_s4 + $0x1c0] sm:$0xff] }
  0x1a   : > { %1426 = vmatpush3.bf16.msra.mxu0 %v1940_v47  ;;  %1454 = vmatprep.subr.bf16.mxu1 %v1733_v3  ;;  %v2079_v39 = vpack.c.bf16 %v415_v36, %v414_v35  ;;  %v417_v42 = vld [vmem:[%s2324_s4 + $0x1c8] sm:$0xff]  ;;  %v418_v44 = vld [vmem:[%s2324_s4 + $0x1d0] sm:$0xff]  ;;  %v419_v45 = vld [vmem:[%s2324_s4 + $0x1d8] sm:$0xff] }
  0x1b   : > { %1428 = vmatprep.subr.bf16.mxu0 %v1948_v50  ;;  %v2091_v43 = vpack.c.bf16 %v417_v42, %v416_v41  ;;  %v2103_v48 = vpack.c.bf16 %v419_v45, %v418_v44  ;;  %v420_v49 = vld [vmem:[%s2324_s4 + $0x1e0] sm:$0xff]  ;;  %v421_v51 = vld [vmem:[%s2324_s4 + $0x1e8] sm:$0xff]  ;;  %v2125_v54 = vld [vmem:[%s2324_s4 + $0x1f0] sm:$0xf] }
  0x1c   : > { %v2115_v52 = vpack.c.bf16 %v421_v51, %v420_v49  ;;  %v427_v55 = vld [vmem:[%s1928_s26 + $0x10] sm:$0xff]  ;;  %v432_v58 = vld [vmem:[%s1928_s26 + $0x38] sm:$0xff]  ;;  %v610_v60 = vld [vmem:[%s2054_s13] sm:$0xff] }
  0x1d   : > { %1456 = vmatpush1.bf16.msra.mxu1 %v1967_v56  ;;  %v431_v61 = vld [vmem:[%s1928_s26 + $0x30] sm:$0xff]  ;;  %v615_v62 = vld [vmem:[%s2054_s13 + $0x28] sm:$0xff]  ;;  %v614_v63 = vld [vmem:[%s2054_s13 + $0x20] sm:$0xff] }
  0x1e   : > { %1430 = vmatpush3.bf16.msra.mxu0 %v1969_v57  ;;  %1457 = vmatprep.subr.bf16.mxu1 %v1733_v3  ;;  %v781_v0 = vld [vmem:[%s2142_s21 + $0x8] sm:$0xff]  ;;  %v613_v1 = vld [vmem:[%s2054_s13 + $0x18] sm:$0xff]  ;;  %v780_v6 = vld [vmem:[%s2142_s21] sm:$0xff] }
  0x1f   : > { %1432 = vmatprep.subr.bf16.mxu0 %v1976_v59  ;;  %v785_v10 = vld [vmem:[%s2142_s21 + $0x28] sm:$0xff]  ;;  %v784_v11 = vld [vmem:[%s2142_s21 + $0x20] sm:$0xff]  ;;  %v783_v12 = vld [vmem:[%s2142_s21 + $0x18] sm:$0xff] }
  0x20   : > { %v612_v16 = vld [vmem:[%s2054_s13 + $0x10] sm:$0xff]  ;;  %v617_v19 = vld [vmem:[%s2054_s13 + $0x38] sm:$0xff]  ;;  %v1238_v35 = vld [vmem:[%s2325_s5] ss:$0 sm:$0xff] }
  0x21   : > { %1459 = vmatpush1.bf16.msra.mxu1 %v1997_v2  ;;  %v951_v23 = vld [vmem:[%s2226_s23 + $0x18] sm:$0xff] }
  0x22   : > { %1434 = vmatpush3.bf16.msra.mxu0 %v1999_v5  ;;  %1460 = vmatprep.subr.bf16.mxu1 %v1733_v3 }
  0x23   : > { %1436 = vmatprep.subr.bf16.mxu0 %v2006_v7 }
  0x25   : > { %1462 = vmatpush1.bf16.msra.mxu1 %v2019_v14 }
  0x26   : > { %1438 = vmatpush3.bf16.msra.mxu0 %v2021_v15  ;;  %1463 = vmatprep.subr.bf16.mxu1 %v1733_v3 }
  0x27   : > { %1485 = vmatprep.subr.bf16.mxu0 %v1795_v4 }
  0x29   : > { %509 = vmatmul.mubr.f32.vlgmr.msra.gmra.mrb[0].mxu0 %v425_v20  ;;  %1465 = vmatpush1.bf16.msra.mxu1 %v2034_v21  ;;  %v616_v20 = vld [vmem:[%s2054_s13 + $0x30] sm:$0xff] }
  0x2a   : > { %1487 = vmatpush3.bf16.msra.mxu0 %v1808_v9  ;;  %1466 = vmatprep.subr.bf16.mxu1 %v1733_v3 }
  0x2b   : > { %1489 = vmatprep.subr.bf16.mxu0 %v1821_v13  ;;  %513 = vmatprep.mubr.f32.mxu0 %v430_v25 }
  0x2d   : > { %514 = vmatmul.mubr.f32.gmra.mrb[2].mxu0 %v429_v27  ;;  %1468 = vmatpush1.bf16.msra.mxu1 %v2047_v26 }
  0x2e   : > { %1491 = vmatpush3.bf16.msra.mxu0 %v1836_v18  ;;  %1469 = vmatprep.subr.bf16.mxu1 %v1733_v3 }
  0x2f   : > { %1493 = vmatprep.subr.bf16.mxu0 %v1849_v22  ;;  %688 = vmatprep.mubr.f32.mxu0 %v611_v33 }
  0x31   : > { %1471 = vmatpush1.bf16.msra.mxu1 %v2067_v34 }
  0x32   : > { %1495 = vmatpush3.bf16.msra.mxu0 %v1875_v29  ;;  %1472 = vmatprep.subr.bf16.mxu1 %v1733_v3 }
  0x33   : > { %1497 = vmatprep.subr.bf16.mxu0 %v1882_v31 }
  0x35   : > { %1474 = vmatpush1.bf16.msra.mxu1 %v2079_v39 }
  0x36   : > { %1499 = vmatpush3.bf16.msra.mxu0 %v1906_v38  ;;  %1475 = vmatprep.subr.bf16.mxu1 %v1733_v3 }
  0x37   : > { %1501 = vmatprep.subr.bf16.mxu0 %v1913_v40 }
  0x39   : > { %1477 = vmatpush1.bf16.msra.mxu1 %v2091_v43 }
  0x3a   : > { %1503 = vmatpush3.bf16.msra.mxu0 %v1940_v47  ;;  %1478 = vmatprep.subr.bf16.mxu1 %v1733_v3 }
  0x3b   : > { %1505 = vmatprep.subr.bf16.mxu0 %v1948_v50 }
  0x3d   : > { %1480 = vmatpush1.bf16.msra.mxu1 %v2103_v48 }
  0x3e   : > { %1507 = vmatpush3.bf16.msra.mxu0 %v1969_v57  ;;  %1481 = vmatprep.subr.bf16.mxu1 %v1733_v3 }
  0x3f   : > { %1509 = vmatprep.subr.bf16.mxu0 %v1976_v59 }
  0x41   : > { %1483 = vmatpush1.bf16.msra.mxu1 %v2115_v52 }
  0x42   : > { %1511 = vmatpush3.bf16.msra.mxu0 %v1999_v5  ;;  %579 = vmatprep.subr.mxu1 %v1734_v53 }
  0x43   : > { %1513 = vmatprep.subr.bf16.mxu0 %v2006_v7 }
  0x45   : > { %1235 = vmatpush1.msk.msra.mxu1 %vm440_vm1, %v2125_v54 }
  0x46   : > { %1515 = vmatpush3.bf16.msra.mxu0 %v2021_v15  ;;  %584 = vmatmul.mubr.f32.vlgmr.msra.gmra.mrb[0].mxu1 %v427_v55 }
  0x47   : > { %1516 = vmatprep.subr.bf16.mxu1 %v1733_v3  ;;  %1237 = vmatprep.mubr.msk.f32.mxu1 %vm433_vm0, %v432_v58 }
  0x48   : > { %1518 = vmatpush1.bf16.msra.mxu1 %v1806_v8  ;;  %1562 = vmatprep.subr.bf16.mxu0 %v1795_v4 }
  0x49   : > { %689 = vmatmul.mubr.f32.vlgmr.msra.gmra.mrb[4].mxu0 %v610_v60  ;;  %1519 = vmatprep.subr.bf16.mxu1 %v1733_v3 }
  0x4a   : > { %1564 = vmatpush3.bf16.msra.mxu0 %v1808_v9  ;;  %589 = vmatmul.mubr.f32.gmra.mrb[2].mxu1 %v431_v61 }
  0x4b   : > { %1566 = vmatprep.subr.bf16.mxu0 %v1821_v13  ;;  %693 = vmatprep.mubr.f32.mxu0 %v615_v62 }
  0x4c   : > { %1521 = vmatpush1.bf16.msra.mxu1 %v1834_v17  ;;  %1241 = vmatprep.mubr.msk.f32.mxu1 %vm433_vm0, %v613_v1 }
  0x4d   : > { %1522 = vmatprep.subr.bf16.mxu1 %v1733_v3  ;;  %694 = vmatmul.mubr.f32.gmra.mrb[6].mxu0 %v614_v63 }
  0x4e   : > { %1568 = vmatpush3.bf16.msra.mxu0 %v1836_v18  ;;  %858 = vmatprep.mubr.f32.mxu0 %v781_v0 }
  0x4f   : > { %1570 = vmatprep.subr.bf16.mxu0 %v1849_v22 }
  0x50   : > { %1524 = vmatpush1.bf16.msra.mxu1 %v1873_v28 }
  0x51   : > { %1525 = vmatprep.subr.bf16.mxu1 %v1733_v3 }
  0x52   : > { %1572 = vmatpush3.bf16.msra.mxu0 %v1875_v29 }
  0x53   : > { %1574 = vmatprep.subr.bf16.mxu0 %v1882_v31 }
  0x54   : > { %1527 = vmatpush1.bf16.msra.mxu1 %v1904_v37 }
  0x55   : > { %1528 = vmatprep.subr.bf16.mxu1 %v1733_v3 }
  0x56   : > { %1576 = vmatpush3.bf16.msra.mxu0 %v1906_v38 }
  0x57   : > { %1578 = vmatprep.subr.bf16.mxu0 %v1913_v40 }
  0x58   : > { %1530 = vmatpush1.bf16.msra.mxu1 %v1938_v46 }
  0x59   : > { %1531 = vmatprep.subr.bf16.mxu1 %v1733_v3 }
  0x5a   : > { %1580 = vmatpush3.bf16.msra.mxu0 %v1940_v47 }
  0x5b   : > { %1582 = vmatprep.subr.bf16.mxu0 %v1948_v50 }
  0x5c   : > { %1533 = vmatpush1.bf16.msra.mxu1 %v1967_v56 }
  0x5d   : > { %1534 = vmatprep.subr.bf16.mxu1 %v1733_v3 }
  0x5e   : > { %1584 = vmatpush3.bf16.msra.mxu0 %v1969_v57 }
  0x5f   : > { %1586 = vmatprep.subr.bf16.mxu0 %v1976_v59 }
  0x60   : > { %1536 = vmatpush1.bf16.msra.mxu1 %v1997_v2 }
  0x61   : > { %1537 = vmatprep.subr.bf16.mxu1 %v1733_v3 }
  0x62   : > { %1588 = vmatpush3.bf16.msra.mxu0 %v1999_v5 }
  0x63   : > { %1590 = vmatprep.subr.bf16.mxu0 %v2006_v7 }
  0x64   : > { %1539 = vmatpush1.bf16.msra.mxu1 %v2019_v14 }
  0x65   : > { %1540 = vmatprep.subr.bf16.mxu1 %v1733_v3 }
  0x66   : > { %1592 = vmatpush3.bf16.msra.mxu0 %v2021_v15 }
  0x67   : > { %1593 = vmatprep.subr.bf16.mxu0 %v1733_v3 }
  0x68   : > { %1542 = vmatpush1.bf16.msra.mxu1 %v2034_v21 }
  0x69   : > { %859 = vmatmul.mubr.f32.vlgmr.msra.gmra.mrb[8].mxu0 %v780_v6  ;;  %1543 = vmatprep.subr.bf16.mxu1 %v1733_v3 }
  0x6a   : > { %1595 = vmatpush1.bf16.msra.mxu0 %v1806_v8  ;;  %863 = vmatprep.mubr.f32.mxu0 %v785_v10 }
  0x6b   : > { %1596 = vmatprep.subr.bf16.mxu0 %v1733_v3 }
  0x6c   : > { %1545 = vmatpush1.bf16.msra.mxu1 %v2047_v26 }
  0x6d   : > { %1546 = vmatprep.subr.bf16.mxu1 %v1733_v3  ;;  %864 = vmatmul.mubr.f32.gmra.mrb[10].mxu0 %v784_v11 }
  0x6e   : > { %1598 = vmatpush1.bf16.msra.mxu0 %v1834_v17  ;;  %1244 = vmatprep.mubr.msk.f32.mxu0 %vm433_vm0, %v783_v12 }
  0x6f   : > { %1599 = vmatprep.subr.bf16.mxu0 %v1733_v3 }
  0x70   : > { %1548 = vmatpush1.bf16.msra.mxu1 %v2067_v34 }
  0x71   : > { %1549 = vmatprep.subr.bf16.mxu1 %v1733_v3 }
  0x72   : > { %1601 = vmatpush1.bf16.msra.mxu0 %v1873_v28 }
  0x73   : > { %1602 = vmatprep.subr.bf16.mxu0 %v1733_v3 }
  0x74   : > { %1551 = vmatpush1.bf16.msra.mxu1 %v2079_v39 }
  0x75   : > { %1552 = vmatprep.subr.bf16.mxu1 %v1733_v3 }
  0x76   : > { %1604 = vmatpush1.bf16.msra.mxu0 %v1904_v37 }
  0x77   : > { %1605 = vmatprep.subr.bf16.mxu0 %v1733_v3 }
  0x78   : > { %1554 = vmatpush1.bf16.msra.mxu1 %v2091_v43 }
  0x79   : > { %1555 = vmatprep.subr.bf16.mxu1 %v1733_v3 }
  0x7a   : > { %1607 = vmatpush1.bf16.msra.mxu0 %v1938_v46 }
  0x7b   : > { %1608 = vmatprep.subr.bf16.mxu0 %v1733_v3 }
  0x7c   : > { %1557 = vmatpush1.bf16.msra.mxu1 %v2103_v48 }
  0x7d   : > { %1558 = vmatprep.subr.bf16.mxu1 %v1733_v3 }
  0x7e   : > { %1610 = vmatpush1.bf16.msra.mxu0 %v1967_v56 }
  0x7f   : > { %1611 = vmatprep.subr.bf16.mxu0 %v1733_v3 }
  0x80   : > { %1560 = vmatpush1.bf16.msra.mxu1 %v2115_v52 }
  0x81   : > { %759 = vmatprep.subr.mxu1 %v1734_v53 }
  0x82   : > { %1613 = vmatpush1.bf16.msra.mxu0 %v1997_v2 }
  0x83   : > { %1614 = vmatprep.subr.bf16.mxu0 %v1733_v3 }
  0x84   : > { %1240 = vmatpush1.msk.msra.mxu1 %vm440_vm1, %v2125_v54 }
  0x85   : > { %764 = vmatmul.mubr.f32.vlgmr.msra.gmra.mrb[4].mxu1 %v612_v16  ;;  %1670 = vmatprep.subr.bf16.mxu1 %v1733_v3 }
  0x86   : > { %1616 = vmatpush1.bf16.msra.mxu0 %v2019_v14  ;;  %1242 = vmatprep.mubr.msk.f32.mxu1 %vm433_vm0, %v617_v19 }
  0x87   : > { %1617 = vmatprep.subr.bf16.mxu0 %v1733_v3  ;;  %1672 = vmatpush1.bf16.msra.mxu1 %v1806_v8  ;;  %v782_v8 = vld [vmem:[%s2142_s21 + $0x10] sm:$0xff] }
  0x88   : > { %1673 = vmatprep.subr.bf16.mxu1 %v1733_v3 }
  0x89   : > { %769 = vmatmul.mubr.f32.gmra.mrb[6].mxu1 %v616_v20 }
  0x8a   : > { %1619 = vmatpush1.bf16.msra.mxu0 %v2034_v21  ;;  %1247 = vmatprep.mubr.msk.f32.mxu1 %vm433_vm0, %v951_v23 }
  0x8b   : > { %1620 = vmatprep.subr.bf16.mxu0 %v1733_v3  ;;  %1675 = vmatpush1.bf16.msra.mxu1 %v1834_v17  ;;  %v787_v17 = vld [vmem:[%s2142_s21 + $0x38] sm:$0xff] }
  0x8c   : > { %1676 = vmatprep.subr.bf16.mxu1 %v1733_v3 }
  0x8e   : > { %1622 = vmatpush1.bf16.msra.mxu0 %v2047_v26 }
  0x8f   : > { %1623 = vmatprep.subr.bf16.mxu0 %v1733_v3  ;;  %1678 = vmatpush1.bf16.msra.mxu1 %v1873_v28  ;;  %v786_v28 = vld [vmem:[%s2142_s21 + $0x30] sm:$0xff] }
  0x90   : > { %1679 = vmatprep.subr.bf16.mxu1 %v1733_v3 }
  0x92   : > { %1625 = vmatpush1.bf16.msra.mxu0 %v2067_v34 }
  0x93   : > { %1626 = vmatprep.subr.bf16.mxu0 %v1733_v3  ;;  %1681 = vmatpush1.bf16.msra.mxu1 %v1904_v37  ;;  %v949_v37 = vld [vmem:[%s2226_s23 + $0x8] sm:$0xff] }
  0x94   : > { %1682 = vmatprep.subr.bf16.mxu1 %v1733_v3 }
  0x96   : > { %1628 = vmatpush1.bf16.msra.mxu0 %v2079_v39 }
  0x97   : > { %1629 = vmatprep.subr.bf16.mxu0 %v1733_v3  ;;  %1684 = vmatpush1.bf16.msra.mxu1 %v1938_v46 }
  0x98   : > { %1685 = vmatprep.subr.bf16.mxu1 %v1733_v3 }
  0x9a   : > { %1631 = vmatpush1.bf16.msra.mxu0 %v2091_v43 }
  0x9b   : > { %1632 = vmatprep.subr.bf16.mxu0 %v1733_v3  ;;  %1687 = vmatpush1.bf16.msra.mxu1 %v1967_v56 }
  0x9c   : > { %1688 = vmatprep.subr.bf16.mxu1 %v1733_v3 }
  0x9e   : > { %1634 = vmatpush1.bf16.msra.mxu0 %v2103_v48 }
  0x9f   : > { %1635 = vmatprep.subr.bf16.mxu0 %v1733_v3  ;;  %1690 = vmatpush1.bf16.msra.mxu1 %v1997_v2 }
  0xa0   : > { %1691 = vmatprep.subr.bf16.mxu1 %v1733_v3 }
  0xa2   : > { %1637 = vmatpush1.bf16.msra.mxu0 %v2115_v52 }
  0xa3   : > { %929 = vmatprep.subr.mxu0 %v1734_v53  ;;  %1693 = vmatpush1.bf16.msra.mxu1 %v2019_v14 }
  0xa4   : > { %1694 = vmatprep.subr.bf16.mxu1 %v1733_v3 }
  0xa6   : > { %1243 = vmatpush1.msk.msra.mxu0 %vm440_vm1, %v2125_v54 }
  0xa7   : > { %934 = vmatmul.mubr.f32.vlgmr.msra.gmra.mrb[12].mxu0 %v782_v8  ;;  %1639 = vmatprep.subr.bf16.mxu0 %v1795_v4  ;;  %v950_v4 = vld [vmem:[%s2226_s23 + $0x10] sm:$0xff] }
  0xa8   : > { %1641 = vmatpush3.bf16.msra.mxu0 %v1808_v9  ;;  %1245 = vmatprep.mubr.msk.f32.mxu0 %vm433_vm0, %v787_v17  ;;  %v948_v9 = vld [vmem:[%s2226_s23] sm:$0xff] }
  0xa9   : > { %1643 = vmatprep.subr.bf16.mxu0 %v1821_v13  ;;  %1696 = vmatpush1.bf16.msra.mxu1 %v2034_v21  ;;  %v955_v13 = vld [vmem:[%s2226_s23 + $0x38] sm:$0xff] }
  0xaa   : > { %1697 = vmatprep.subr.bf16.mxu1 %v1733_v3 }
  0xab   : > { %939 = vmatmul.mubr.f32.gmra.mrb[14].mxu0 %v786_v28 }
  0xac   : > { %1645 = vmatpush3.bf16.msra.mxu0 %v1836_v18  ;;  %1026 = vmatprep.mubr.f32.mxu0 %v949_v37  ;;  %v953_v18 = vld [vmem:[%s2226_s23 + $0x28] sm:$0xff] }
  0xad   : > { %1647 = vmatprep.subr.bf16.mxu0 %v1849_v22  ;;  %1699 = vmatpush1.bf16.msra.mxu1 %v2047_v26  ;;  %v952_v22 = vld [vmem:[%s2226_s23 + $0x20] sm:$0xff] }
  0xae   : > { %1700 = vmatprep.subr.bf16.mxu1 %v1733_v3 }
  0xb0   : > { %1649 = vmatpush3.bf16.msra.mxu0 %v1875_v29 }
  0xb1   : > { %1651 = vmatprep.subr.bf16.mxu0 %v1882_v31  ;;  %1702 = vmatpush1.bf16.msra.mxu1 %v2067_v34 }
  0xb2   : > { %1703 = vmatprep.subr.bf16.mxu1 %v1733_v3 }
  0xb4   : > { %1653 = vmatpush3.bf16.msra.mxu0 %v1906_v38 }
  0xb5   : > { %1655 = vmatprep.subr.bf16.mxu0 %v1913_v40  ;;  %1705 = vmatpush1.bf16.msra.mxu1 %v2079_v39 }
  0xb6   : > { %1706 = vmatprep.subr.bf16.mxu1 %v1733_v3 }
  0xb8   : > { %1657 = vmatpush3.bf16.msra.mxu0 %v1940_v47 }
  0xb9   : > { %1659 = vmatprep.subr.bf16.mxu0 %v1948_v50  ;;  %1708 = vmatpush1.bf16.msra.mxu1 %v2091_v43  ;;  %v1239_v43 = vld [vmem:[%s2326_s6] ss:$0 sm:$0xff] }
  0xba   : > { %1709 = vmatprep.subr.bf16.mxu1 %v1733_v3 }
  0xbc   : > { %1661 = vmatpush3.bf16.msra.mxu0 %v1969_v57 }
  0xbd   : > { %1663 = vmatprep.subr.bf16.mxu0 %v1976_v59  ;;  %1711 = vmatpush1.bf16.msra.mxu1 %v2103_v48 }
  0xbe   : > { %1712 = vmatprep.subr.bf16.mxu1 %v1733_v3  ;;  %v954_v3 = vld [vmem:[%s2226_s23 + $0x30] sm:$0xff] }
  0xc0   : > { %1665 = vmatpush3.bf16.msra.mxu0 %v1999_v5 }
  0xc1   : > { %1667 = vmatprep.subr.bf16.mxu0 %v2006_v7  ;;  %1714 = vmatpush1.bf16.msra.mxu1 %v2115_v52 }
  0xc2   : > { %1097 = vmatprep.subr.mxu1 %v1734_v53 }
  0xc4   : > { %1669 = vmatpush3.bf16.msra.mxu0 %v2021_v15 }
  0xc5   : > { %1246 = vmatpush1.msk.msra.mxu1 %vm440_vm1, %v2125_v54 }
  0xc6   : > { %1102 = vmatmul.mubr.f32.vlgmr.msra.gmra.mrb[8].mxu1 %v950_v4 }
  0xc7   : > { %1027 = vmatmul.mubr.f32.vlgmr.msra.gmra.mrb[16].mxu0 %v948_v9  ;;  %1248 = vmatprep.mubr.msk.f32.mxu1 %vm433_vm0, %v955_v13 }
  0xc8   : > { %1031 = vmatprep.mubr.f32.mxu0 %v953_v18 }
  0xca   : > { %1107 = vmatmul.mubr.f32.gmra.mrb[10].mxu1 %v954_v3 }
  0xcb   : > { %1032 = vmatmul.mubr.f32.gmra.mrb[18].mxu0 %v952_v22 }
  0xfc   : > { %v1287_v29 = vpop.f32.mrb[0].mxu0 }
  0xfd   : > { %v1288_v31 = vpop.f32.mrb[1].mxu0 }
  0xfe   : > { %v1289_v38 = vadd.f32 %v1288_v31, %v1287_v29 }
 0x100   : > { %v1290_v40 = vpop.f32.mrb[2].mxu0 }
 0x101   : > { %v1291_v46 = vpop.f32.mrb[3].mxu0 }
 0x102   : > { %v1292_v47 = vadd.f32 %v1291_v46, %v1290_v40 }
 0x119   : > { %v585_v50 = vpop.f32.mrb[0].mxu1 }
 0x11a   : > { %v586_v56 = vadd.f32 %v1289_v38, %v585_v50  ;;  %v587_v57 = vpop.f32.mrb[1].mxu1 }
 0x11c   : > { %v1325_v59 = vpop.f32.mrb[4].mxu0  ;;  %v600_v39 = vmul.f32 %v1238_v35, %v586_v56 }
 0x11d   : > { %v1326_v2 = vpop.f32.mrb[5].mxu0  ;;  %v590_v5 = vpop.f32.mrb[2].mxu1 }
 0x11e   : > { %v1327_v7 = vadd.f32 %v1326_v2, %v1325_v59  ;;  %v591_v14 = vadd.f32 %v1292_v47, %v590_v5  ;;  %v592_v15 = vpop.f32.mrb[3].mxu1  ;;  %v608_v48 = vadd.f32 %v1239_v43, %v600_v39 }
 0x120   : > { %v1328_v21 = vpop.f32.mrb[6].mxu0  ;;  %v601_v49 = vmul.f32 %v1238_v35, %v591_v14 }
 0x121   : > { %v1329_v24 = vpop.f32.mrb[7].mxu0 }
 0x122   : > { %v1330_v25 = vadd.f32 %v1329_v24, %v1328_v21  ;;  %v609_v58 = vadd.f32 %v1239_v43, %v601_v49 }
 0x13c   : > { %v1363_v26 = vpop.f32.mrb[8].mxu0 }
 0x13d   : > { %v1364_v27 = vpop.f32.mrb[9].mxu0 }
 0x13e   : > { %v1365_v30 = vadd.f32 %v1364_v27, %v1363_v26 }
 0x140   : > { %v1366_v32 = vpop.f32.mrb[10].mxu0 }
 0x141   : > { %v1367_v33 = vpop.f32.mrb[11].mxu0 }
 0x142   : > { %v1368_v34 = vadd.f32 %v1367_v33, %v1366_v32 }
 0x158   : > { %v765_v36 = vpop.f32.mrb[4].mxu1 }
 0x159   : > { %v766_v41 = vadd.f32 %v1327_v7, %v765_v36  ;;  %v767_v42 = vpop.f32.mrb[5].mxu1 }
 0x15b   : > { %v774_v44 = vmul.f32 %v1238_v35, %v766_v41 }
 0x15c   : > { %v770_v45 = vpop.f32.mrb[6].mxu1 }
 0x15d   : > { %v776_v51 = vadd.f32 %v1239_v43, %v774_v44  ;;  %v771_v52 = vadd.f32 %v1330_v25, %v770_v45  ;;  %v772_v53 = vpop.f32.mrb[7].mxu1 }
 0x15f   : > { %v778_v54 = vmax.f32 %v608_v48, %v776_v51  ;;  %v775_v55 = vmul.f32 %v1238_v35, %v771_v52 }
 0x161   : > { %v777_v60 = vadd.f32 %v1239_v43, %v775_v55 }
 0x163   : > { %v779_v61 = vmax.f32 %v609_v58, %v777_v60 }
 0x17a   : > { %v935_v62 = vpop.f32.mrb[12].mxu0 }
 0x17b   : > { %v936_v63 = vadd.f32 %v1365_v30, %v935_v62  ;;  %v937_v0 = vpop.f32.mrb[13].mxu0 }
 0x17d   : > { %v944_v8 = vmul.f32 %v1238_v35, %v936_v63 }
 0x17e   : > { %v940_v1 = vpop.f32.mrb[14].mxu0 }
 0x17f   : > { %v941_v6 = vadd.f32 %v1368_v34, %v940_v1  ;;  %v942_v10 = vpop.f32.mrb[15].mxu0  ;;  %v946_v18 = vadd.f32 %v1239_v43, %v944_v8 }
 0x181   : > { %v945_v3 = vmul.f32 %v1238_v35, %v941_v6 }
 0x183   : > { %v947_v40 = vadd.f32 %v1239_v43, %v945_v3 }
 0x199   : > { %v1103_v11 = vpop.f32.mrb[8].mxu1 }
 0x19a   : > { %v1401_v12 = vpop.f32.mrb[16].mxu0  ;;  %v1105_v16 = vpop.f32.mrb[9].mxu1 }
 0x19b   : > { %v1402_v19 = vpop.f32.mrb[17].mxu0 }
 0x19c   : > { %v1403_v20 = vadd.f32 %v1402_v19, %v1401_v12 }
 0x19d   : > { %v1108_v23 = vpop.f32.mrb[10].mxu1 }
 0x19e   : > { %v1104_v17 = vadd.f32 %v1403_v20, %v1103_v11  ;;  %v1404_v28 = vpop.f32.mrb[18].mxu0  ;;  %v1110_v37 = vpop.f32.mrb[11].mxu1 }
 0x19f   : > { %v1405_v4 = vpop.f32.mrb[19].mxu0 }
 0x1a0   : > { %v1112_v9 = vmul.f32 %v1238_v35, %v1104_v17  ;;  %v1406_v13 = vadd.f32 %v1405_v4, %v1404_v28 }
 0x1a2   : > { %v1114_v22 = vadd.f32 %v1239_v43, %v1112_v9  ;;  %v1109_v29 = vadd.f32 %v1406_v13, %v1108_v23 }
 0x1a4   : > { %v1116_v31 = vmax.f32 %v946_v18, %v1114_v22  ;;  %v1113_v38 = vmul.f32 %v1238_v35, %v1109_v29 }
 0x1a6   : > { %v1118_v46 = vmax.f32 %v778_v54, %v1116_v31  ;;  %v1115_v47 = vadd.f32 %v1239_v43, %v1113_v38 }
 0x1a8   : > { %v1120_v50 = vmax.f32 %v1118_v46, 0.0  ;;  %v1117_v56 = vmax.f32 %v947_v40, %v1115_v47 }
 0x1aa   : > { %1122 = vst [vmem:[%s358_s8] sm:$0xff] %v1120_v50  ;;  %v1119_v57 = vmax.f32 %v779_v61, %v1117_v56 }
 0x1ac   : > { %v1121_v59 = vmax.f32 %v1119_v57, 0.0 }
 0x1ae   : > { %1123 = vst [vmem:[%s358_s8 + $0x8] sm:$0xff] %v1121_v59 }
 0x1af PF: > { %s17_s24 = sadd.s32 1, %s1731_s24  }
 0x1b0   : > { %p14_p4 = scmp.ge.s32.totalorder %s17_s24, 4  }
 0x1b2   :  { %16 = sbr.rel (!%p14_p4) target bundleno = 1 (0x1), region = 87 }

// kernel: backbone2_forward.7
= control target key start
LH: loop header
LB: loop body
LE: loop exit
PB: predicated region body
PF: predicated region fallthrough
CT: control target
= control target key end

     0   :  { %v426_v47 = vmov 1983009808   ;;  %v92_v49 = vlaneseq  ;;  %s658_s0 = inlined_call_operand.vmem [shape: f32[2,512], index: 0, kind: input, shape index: {}]   ;;  %s659_s1 = inlined_call_operand.vmem [shape: f32[512,128], index: 1, kind: input, shape index: {}]   ;;  %s660_s2 = inlined_call_operand.vmem [shape: f32[1,128], index: 2, kind: input, shape index: {}]   ;;  %s661_s3 = inlined_call_operand.hbm [shape: f32[2,128], index: 3, kind: output, shape index: {}]  }
   0x1   :  { %v32_v0 = vld [vmem:[%s659_s1 + $0x80] sm:$0xff]  ;;  %v33_v1 = vld [vmem:[%s659_s1 + $0x88] sm:$0xff]  ;;  %v34_v11 = vld [vmem:[%s659_s1 + $0x90] sm:$0xff]  ;;  %v90_v48 = vunpack.c.l.s4 %v426_v47 }
   0x2   :  { %v16_v2 = vld [vmem:[%s659_s1] sm:$0xff]  ;;  %v335_v3 = vpack.c.bf16 %v33_v1, %v32_v0  ;;  %v17_v4 = vld [vmem:[%s659_s1 + $0x8] sm:$0xff]  ;;  %v35_v13 = vld [vmem:[%s659_s1 + $0x98] sm:$0xff]  ;;  %v93_v0 = vshrl.u32 %v92_v49, 7 }
   0x3   :  { %v64_v5 = vld [vmem:[%s659_s1 + $0x180] sm:$0xff]  ;;  %v65_v6 = vld [vmem:[%s659_s1 + $0x188] sm:$0xff]  ;;  %v337_v7 = vpack.c.bf16 %v17_v4, %v16_v2  ;;  %v18_v14 = vld [vmem:[%s659_s1 + $0x10] sm:$0xff]  ;;  %v339_v16 = vpack.c.bf16 %v35_v13, %v34_v11  ;;  %v91_v63 = vunpack.c.0.s8 %v90_v48 }
   0x4   :  { %v367_v8 = vpack.c.bf16 %v65_v6, %v64_v5  ;;  %v48_v9 = vld [vmem:[%s659_s1 + $0x100] sm:$0xff]  ;;  %v49_v10 = vld [vmem:[%s659_s1 + $0x108] sm:$0xff]  ;;  %336 = vmatprep.subr.bf16.mxu0 %v335_v3  ;;  %v19_v15 = vld [vmem:[%s659_s1 + $0x18] sm:$0xff] }
   0x5   :  { %v369_v12 = vpack.c.bf16 %v49_v10, %v48_v9  ;;  %338 = vmatpush3.bf16.msra.mxu0 %v337_v7  ;;  %v341_v17 = vpack.c.bf16 %v19_v15, %v18_v14  ;;  %v66_v18 = vld [vmem:[%s659_s1 + $0x190] sm:$0xff]  ;;  %v67_v19 = vld [vmem:[%s659_s1 + $0x198] sm:$0xff]  ;;  %v36_v23 = vld [vmem:[%s659_s1 + $0xa0] sm:$0xff]  ;;  %v94_v13 = vsub.s32 %v91_v63, %v93_v0 }
   0x6   :  { %368 = vmatprep.subr.bf16.mxu1 %v367_v8  ;;  %v50_v20 = vld [vmem:[%s659_s1 + $0x110] sm:$0xff]  ;;  %v371_v21 = vpack.c.bf16 %v67_v19, %v66_v18  ;;  %v51_v22 = vld [vmem:[%s659_s1 + $0x118] sm:$0xff]  ;;  %v37_v24 = vld [vmem:[%s659_s1 + $0xa8] sm:$0xff]  ;;  %340 = vmatprep.subr.bf16.mxu0 %v339_v16 }
   0x7   :  { %370 = vmatpush3.bf16.msra.mxu1 %v369_v12  ;;  %v373_v25 = vpack.c.bf16 %v51_v22, %v50_v20  ;;  %v343_v26 = vpack.c.bf16 %v37_v24, %v36_v23  ;;  %v20_v27 = vld [vmem:[%s659_s1 + $0x20] sm:$0xff]  ;;  %v21_v28 = vld [vmem:[%s659_s1 + $0x28] sm:$0xff]  ;;  %v38_v35 = vld [vmem:[%s659_s1 + $0xb0] sm:$0xff] }
   0x8   :  { %v68_v29 = vld [vmem:[%s659_s1 + $0x1a0] sm:$0xff]  ;;  %372 = vmatprep.subr.bf16.mxu1 %v371_v21  ;;  %v69_v30 = vld [vmem:[%s659_s1 + $0x1a8] sm:$0xff]  ;;  %v345_v33 = vpack.c.bf16 %v21_v28, %v20_v27  ;;  %v39_v36 = vld [vmem:[%s659_s1 + $0xb8] sm:$0xff] }
   0x9   :  { %v52_v31 = vld [vmem:[%s659_s1 + $0x120] sm:$0xff]  ;;  %v53_v32 = vld [vmem:[%s659_s1 + $0x128] sm:$0xff]  ;;  %342 = vmatpush3.bf16.msra.mxu0 %v341_v17  ;;  %v375_v34 = vpack.c.bf16 %v69_v30, %v68_v29  ;;  %v22_v37 = vld [vmem:[%s659_s1 + $0x30] sm:$0xff]  ;;  %v347_v39 = vpack.c.bf16 %v39_v36, %v38_v35 }
   0xa   :  { %344 = vmatprep.subr.bf16.mxu0 %v343_v26  ;;  %v377_v38 = vpack.c.bf16 %v53_v32, %v52_v31  ;;  %v23_v40 = vld [vmem:[%s659_s1 + $0x38] sm:$0xff]  ;;  %v70_v41 = vld [vmem:[%s659_s1 + $0x1b0] sm:$0xff]  ;;  %v40_v46 = vld [vmem:[%s659_s1 + $0xc0] sm:$0xff] }
   0xb   :  { %374 = vmatpush3.bf16.msra.mxu1 %v373_v25  ;;  %v71_v42 = vld [vmem:[%s659_s1 + $0x1b8] sm:$0xff]  ;;  %v54_v44 = vld [vmem:[%s659_s1 + $0x130] sm:$0xff]  ;;  %v41_v50 = vld [vmem:[%s659_s1 + $0xc8] sm:$0xff]  ;;  %v349_v51 = vpack.c.bf16 %v23_v40, %v22_v37 }
   0xc   :  { %376 = vmatprep.subr.bf16.mxu1 %v375_v34  ;;  %v379_v43 = vpack.c.bf16 %v71_v42, %v70_v41  ;;  %v55_v45 = vld [vmem:[%s659_s1 + $0x138] sm:$0xff]  ;;  %v72_v52 = vld [vmem:[%s659_s1 + $0x1c0] sm:$0xff]  ;;  %v73_v53 = vld [vmem:[%s659_s1 + $0x1c8] sm:$0xff]  ;;  %v351_v55 = vpack.c.bf16 %v41_v50, %v40_v46 }
   0xd   :  { %346 = vmatpush3.bf16.msra.mxu0 %v345_v33  ;;  %v381_v54 = vpack.c.bf16 %v55_v45, %v54_v44  ;;  %v24_v56 = vld [vmem:[%s659_s1 + $0x40] sm:$0xff]  ;;  %v25_v57 = vld [vmem:[%s659_s1 + $0x48] sm:$0xff]  ;;  %v383_v59 = vpack.c.bf16 %v73_v53, %v72_v52  ;;  %v42_v61 = vld [vmem:[%s659_s1 + $0xd0] sm:$0xff] }
   0xe   :  { %348 = vmatprep.subr.bf16.mxu0 %v347_v39  ;;  %v56_v58 = vld [vmem:[%s659_s1 + $0x140] sm:$0xff]  ;;  %v57_v60 = vld [vmem:[%s659_s1 + $0x148] sm:$0xff]  ;;  %v43_v62 = vld [vmem:[%s659_s1 + $0xd8] sm:$0xff]  ;;  %v353_v3 = vpack.c.bf16 %v25_v57, %v24_v56 }
   0xf   :  { %378 = vmatpush3.bf16.msra.mxu1 %v377_v38  ;;  %v74_v1 = vld [vmem:[%s659_s1 + $0x1d0] sm:$0xff]  ;;  %v75_v2 = vld [vmem:[%s659_s1 + $0x1d8] sm:$0xff]  ;;  %v385_v4 = vpack.c.bf16 %v57_v60, %v56_v58  ;;  %v355_v5 = vpack.c.bf16 %v43_v62, %v42_v61  ;;  %v44_v11 = vld [vmem:[%s659_s1 + $0xe0] sm:$0xff] }
  0x10   :  { %380 = vmatprep.subr.bf16.mxu1 %v379_v43  ;;  %v26_v6 = vld [vmem:[%s659_s1 + $0x50] sm:$0xff]  ;;  %v27_v7 = vld [vmem:[%s659_s1 + $0x58] sm:$0xff]  ;;  %v387_v9 = vpack.c.bf16 %v75_v2, %v74_v1  ;;  %v45_v12 = vld [vmem:[%s659_s1 + $0xe8] sm:$0xff] }
  0x11   :  { %350 = vmatpush3.bf16.msra.mxu0 %v349_v51  ;;  %v58_v8 = vld [vmem:[%s659_s1 + $0x150] sm:$0xff]  ;;  %v59_v10 = vld [vmem:[%s659_s1 + $0x158] sm:$0xff]  ;;  %v76_v14 = vld [vmem:[%s659_s1 + $0x1e0] sm:$0xff]  ;;  %v357_v16 = vpack.c.bf16 %v27_v7, %v26_v6  ;;  %v359_v20 = vpack.c.bf16 %v45_v12, %v44_v11 }
  0x12   :  { %352 = vmatprep.subr.bf16.mxu0 %v351_v55  ;;  %v77_v15 = vld [vmem:[%s659_s1 + $0x1e8] sm:$0xff]  ;;  %v28_v17 = vld [vmem:[%s659_s1 + $0x60] sm:$0xff]  ;;  %v389_v19 = vpack.c.bf16 %v59_v10, %v58_v8 }
  0x13   :  { %382 = vmatpush3.bf16.msra.mxu1 %v381_v54  ;;  %v29_v18 = vld [vmem:[%s659_s1 + $0x68] sm:$0xff]  ;;  %v60_v21 = vld [vmem:[%s659_s1 + $0x160] sm:$0xff] }
  0x14   :  { %384 = vmatprep.subr.bf16.mxu1 %v383_v59  ;;  %v15_v22 = vld [vmem:[%s658_s0] sm:$0xff] }
  0x15   :  { %354 = vmatpush3.bf16.msra.mxu0 %v353_v3 }
  0x16   :  { %356 = vmatprep.subr.bf16.mxu0 %v355_v5 }
  0x17   :  { %386 = vmatpush3.bf16.msra.mxu1 %v385_v4 }
  0x18   :  { %8 = vsyncpa [#allocation3], 0  ;;  %388 = vmatprep.subr.bf16.mxu1 %v387_v9  ;;  %v391_v23 = vpack.c.bf16 %v77_v15, %v76_v14  ;;  %v61_v24 = vld [vmem:[%s659_s1 + $0x168] sm:$0xff]  ;;  %v46_v25 = vld [vmem:[%s659_s1 + $0xf0] sm:$0xff]  ;;  %v95_v27 = vrot.slane %v15_v22, %v94_v13  ;;  %v88_v28 = vcombine.high %v15_v22, %v15_v22  ;;  %v361_v31 = vpack.c.bf16 %v29_v18, %v28_v17 }
  0x19   :  { %v47_v26 = vld [vmem:[%s659_s1 + $0xf8] sm:$0xff]  ;;  %v78_v29 = vld [vmem:[%s659_s1 + $0x1f0] sm:$0xff]  ;;  %358 = vmatpush3.bf16.msra.mxu0 %v357_v16  ;;  %v393_v34 = vpack.c.bf16 %v61_v24, %v60_v21  ;;  %v264_v45 = vld [vmem:[%s660_s2] ss:$0 sm:$0xff] }
  0x1a   :  { %v79_v30 = vld [vmem:[%s659_s1 + $0x1f8] sm:$0xff]  ;;  %v103_v32 = vcombine.high %v95_v27, %v95_v27  ;;  %v102_v33 = vrot.slane %v88_v28, %v94_v13  ;;  %360 = vmatprep.subr.bf16.mxu0 %v359_v20  ;;  %v363_v35 = vpack.c.bf16 %v47_v26, %v46_v25  ;;  %v30_v36 = vld [vmem:[%s659_s1 + $0x70] sm:$0xff] }
  0x1b   :  { %390 = vmatpush3.bf16.msra.mxu1 %v389_v19  ;;  %v31_v37 = vld [vmem:[%s659_s1 + $0x78] sm:$0xff]  ;;  %v395_v38 = vpack.c.bf16 %v79_v30, %v78_v29  ;;  %v62_v39 = vld [vmem:[%s659_s1 + $0x170] sm:$0xff] }
  0x1c   :  { %392 = vmatprep.subr.bf16.mxu1 %v391_v23  ;;  %v63_v40 = vld [vmem:[%s659_s1 + $0x178] sm:$0xff]  ;;  %173 = vmatprep.mubr.f32.mxu0 %v103_v32  ;;  %v104_v41 = vcombine.high %v102_v33, %v102_v33  ;;  %v365_v42 = vpack.c.bf16 %v31_v37, %v30_v36  ;;  %s427_s1 = smov [#allocation2]  }
  0x1d   :  { %362 = vmatpush3.bf16.msra.mxu0 %v361_v31  ;;  %v397_v43 = vpack.c.bf16 %v63_v40, %v62_v39  ;;  %s256_s8 = sshll.u32 %s427_s1, 4  ;;  %s257_s8 = int_to_ptr.vmem [resolvable:$true] %s256_s8 }
  0x1e   :  { %243 = vmatprep.mubr.f32.mxu1 %v104_v41  ;;  %364 = vmatprep.subr.bf16.mxu0 %v363_v35  ;;  %s402_s9 = scalar_lea.vmem %s257_s8, 32  ;;  %p407_p1 = scmp.lt.s32.totalorder %s257_s8, %s257_s8 }
  0x1f   :  { %394 = vmatpush3.bf16.msra.mxu1 %v393_v34  ;;  %p403_p0 = scmp.ne.s32.totalorder %s257_s8, %s402_s9  ;;  %p408_p2 = scmp.lt.s32.totalorder %s402_s9, %s402_s9 }
  0x20   :  { %396 = vmatprep.subr.bf16.mxu1 %v395_v38 }
  0x21   :  { %366 = vmatpush3.bf16.msra.mxu0 %v365_v42  ;;  %p409_p3 = por %p408_p2, %p407_p1 }
  0x23   :  { %398 = vmatpush3.bf16.msra.mxu1 %v397_v43  ;;  %p410_p4 = pnand %p409_p3, %p403_p0 }
  0x24   :  { %174 = vmatmul.mubr.f32.vlgmr.msra.gmra.mrb[0].mxu0 %v95_v27 }
  0x26   :  { %244 = vmatmul.mubr.f32.vlgmr.msra.gmra.mrb[0].mxu1 %v102_v33 }
  0xf7   :  { %v297_v44 = vpop.f32.mrb[0].mxu0 }
  0xf8   :  { %v298_v46 = vpop.f32.mrb[1].mxu0 }
  0xf9   :  { %v332_v47 = vpop.f32.mrb[0].mxu1  ;;  %v299_v48 = vadd.f32 %v298_v46, %v297_v44 }
  0xfa   :  { %v333_v49 = vpop.f32.mrb[1].mxu1 }
  0xfb   :  { %v334_v50 = vadd.f32 %v333_v49, %v332_v47  ;;  %v176_v51 = vadd.f32 %v299_v48, %v264_v45 }
  0xfd   :  { %v246_v52 = vadd.f32 %v334_v50, %v176_v51 }
  0xff   :  { %249 = vst [vmem:[#allocation2] sm:$0x3] %v246_v52 }
 0x100   :  { %413 = shalt.err (!%p410_p4)
}
 0x101   :  { %s414_s11 = scalar_lea.hbm %s661_s3, 32 }
 0x102   :  { %p415_p5 = scmp.ne.s32.totalorder %s661_s3, %s414_s11  ;;  %p418_p6 = scmp.lt.u32.totalorder %s414_s11, %s661_s3 }
 0x104   :  { %p420_p7 = pnand %p418_p6, %p415_p5 }
 0x106   :  { %423 = shalt.err (!%p420_p7)
}
 0x107   :  { %259 = dma.vmem_to_hbm [thread:$0]  %s257_s8, 32, %s661_s3, [#allocation3]  }
 0x108   :  { %424 = dma.done.wait [#allocation3], 32  }
 0x109   :  { %425 = vsyncadd [#allocation3], 4294967264 }
 0x10a   :  { %263 = vsyncpa [#allocation3], 1 }

// kernel: backbone2_forward.6
= control target key start
LH: loop header
LB: loop body
LE: loop exit
PB: predicated region body
PF: predicated region fallthrough
CT: control target
= control target key end

     0   :  { %vm479_vm0 = vcmask 261120   ;;  %s2780_s1 = inlined_call_operand.vmem [shape: f32[800,512], index: 1, kind: input, shape index: {}]   ;;  %s2781_s0 = inlined_call_operand.vmem [shape: f32[2,800], index: 0, kind: input, shape index: {}]   ;;  %s2782_s2 = inlined_call_operand.vmem [shape: f32[1,512], index: 2, kind: input, shape index: {}]   ;;  %s2783_s3 = inlined_call_operand.vmem [shape: f32[2,512], index: 3, kind: output, shape index: {}]  }
   0x1   :  { %v17_v0 = vld [vmem:[%s2780_s1 + $0x8] sm:$0xff]  ;;  %v19_v2 = vld [vmem:[%s2780_s1 + $0x18] sm:$0xff]  ;;  %v16_v5 = vld [vmem:[%s2780_s1] sm:$0xff] }
   0x2   :  { %v21_v1 = vld [vmem:[%s2780_s1 + $0x28] sm:$0xff]  ;;  %v23_v4 = vld [vmem:[%s2780_s1 + $0x38] sm:$0xff]  ;;  %v20_v6 = vld [vmem:[%s2780_s1 + $0x20] sm:$0xff] }
   0x3   :  { %v1083_v3 = vpack.c.bf16 %v21_v1, %v17_v0  ;;  %v1283_v7 = vpack.c.bf16 %v23_v4, %v19_v2  ;;  %v1085_v8 = vpack.c.bf16 %v20_v6, %v16_v5  ;;  %v18_v9 = vld [vmem:[%s2780_s1 + $0x10] sm:$0xff]  ;;  %v25_v11 = vld [vmem:[%s2780_s1 + $0x48] sm:$0xff]  ;;  %v27_v14 = vld [vmem:[%s2780_s1 + $0x58] sm:$0xff] }
   0x4   :  { %v22_v10 = vld [vmem:[%s2780_s1 + $0x30] sm:$0xff]  ;;  %v29_v13 = vld [vmem:[%s2780_s1 + $0x68] sm:$0xff]  ;;  %v31_v15 = vld [vmem:[%s2780_s1 + $0x78] sm:$0xff] }
   0x5   :  { %1084 = vmatprep.subr.bf16.mxu0 %v1083_v3  ;;  %v1285_v12 = vpack.c.bf16 %v22_v10, %v18_v9  ;;  %1284 = vmatprep.subr.bf16.mxu1 %v1283_v7  ;;  %v1087_v16 = vpack.c.bf16 %v29_v13, %v25_v11  ;;  %v1287_v17 = vpack.c.bf16 %v31_v15, %v27_v14  ;;  %v24_v18 = vld [vmem:[%s2780_s1 + $0x40] sm:$0xff]  ;;  %v26_v20 = vld [vmem:[%s2780_s1 + $0x50] sm:$0xff]  ;;  %v33_v23 = vld [vmem:[%s2780_s1 + $0x88] sm:$0xff] }
   0x6   :  { %1086 = vmatpush1.bf16.msra.mxu0 %v1085_v8  ;;  %v28_v19 = vld [vmem:[%s2780_s1 + $0x60] sm:$0xff]  ;;  %v30_v22 = vld [vmem:[%s2780_s1 + $0x70] sm:$0xff]  ;;  %v37_v24 = vld [vmem:[%s2780_s1 + $0xa8] sm:$0xff] }
   0x7   :  { %1286 = vmatpush1.bf16.msra.mxu1 %v1285_v12  ;;  %v1089_v21 = vpack.c.bf16 %v28_v19, %v24_v18  ;;  %1088 = vmatprep.subr.bf16.mxu0 %v1087_v16  ;;  %v1289_v25 = vpack.c.bf16 %v30_v22, %v26_v20  ;;  %v1091_v26 = vpack.c.bf16 %v37_v24, %v33_v23  ;;  %v35_v27 = vld [vmem:[%s2780_s1 + $0x98] sm:$0xff]  ;;  %v32_v29 = vld [vmem:[%s2780_s1 + $0x80] sm:$0xff]  ;;  %v34_v32 = vld [vmem:[%s2780_s1 + $0x90] sm:$0xff] }
   0x8   :  { %1288 = vmatprep.subr.bf16.mxu1 %v1287_v17  ;;  %v39_v28 = vld [vmem:[%s2780_s1 + $0xb8] sm:$0xff]  ;;  %v36_v31 = vld [vmem:[%s2780_s1 + $0xa0] sm:$0xff]  ;;  %v38_v33 = vld [vmem:[%s2780_s1 + $0xb0] sm:$0xff] }
   0x9   :  { %v1291_v30 = vpack.c.bf16 %v39_v28, %v35_v27  ;;  %v1093_v34 = vpack.c.bf16 %v36_v31, %v32_v29  ;;  %v41_v35 = vld [vmem:[%s2780_s1 + $0xc8] sm:$0xff]  ;;  %v43_v37 = vld [vmem:[%s2780_s1 + $0xd8] sm:$0xff]  ;;  %v1293_v38 = vpack.c.bf16 %v38_v33, %v34_v32  ;;  %v40_v41 = vld [vmem:[%s2780_s1 + $0xc0] sm:$0xff] }
   0xa   :  { %1090 = vmatpush1.bf16.msra.mxu0 %v1089_v21  ;;  %v45_v36 = vld [vmem:[%s2780_s1 + $0xe8] sm:$0xff]  ;;  %v47_v40 = vld [vmem:[%s2780_s1 + $0xf8] sm:$0xff]  ;;  %v44_v42 = vld [vmem:[%s2780_s1 + $0xe0] sm:$0xff] }
   0xb   :  { %1290 = vmatpush1.bf16.msra.mxu1 %v1289_v25  ;;  %1092 = vmatprep.subr.bf16.mxu0 %v1091_v26  ;;  %v1095_v39 = vpack.c.bf16 %v45_v36, %v41_v35  ;;  %v1295_v43 = vpack.c.bf16 %v47_v40, %v43_v37  ;;  %v42_v44 = vld [vmem:[%s2780_s1 + $0xd0] sm:$0xff]  ;;  %v49_v46 = vld [vmem:[%s2780_s1 + $0x108] sm:$0xff]  ;;  %v51_v48 = vld [vmem:[%s2780_s1 + $0x118] sm:$0xff]  ;;  %v1097_v50 = vpack.c.bf16 %v44_v42, %v40_v41 }
   0xc   :  { %1292 = vmatprep.subr.bf16.mxu1 %v1291_v30  ;;  %v46_v45 = vld [vmem:[%s2780_s1 + $0xf0] sm:$0xff]  ;;  %v53_v47 = vld [vmem:[%s2780_s1 + $0x128] sm:$0xff]  ;;  %v55_v49 = vld [vmem:[%s2780_s1 + $0x138] sm:$0xff] }
   0xd   :  { %v1297_v51 = vpack.c.bf16 %v46_v45, %v42_v44  ;;  %v1099_v52 = vpack.c.bf16 %v53_v47, %v49_v46  ;;  %v48_v53 = vld [vmem:[%s2780_s1 + $0x100] sm:$0xff]  ;;  %v50_v55 = vld [vmem:[%s2780_s1 + $0x110] sm:$0xff]  ;;  %v1299_v56 = vpack.c.bf16 %v55_v49, %v51_v48  ;;  %v57_v58 = vld [vmem:[%s2780_s1 + $0x148] sm:$0xff]  ;;  %v418_v46 = vlaneseq }
   0xe   :  { %1094 = vmatpush1.bf16.msra.mxu0 %v1093_v34  ;;  %v52_v54 = vld [vmem:[%s2780_s1 + $0x120] sm:$0xff]  ;;  %v54_v57 = vld [vmem:[%s2780_s1 + $0x130] sm:$0xff]  ;;  %v61_v59 = vld [vmem:[%s2780_s1 + $0x168] sm:$0xff]  ;;  %v1503_v47 = vmov 1983009808  }
   0xf   :  { %1294 = vmatpush1.bf16.msra.mxu1 %v1293_v38  ;;  %1096 = vmatprep.subr.bf16.mxu0 %v1095_v39  ;;  %v59_v60 = vld [vmem:[%s2780_s1 + $0x158] sm:$0xff]  ;;  %v1101_v62 = vpack.c.bf16 %v52_v54, %v48_v53  ;;  %v1301_v63 = vpack.c.bf16 %v54_v57, %v50_v55  ;;  %v1103_v0 = vpack.c.bf16 %v61_v59, %v57_v58  ;;  %v56_v1 = vld [vmem:[%s2780_s1 + $0x140] sm:$0xff]  ;;  %v58_v3 = vld [vmem:[%s2780_s1 + $0x150] sm:$0xff]  ;;  %v442_v48 = vunpack.c.l.s4 %v1503_v47 }
  0x10   :  { %1296 = vmatprep.subr.bf16.mxu1 %v1295_v43  ;;  %v63_v61 = vld [vmem:[%s2780_s1 + $0x178] sm:$0xff]  ;;  %v60_v2 = vld [vmem:[%s2780_s1 + $0x160] sm:$0xff]  ;;  %v62_v5 = vld [vmem:[%s2780_s1 + $0x170] sm:$0xff] }
  0x11   :  { %v1303_v4 = vpack.c.bf16 %v63_v61, %v59_v60  ;;  %v65_v6 = vld [vmem:[%s2780_s1 + $0x188] sm:$0xff]  ;;  %v67_v8 = vld [vmem:[%s2780_s1 + $0x198] sm:$0xff]  ;;  %v1105_v10 = vpack.c.bf16 %v60_v2, %v56_v1  ;;  %v1305_v11 = vpack.c.bf16 %v62_v5, %v58_v3  ;;  %v64_v13 = vld [vmem:[%s2780_s1 + $0x180] sm:$0xff]  ;;  %v1777_v61 = vshrl.u32 %v418_v46, 7 }
  0x12   :  { %1098 = vmatpush1.bf16.msra.mxu0 %v1097_v50  ;;  %v69_v7 = vld [vmem:[%s2780_s1 + $0x1a8] sm:$0xff]  ;;  %v71_v9 = vld [vmem:[%s2780_s1 + $0x1b8] sm:$0xff]  ;;  %v68_v14 = vld [vmem:[%s2780_s1 + $0x1a0] sm:$0xff] }
  0x13   :  { %1298 = vmatpush1.bf16.msra.mxu1 %v1297_v51  ;;  %1100 = vmatprep.subr.bf16.mxu0 %v1099_v52  ;;  %v1107_v12 = vpack.c.bf16 %v69_v7, %v65_v6  ;;  %v66_v15 = vld [vmem:[%s2780_s1 + $0x190] sm:$0xff]  ;;  %v1307_v16 = vpack.c.bf16 %v71_v9, %v67_v8  ;;  %v73_v18 = vld [vmem:[%s2780_s1 + $0x1c8] sm:$0xff]  ;;  %v75_v20 = vld [vmem:[%s2780_s1 + $0x1d8] sm:$0xff]  ;;  %v1109_v22 = vpack.c.bf16 %v68_v14, %v64_v13 }
  0x14   :  { %1300 = vmatprep.subr.bf16.mxu1 %v1299_v56  ;;  %v70_v17 = vld [vmem:[%s2780_s1 + $0x1b0] sm:$0xff]  ;;  %v77_v19 = vld [vmem:[%s2780_s1 + $0x1e8] sm:$0xff]  ;;  %v79_v21 = vld [vmem:[%s2780_s1 + $0x1f8] sm:$0xff] }
  0x15   :  { %v1309_v23 = vpack.c.bf16 %v70_v17, %v66_v15  ;;  %v1111_v24 = vpack.c.bf16 %v77_v19, %v73_v18  ;;  %v72_v25 = vld [vmem:[%s2780_s1 + $0x1c0] sm:$0xff]  ;;  %v74_v27 = vld [vmem:[%s2780_s1 + $0x1d0] sm:$0xff]  ;;  %v1311_v28 = vpack.c.bf16 %v79_v21, %v75_v20  ;;  %v81_v30 = vld [vmem:[%s2780_s1 + $0x208] sm:$0xff] }
  0x16   :  { %1102 = vmatpush1.bf16.msra.mxu0 %v1101_v62  ;;  %v76_v26 = vld [vmem:[%s2780_s1 + $0x1e0] sm:$0xff]  ;;  %v78_v29 = vld [vmem:[%s2780_s1 + $0x1f0] sm:$0xff]  ;;  %v85_v31 = vld [vmem:[%s2780_s1 + $0x228] sm:$0xff]  ;;  %v443_v62 = vunpack.c.0.s8 %v442_v48 }
  0x17   :  { %1302 = vmatpush1.bf16.msra.mxu1 %v1301_v63  ;;  %1104 = vmatprep.subr.bf16.mxu0 %v1103_v0  ;;  %v83_v32 = vld [vmem:[%s2780_s1 + $0x218] sm:$0xff]  ;;  %v1113_v34 = vpack.c.bf16 %v76_v26, %v72_v25  ;;  %v1313_v35 = vpack.c.bf16 %v78_v29, %v74_v27  ;;  %v1115_v36 = vpack.c.bf16 %v85_v31, %v81_v30  ;;  %v80_v37 = vld [vmem:[%s2780_s1 + $0x200] sm:$0xff]  ;;  %v82_v39 = vld [vmem:[%s2780_s1 + $0x210] sm:$0xff] }
  0x18   :  { %1304 = vmatprep.subr.bf16.mxu1 %v1303_v4  ;;  %v87_v33 = vld [vmem:[%s2780_s1 + $0x238] sm:$0xff]  ;;  %v84_v38 = vld [vmem:[%s2780_s1 + $0x220] sm:$0xff]  ;;  %v86_v41 = vld [vmem:[%s2780_s1 + $0x230] sm:$0xff] }
  0x19   :  { %v1315_v40 = vpack.c.bf16 %v87_v33, %v83_v32  ;;  %v89_v42 = vld [vmem:[%s2780_s1 + $0x248] sm:$0xff]  ;;  %v91_v44 = vld [vmem:[%s2780_s1 + $0x258] sm:$0xff]  ;;  %v1117_v49 = vpack.c.bf16 %v84_v38, %v80_v37  ;;  %v1317_v50 = vpack.c.bf16 %v86_v41, %v82_v39  ;;  %v88_v52 = vld [vmem:[%s2780_s1 + $0x240] sm:$0xff] }
  0x1a   :  { %1106 = vmatpush1.bf16.msra.mxu0 %v1105_v10  ;;  %v93_v43 = vld [vmem:[%s2780_s1 + $0x268] sm:$0xff]  ;;  %v95_v45 = vld [vmem:[%s2780_s1 + $0x278] sm:$0xff]  ;;  %v92_v53 = vld [vmem:[%s2780_s1 + $0x260] sm:$0xff] }
  0x1b   :  { %1306 = vmatpush1.bf16.msra.mxu1 %v1305_v11  ;;  %1108 = vmatprep.subr.bf16.mxu0 %v1107_v12  ;;  %v1119_v51 = vpack.c.bf16 %v93_v43, %v89_v42  ;;  %v90_v54 = vld [vmem:[%s2780_s1 + $0x250] sm:$0xff]  ;;  %v1319_v55 = vpack.c.bf16 %v95_v45, %v91_v44  ;;  %v97_v57 = vld [vmem:[%s2780_s1 + $0x288] sm:$0xff]  ;;  %v99_v59 = vld [vmem:[%s2780_s1 + $0x298] sm:$0xff]  ;;  %v1121_v63 = vpack.c.bf16 %v92_v53, %v88_v52 }
  0x1c   :  { %1308 = vmatprep.subr.bf16.mxu1 %v1307_v16  ;;  %v94_v56 = vld [vmem:[%s2780_s1 + $0x270] sm:$0xff]  ;;  %v101_v58 = vld [vmem:[%s2780_s1 + $0x2a8] sm:$0xff]  ;;  %v103_v60 = vld [vmem:[%s2780_s1 + $0x2b8] sm:$0xff]  ;;  %v1804_v11 = vsub.s32 %v443_v62, %v1777_v61 }
  0x1d   :  { %v1321_v0 = vpack.c.bf16 %v94_v56, %v90_v54  ;;  %v1123_v1 = vpack.c.bf16 %v101_v58, %v97_v57  ;;  %v96_v2 = vld [vmem:[%s2780_s1 + $0x280] sm:$0xff]  ;;  %v98_v4 = vld [vmem:[%s2780_s1 + $0x290] sm:$0xff]  ;;  %v1323_v5 = vpack.c.bf16 %v103_v60, %v99_v59  ;;  %v105_v7 = vld [vmem:[%s2780_s1 + $0x2c8] sm:$0xff] }
  0x1e   :  { %1110 = vmatpush1.bf16.msra.mxu0 %v1109_v22  ;;  %v100_v3 = vld [vmem:[%s2780_s1 + $0x2a0] sm:$0xff]  ;;  %v102_v6 = vld [vmem:[%s2780_s1 + $0x2b0] sm:$0xff]  ;;  %v109_v8 = vld [vmem:[%s2780_s1 + $0x2e8] sm:$0xff] }
  0x1f   :  { %1310 = vmatpush1.bf16.msra.mxu1 %v1309_v23  ;;  %1112 = vmatprep.subr.bf16.mxu0 %v1111_v24  ;;  %v107_v9 = vld [vmem:[%s2780_s1 + $0x2d8] sm:$0xff]  ;;  %v1125_v12 = vpack.c.bf16 %v100_v3, %v96_v2  ;;  %v104_v13 = vld [vmem:[%s2780_s1 + $0x2c0] sm:$0xff]  ;;  %v1325_v14 = vpack.c.bf16 %v102_v6, %v98_v4  ;;  %v1127_v15 = vpack.c.bf16 %v109_v8, %v105_v7  ;;  %v106_v17 = vld [vmem:[%s2780_s1 + $0x2d0] sm:$0xff] }
  0x20   :  { %1312 = vmatprep.subr.bf16.mxu1 %v1311_v28  ;;  %v111_v10 = vld [vmem:[%s2780_s1 + $0x2f8] sm:$0xff]  ;;  %v108_v16 = vld [vmem:[%s2780_s1 + $0x2e0] sm:$0xff]  ;;  %v110_v18 = vld [vmem:[%s2780_s1 + $0x2f0] sm:$0xff] }
  0x21   :  { %v1327_v19 = vpack.c.bf16 %v111_v10, %v107_v9  ;;  %v113_v20 = vld [vmem:[%s2780_s1 + $0x308] sm:$0xff]  ;;  %v1827_v22 = vld [vmem:[%s2781_s0] sm:$0xff]  ;;  %v115_v23 = vld [vmem:[%s2780_s1 + $0x318] sm:$0xff]  ;;  %v1129_v26 = vpack.c.bf16 %v108_v16, %v104_v13  ;;  %v1329_v27 = vpack.c.bf16 %v110_v18, %v106_v17 }
  0x22   :  { %1114 = vmatpush1.bf16.msra.mxu0 %v1113_v34  ;;  %v117_v21 = vld [vmem:[%s2780_s1 + $0x328] sm:$0xff]  ;;  %v119_v24 = vld [vmem:[%s2780_s1 + $0x338] sm:$0xff]  ;;  %v1837_v25 = vrot.slane %v1827_v22, %v1804_v11  ;;  %v112_v29 = vld [vmem:[%s2780_s1 + $0x300] sm:$0xff]  ;;  %v440_v8 = vcombine.high %v1827_v22, %v1827_v22 }
  0x23   :  { %1314 = vmatpush1.bf16.msra.mxu1 %v1313_v35  ;;  %1116 = vmatprep.subr.bf16.mxu0 %v1115_v36  ;;  %v1131_v28 = vpack.c.bf16 %v117_v21, %v113_v20  ;;  %v116_v30 = vld [vmem:[%s2780_s1 + $0x320] sm:$0xff]  ;;  %v114_v31 = vld [vmem:[%s2780_s1 + $0x310] sm:$0xff]  ;;  %v1331_v33 = vpack.c.bf16 %v119_v24, %v115_v23  ;;  %v121_v35 = vld [vmem:[%s2780_s1 + $0x348] sm:$0xff] }
  0x24   :  { %1316 = vmatprep.subr.bf16.mxu1 %v1315_v40  ;;  %v455_v32 = vcombine.high %v1837_v25, %v1837_v25  ;;  %v118_v34 = vld [vmem:[%s2780_s1 + $0x330] sm:$0xff]  ;;  %v125_v36 = vld [vmem:[%s2780_s1 + $0x368] sm:$0xff]  ;;  %v123_v37 = vld [vmem:[%s2780_s1 + $0x358] sm:$0xff]  ;;  %v1133_v39 = vpack.c.bf16 %v116_v30, %v112_v29  ;;  %v1958_v24 = vrot.slane %v440_v8, %v1804_v11 }
  0x25   :  { %v127_v38 = vld [vmem:[%s2780_s1 + $0x378] sm:$0xff]  ;;  %v1333_v40 = vpack.c.bf16 %v118_v34, %v114_v31  ;;  %v1135_v41 = vpack.c.bf16 %v125_v36, %v121_v35  ;;  %v120_v42 = vld [vmem:[%s2780_s1 + $0x340] sm:$0xff]  ;;  %v122_v44 = vld [vmem:[%s2780_s1 + $0x350] sm:$0xff] }
  0x26   :  { %1118 = vmatpush1.bf16.msra.mxu0 %v1117_v49  ;;  %546 = vmatprep.mubr.f32.mxu0 %v455_v32  ;;  %v124_v43 = vld [vmem:[%s2780_s1 + $0x360] sm:$0xff]  ;;  %v1335_v45 = vpack.c.bf16 %v127_v38, %v123_v37  ;;  %v126_v46 = vld [vmem:[%s2780_s1 + $0x370] sm:$0xff]  ;;  %v129_v47 = vld [vmem:[%s2780_s1 + $0x388] sm:$0xff]  ;;  %v456_v38 = vcombine.high %v1958_v24, %v1958_v24 }
  0x27   :  { %1318 = vmatpush1.bf16.msra.mxu1 %v1317_v50  ;;  %1120 = vmatprep.subr.bf16.mxu0 %v1119_v51  ;;  %v133_v48 = vld [vmem:[%s2780_s1 + $0x3a8] sm:$0xff]  ;;  %v131_v49 = vld [vmem:[%s2780_s1 + $0x398] sm:$0xff]  ;;  %v1137_v51 = vpack.c.bf16 %v124_v43, %v120_v42  ;;  %v1337_v52 = vpack.c.bf16 %v126_v46, %v122_v44  ;;  %v128_v54 = vld [vmem:[%s2780_s1 + $0x380] sm:$0xff] }
  0x28   :  { %1320 = vmatprep.subr.bf16.mxu1 %v1319_v55  ;;  %830 = vmatprep.mubr.f32.mxu1 %v455_v32  ;;  %v135_v50 = vld [vmem:[%s2780_s1 + $0x3b8] sm:$0xff]  ;;  %v1139_v53 = vpack.c.bf16 %v133_v48, %v129_v47  ;;  %v132_v55 = vld [vmem:[%s2780_s1 + $0x3a0] sm:$0xff]  ;;  %v130_v56 = vld [vmem:[%s2780_s1 + $0x390] sm:$0xff] }
  0x29   :  { %v1339_v57 = vpack.c.bf16 %v135_v50, %v131_v49  ;;  %v134_v58 = vld [vmem:[%s2780_s1 + $0x3b0] sm:$0xff]  ;;  %v137_v59 = vld [vmem:[%s2780_s1 + $0x3c8] sm:$0xff]  ;;  %v139_v62 = vld [vmem:[%s2780_s1 + $0x3d8] sm:$0xff] }
  0x2a   :  { %1122 = vmatpush1.bf16.msra.mxu0 %v1121_v63  ;;  %v141_v60 = vld [vmem:[%s2780_s1 + $0x3e8] sm:$0xff]  ;;  %v143_v63 = vld [vmem:[%s2780_s1 + $0x3f8] sm:$0xff]  ;;  %v136_v3 = vld [vmem:[%s2780_s1 + $0x3c0] sm:$0xff] }
  0x2b   :  { %1322 = vmatpush1.bf16.msra.mxu1 %v1321_v0  ;;  %1124 = vmatprep.subr.bf16.mxu0 %v1123_v1  ;;  %v1141_v0 = vpack.c.bf16 %v132_v55, %v128_v54  ;;  %v1341_v1 = vpack.c.bf16 %v134_v58, %v130_v56  ;;  %v1143_v2 = vpack.c.bf16 %v141_v60, %v137_v59  ;;  %v140_v4 = vld [vmem:[%s2780_s1 + $0x3e0] sm:$0xff]  ;;  %v142_v7 = vld [vmem:[%s2780_s1 + $0x3f0] sm:$0xff]  ;;  %v145_v9 = vld [vmem:[%s2780_s1 + $0x408] sm:$0xff] }
  0x2c   :  { %1324 = vmatprep.subr.bf16.mxu1 %v1323_v5  ;;  %v138_v5 = vld [vmem:[%s2780_s1 + $0x3d0] sm:$0xff]  ;;  %v1343_v6 = vpack.c.bf16 %v143_v63, %v139_v62  ;;  %v149_v10 = vld [vmem:[%s2780_s1 + $0x428] sm:$0xff]  ;;  %v151_v13 = vld [vmem:[%s2780_s1 + $0x438] sm:$0xff] }
  0x2d   :  { %v1147_v16 = vpack.c.bf16 %v149_v10, %v145_v9  ;;  %v144_v17 = vld [vmem:[%s2780_s1 + $0x400] sm:$0xff]  ;;  %v150_v21 = vld [vmem:[%s2780_s1 + $0x430] sm:$0xff]  ;;  %v153_v22 = vld [vmem:[%s2780_s1 + $0x448] sm:$0xff] }
  0x2e   :  { %1126 = vmatpush1.bf16.msra.mxu0 %v1125_v12  ;;  %v147_v12 = vld [vmem:[%s2780_s1 + $0x418] sm:$0xff]  ;;  %v148_v18 = vld [vmem:[%s2780_s1 + $0x420] sm:$0xff]  ;;  %v157_v23 = vld [vmem:[%s2780_s1 + $0x468] sm:$0xff] }
  0x2f   :  { %1326 = vmatpush1.bf16.msra.mxu1 %v1325_v14  ;;  %1128 = vmatprep.subr.bf16.mxu0 %v1127_v15  ;;  %v1145_v14 = vpack.c.bf16 %v140_v4, %v136_v3  ;;  %v1345_v15 = vpack.c.bf16 %v142_v7, %v138_v5  ;;  %v1347_v20 = vpack.c.bf16 %v151_v13, %v147_v12  ;;  %v152_v31 = vld [vmem:[%s2780_s1 + $0x440] sm:$0xff]  ;;  %v158_v35 = vld [vmem:[%s2780_s1 + $0x470] sm:$0xff]  ;;  %v161_v36 = vld [vmem:[%s2780_s1 + $0x488] sm:$0xff] }
  0x30   :  { %1328 = vmatprep.subr.bf16.mxu1 %v1327_v19  ;;  %v146_v19 = vld [vmem:[%s2780_s1 + $0x410] sm:$0xff]  ;;  %v1151_v30 = vpack.c.bf16 %v157_v23, %v153_v22  ;;  %v156_v32 = vld [vmem:[%s2780_s1 + $0x460] sm:$0xff]  ;;  %v165_v37 = vld [vmem:[%s2780_s1 + $0x4a8] sm:$0xff] }
  0x31   :  { %v1349_v29 = vpack.c.bf16 %v150_v21, %v146_v19  ;;  %v1155_v43 = vpack.c.bf16 %v165_v37, %v161_v36  ;;  %v160_v44 = vld [vmem:[%s2780_s1 + $0x480] sm:$0xff]  ;;  %v162_v46 = vld [vmem:[%s2780_s1 + $0x490] sm:$0xff]  ;;  %v169_v48 = vld [vmem:[%s2780_s1 + $0x4c8] sm:$0xff] }
  0x32   :  { %1130 = vmatpush1.bf16.msra.mxu0 %v1129_v26  ;;  %v155_v26 = vld [vmem:[%s2780_s1 + $0x458] sm:$0xff]  ;;  %v173_v49 = vld [vmem:[%s2780_s1 + $0x4e8] sm:$0xff]  ;;  %v168_v55 = vld [vmem:[%s2780_s1 + $0x4c0] sm:$0xff] }
  0x33   :  { %1330 = vmatpush1.bf16.msra.mxu1 %v1329_v27  ;;  %1132 = vmatprep.subr.bf16.mxu0 %v1131_v28  ;;  %v159_v27 = vld [vmem:[%s2780_s1 + $0x478] sm:$0xff]  ;;  %v1149_v28 = vpack.c.bf16 %v148_v18, %v144_v17  ;;  %v1159_v54 = vpack.c.bf16 %v173_v49, %v169_v48  ;;  %v172_v56 = vld [vmem:[%s2780_s1 + $0x4e0] sm:$0xff]  ;;  %v174_v59 = vld [vmem:[%s2780_s1 + $0x4f0] sm:$0xff] }
  0x34   :  { %1332 = vmatprep.subr.bf16.mxu1 %v1331_v33  ;;  %v154_v33 = vld [vmem:[%s2780_s1 + $0x450] sm:$0xff]  ;;  %v1351_v34 = vpack.c.bf16 %v159_v27, %v155_v26  ;;  %v171_v50 = vld [vmem:[%s2780_s1 + $0x4d8] sm:$0xff]  ;;  %v177_v60 = vld [vmem:[%s2780_s1 + $0x508] sm:$0xff] }
  0x35   :  { %v1353_v42 = vpack.c.bf16 %v158_v35, %v154_v33  ;;  %v181_v62 = vld [vmem:[%s2780_s1 + $0x528] sm:$0xff]  ;;  %v179_v63 = vld [vmem:[%s2780_s1 + $0x518] sm:$0xff]  ;;  %v176_v4 = vld [vmem:[%s2780_s1 + $0x500] sm:$0xff] }
  0x36   :  { %1134 = vmatpush1.bf16.msra.mxu0 %v1133_v39  ;;  %v163_v39 = vld [vmem:[%s2780_s1 + $0x498] sm:$0xff]  ;;  %v1163_v3 = vpack.c.bf16 %v181_v62, %v177_v60  ;;  %v180_v5 = vld [vmem:[%s2780_s1 + $0x520] sm:$0xff]  ;;  %v182_v8 = vld [vmem:[%s2780_s1 + $0x530] sm:$0xff] }
  0x37   :  { %1334 = vmatpush1.bf16.msra.mxu1 %v1333_v40  ;;  %1136 = vmatprep.subr.bf16.mxu0 %v1135_v41  ;;  %v167_v40 = vld [vmem:[%s2780_s1 + $0x4b8] sm:$0xff]  ;;  %v1153_v41 = vpack.c.bf16 %v156_v32, %v152_v31  ;;  %v185_v9 = vld [vmem:[%s2780_s1 + $0x548] sm:$0xff]  ;;  %v184_v17 = vld [vmem:[%s2780_s1 + $0x540] sm:$0xff] }
  0x38   :  { %1336 = vmatprep.subr.bf16.mxu1 %v1335_v45  ;;  %v164_v45 = vld [vmem:[%s2780_s1 + $0x4a0] sm:$0xff]  ;;  %v1355_v47 = vpack.c.bf16 %v167_v40, %v163_v39  ;;  %v189_v10 = vld [vmem:[%s2780_s1 + $0x568] sm:$0xff]  ;;  %v187_v12 = vld [vmem:[%s2780_s1 + $0x558] sm:$0xff] }
  0x39   :  { %v191_v13 = vld [vmem:[%s2780_s1 + $0x578] sm:$0xff]  ;;  %v188_v18 = vld [vmem:[%s2780_s1 + $0x560] sm:$0xff]  ;;  %v186_v19 = vld [vmem:[%s2780_s1 + $0x550] sm:$0xff] }
  0x3a   :  { %1138 = vmatpush1.bf16.msra.mxu0 %v1137_v51  ;;  %v175_v51 = vld [vmem:[%s2780_s1 + $0x4f8] sm:$0xff]  ;;  %v190_v21 = vld [vmem:[%s2780_s1 + $0x570] sm:$0xff]  ;;  %v193_v22 = vld [vmem:[%s2780_s1 + $0x588] sm:$0xff] }
  0x3b   :  { %1338 = vmatpush1.bf16.msra.mxu1 %v1337_v52  ;;  %1140 = vmatprep.subr.bf16.mxu0 %v1139_v53  ;;  %v1157_v52 = vpack.c.bf16 %v164_v45, %v160_v44  ;;  %v1359_v58 = vpack.c.bf16 %v175_v51, %v171_v50  ;;  %v197_v23 = vld [vmem:[%s2780_s1 + $0x5a8] sm:$0xff]  ;;  %v195_v26 = vld [vmem:[%s2780_s1 + $0x598] sm:$0xff]  ;;  %v192_v31 = vld [vmem:[%s2780_s1 + $0x580] sm:$0xff] }
  0x3c   :  { %1340 = vmatprep.subr.bf16.mxu1 %v1339_v57  ;;  %v170_v57 = vld [vmem:[%s2780_s1 + $0x4d0] sm:$0xff]  ;;  %v199_v27 = vld [vmem:[%s2780_s1 + $0x5b8] sm:$0xff]  ;;  %v196_v32 = vld [vmem:[%s2780_s1 + $0x5a0] sm:$0xff] }
  0x3d   :  { %v194_v33 = vld [vmem:[%s2780_s1 + $0x590] sm:$0xff]  ;;  %v201_v36 = vld [vmem:[%s2780_s1 + $0x5c8] sm:$0xff]  ;;  %v207_v39 = vld [vmem:[%s2780_s1 + $0x5f8] sm:$0xff]  ;;  %v1173_v40 = vpack.c.bf16 %v196_v32, %v192_v31 }
  0x3e   :  { %1142 = vmatpush1.bf16.msra.mxu0 %v1141_v0  ;;  %v183_v0 = vld [vmem:[%s2780_s1 + $0x538] sm:$0xff]  ;;  %v198_v35 = vld [vmem:[%s2780_s1 + $0x5b0] sm:$0xff]  ;;  %v205_v37 = vld [vmem:[%s2780_s1 + $0x5e8] sm:$0xff] }
  0x3f   :  { %1342 = vmatpush1.bf16.msra.mxu1 %v1341_v1  ;;  %1144 = vmatprep.subr.bf16.mxu0 %v1143_v2  ;;  %v1161_v1 = vpack.c.bf16 %v172_v56, %v168_v55  ;;  %v1361_v2 = vpack.c.bf16 %v174_v59, %v170_v57  ;;  %v1363_v7 = vpack.c.bf16 %v183_v0, %v179_v63  ;;  %v204_v44 = vld [vmem:[%s2780_s1 + $0x5e0] sm:$0xff]  ;;  %v202_v45 = vld [vmem:[%s2780_s1 + $0x5d0] sm:$0xff]  ;;  %v213_v48 = vld [vmem:[%s2780_s1 + $0x628] sm:$0xff] }
  0x40   :  { %1344 = vmatprep.subr.bf16.mxu1 %v1343_v6  ;;  %v178_v6 = vld [vmem:[%s2780_s1 + $0x510] sm:$0xff]  ;;  %v211_v49 = vld [vmem:[%s2780_s1 + $0x618] sm:$0xff]  ;;  %v212_v55 = vld [vmem:[%s2780_s1 + $0x620] sm:$0xff] }
  0x41   :  { %v215_v50 = vld [vmem:[%s2780_s1 + $0x638] sm:$0xff]  ;;  %v210_v56 = vld [vmem:[%s2780_s1 + $0x610] sm:$0xff]  ;;  %v217_v59 = vld [vmem:[%s2780_s1 + $0x648] sm:$0xff] }
  0x42   :  { %1146 = vmatpush1.bf16.msra.mxu0 %v1145_v14  ;;  %v1165_v14 = vpack.c.bf16 %v180_v5, %v176_v4  ;;  %v1379_v57 = vpack.c.bf16 %v215_v50, %v211_v49  ;;  %v221_v60 = vld [vmem:[%s2780_s1 + $0x668] sm:$0xff]  ;;  %v219_v62 = vld [vmem:[%s2780_s1 + $0x658] sm:$0xff]  ;;  %v220_v4 = vld [vmem:[%s2780_s1 + $0x660] sm:$0xff] }
  0x43   :  { %1346 = vmatpush1.bf16.msra.mxu1 %v1345_v15  ;;  %1148 = vmatprep.subr.bf16.mxu0 %v1147_v16  ;;  %v1365_v15 = vpack.c.bf16 %v182_v8, %v178_v6  ;;  %v1167_v16 = vpack.c.bf16 %v189_v10, %v185_v9  ;;  %v223_v63 = vld [vmem:[%s2780_s1 + $0x678] sm:$0xff]  ;;  %v218_v5 = vld [vmem:[%s2780_s1 + $0x650] sm:$0xff]  ;;  %v225_v8 = vld [vmem:[%s2780_s1 + $0x688] sm:$0xff] }
  0x44   :  { %1348 = vmatprep.subr.bf16.mxu1 %v1347_v20  ;;  %v1367_v20 = vpack.c.bf16 %v191_v13, %v187_v12  ;;  %v1383_v6 = vpack.c.bf16 %v223_v63, %v219_v62  ;;  %v229_v9 = vld [vmem:[%s2780_s1 + $0x6a8] sm:$0xff]  ;;  %v227_v10 = vld [vmem:[%s2780_s1 + $0x698] sm:$0xff]  ;;  %v236_v31 = vld [vmem:[%s2780_s1 + $0x6e0] sm:$0xff] }
  0x45   :  { %547 = vmatmul.mubr.f32.vlgmr.msra.gmra.mrb[0].mxu0 %v1837_v25  ;;  %v231_v12 = vld [vmem:[%s2780_s1 + $0x6b8] sm:$0xff]  ;;  %v234_v32 = vld [vmem:[%s2780_s1 + $0x6d0] sm:$0xff] }
  0x46   :  { %1150 = vmatpush1.bf16.msra.mxu0 %v1149_v28  ;;  %831 = vmatmul.mubr.f32.vlgmr.msra.gmra.mrb[0].mxu1 %v1837_v25  ;;  %v166_v25 = vld [vmem:[%s2780_s1 + $0x4b0] sm:$0xff]  ;;  %v1169_v28 = vpack.c.bf16 %v188_v18, %v184_v17  ;;  %v228_v17 = vld [vmem:[%s2780_s1 + $0x6a0] sm:$0xff]  ;;  %v255_v49 = vld [vmem:[%s2780_s1 + $0x778] sm:$0xff] }
  0x47   :  { %1350 = vmatpush1.bf16.msra.mxu1 %v1349_v29  ;;  %1152 = vmatprep.subr.bf16.mxu0 %v1151_v30  ;;  %v1357_v53 = vpack.c.bf16 %v166_v25, %v162_v46  ;;  %v1369_v29 = vpack.c.bf16 %v190_v21, %v186_v19  ;;  %v1171_v30 = vpack.c.bf16 %v197_v23, %v193_v22  ;;  %v209_v25 = vld [vmem:[%s2780_s1 + $0x608] sm:$0xff]  ;;  %v226_v18 = vld [vmem:[%s2780_s1 + $0x690] sm:$0xff]  ;;  %v235_v23 = vld [vmem:[%s2780_s1 + $0x6d8] sm:$0xff] }
  0x48   :  { %1352 = vmatprep.subr.bf16.mxu1 %v1351_v34  ;;  %617 = vmatprep.mubr.f32.mxu0 %v456_v38  ;;  %v1371_v34 = vpack.c.bf16 %v199_v27, %v195_v26  ;;  %v1387_v19 = vpack.c.bf16 %v231_v12, %v227_v10  ;;  %v233_v21 = vld [vmem:[%s2780_s1 + $0x6c8] sm:$0xff]  ;;  %v239_v26 = vld [vmem:[%s2780_s1 + $0x6f8] sm:$0xff] }
  0x49   :  { %901 = vmatprep.mubr.f32.mxu1 %v456_v38  ;;  %v203_v38 = vld [vmem:[%s2780_s1 + $0x5d8] sm:$0xff]  ;;  %v237_v22 = vld [vmem:[%s2780_s1 + $0x6e8] sm:$0xff] }
  0x4a   :  { %1154 = vmatpush1.bf16.msra.mxu0 %v1153_v41  ;;  %v1373_v41 = vpack.c.bf16 %v198_v35, %v194_v33  ;;  %v1375_v46 = vpack.c.bf16 %v207_v39, %v203_v38  ;;  %v1391_v33 = vpack.c.bf16 %v239_v26, %v235_v23  ;;  %v241_v35 = vld [vmem:[%s2780_s1 + $0x708] sm:$0xff]  ;;  %v247_v38 = vld [vmem:[%s2780_s1 + $0x738] sm:$0xff] }
  0x4b   :  { %1354 = vmatpush1.bf16.msra.mxu1 %v1353_v42  ;;  %1156 = vmatprep.subr.bf16.mxu0 %v1155_v43  ;;  %v1175_v42 = vpack.c.bf16 %v205_v37, %v201_v36  ;;  %v200_v43 = vld [vmem:[%s2780_s1 + $0x5c0] sm:$0xff]  ;;  %v245_v36 = vld [vmem:[%s2780_s1 + $0x728] sm:$0xff]  ;;  %v243_v37 = vld [vmem:[%s2780_s1 + $0x718] sm:$0xff] }
  0x4c   :  { %1356 = vmatprep.subr.bf16.mxu1 %v1355_v47  ;;  %v206_v47 = vld [vmem:[%s2780_s1 + $0x5f0] sm:$0xff]  ;;  %v1177_v51 = vpack.c.bf16 %v204_v44, %v200_v43  ;;  %v244_v43 = vld [vmem:[%s2780_s1 + $0x720] sm:$0xff]  ;;  %v263_v62 = vld [vmem:[%s2780_s1 + $0x7b8] sm:$0xff] }
  0x4d   :  { %v242_v44 = vld [vmem:[%s2780_s1 + $0x710] sm:$0xff]  ;;  %v271_v10 = vld [vmem:[%s2780_s1 + $0x7f8] sm:$0xff] }
  0x4e   :  { %1158 = vmatpush1.bf16.msra.mxu0 %v1157_v52  ;;  %v1377_v52 = vpack.c.bf16 %v206_v47, %v202_v45  ;;  %v1395_v45 = vpack.c.bf16 %v247_v38, %v243_v37  ;;  %v249_v47 = vld [vmem:[%s2780_s1 + $0x748] sm:$0xff]  ;;  %v275_v23 = vld [vmem:[%s2780_s1 + $0x818] sm:$0xff] }
  0x4f   :  { %1358 = vmatpush1.bf16.msra.mxu1 %v1357_v53  ;;  %1160 = vmatprep.subr.bf16.mxu0 %v1159_v54  ;;  %v1179_v53 = vpack.c.bf16 %v213_v48, %v209_v25  ;;  %v208_v54 = vld [vmem:[%s2780_s1 + $0x600] sm:$0xff]  ;;  %v253_v25 = vld [vmem:[%s2780_s1 + $0x768] sm:$0xff]  ;;  %v251_v48 = vld [vmem:[%s2780_s1 + $0x758] sm:$0xff] }
  0x50   :  { %1360 = vmatprep.subr.bf16.mxu1 %v1359_v58  ;;  %v214_v58 = vld [vmem:[%s2780_s1 + $0x630] sm:$0xff]  ;;  %v1181_v0 = vpack.c.bf16 %v212_v55, %v208_v54  ;;  %v252_v54 = vld [vmem:[%s2780_s1 + $0x760] sm:$0xff]  ;;  %v279_v26 = vld [vmem:[%s2780_s1 + $0x838] sm:$0xff] }
  0x51   :  { %v250_v55 = vld [vmem:[%s2780_s1 + $0x750] sm:$0xff]  ;;  %v283_v38 = vld [vmem:[%s2780_s1 + $0x858] sm:$0xff] }
  0x52   :  { %1162 = vmatpush1.bf16.msra.mxu0 %v1161_v1  ;;  %v1381_v1 = vpack.c.bf16 %v214_v58, %v210_v56  ;;  %v1399_v56 = vpack.c.bf16 %v255_v49, %v251_v48  ;;  %v257_v58 = vld [vmem:[%s2780_s1 + $0x788] sm:$0xff] }
  0x53   :  { %1362 = vmatpush1.bf16.msra.mxu1 %v1361_v2  ;;  %1164 = vmatprep.subr.bf16.mxu0 %v1163_v3  ;;  %v1183_v2 = vpack.c.bf16 %v221_v60, %v217_v59  ;;  %v216_v3 = vld [vmem:[%s2780_s1 + $0x640] sm:$0xff]  ;;  %v261_v59 = vld [vmem:[%s2780_s1 + $0x7a8] sm:$0xff]  ;;  %v259_v60 = vld [vmem:[%s2780_s1 + $0x798] sm:$0xff] }
  0x54   :  { %1364 = vmatprep.subr.bf16.mxu1 %v1363_v7  ;;  %v222_v7 = vld [vmem:[%s2780_s1 + $0x670] sm:$0xff]  ;;  %v1185_v13 = vpack.c.bf16 %v220_v4, %v216_v3  ;;  %v260_v3 = vld [vmem:[%s2780_s1 + $0x7a0] sm:$0xff]  ;;  %v293_v48 = vld [vmem:[%s2780_s1 + $0x8a8] sm:$0xff] }
  0x55   :  { %v258_v4 = vld [vmem:[%s2780_s1 + $0x790] sm:$0xff] }
  0x56   :  { %1166 = vmatpush1.bf16.msra.mxu0 %v1165_v14  ;;  %v1385_v14 = vpack.c.bf16 %v222_v7, %v218_v5  ;;  %v1403_v5 = vpack.c.bf16 %v263_v62, %v259_v60  ;;  %v265_v7 = vld [vmem:[%s2780_s1 + $0x7c8] sm:$0xff]  ;;  %v299_v62 = vld [vmem:[%s2780_s1 + $0x8d8] sm:$0xff] }
  0x57   :  { %1366 = vmatpush1.bf16.msra.mxu1 %v1365_v15  ;;  %1168 = vmatprep.subr.bf16.mxu0 %v1167_v16  ;;  %v1187_v15 = vpack.c.bf16 %v229_v9, %v225_v8  ;;  %v224_v16 = vld [vmem:[%s2780_s1 + $0x680] sm:$0xff]  ;;  %v269_v8 = vld [vmem:[%s2780_s1 + $0x7e8] sm:$0xff]  ;;  %v267_v9 = vld [vmem:[%s2780_s1 + $0x7d8] sm:$0xff] }
  0x58   :  { %1368 = vmatprep.subr.bf16.mxu1 %v1367_v20  ;;  %v230_v20 = vld [vmem:[%s2780_s1 + $0x6b0] sm:$0xff]  ;;  %v1189_v27 = vpack.c.bf16 %v228_v17, %v224_v16  ;;  %v268_v16 = vld [vmem:[%s2780_s1 + $0x7e0] sm:$0xff]  ;;  %v301_v60 = vld [vmem:[%s2780_s1 + $0x8e8] sm:$0xff] }
  0x59   :  { %v266_v17 = vld [vmem:[%s2780_s1 + $0x7d0] sm:$0xff] }
  0x5a   :  { %1170 = vmatpush1.bf16.msra.mxu0 %v1169_v28  ;;  %v1389_v28 = vpack.c.bf16 %v230_v20, %v226_v18  ;;  %v1407_v18 = vpack.c.bf16 %v271_v10, %v267_v9  ;;  %v273_v20 = vld [vmem:[%s2780_s1 + $0x808] sm:$0xff]  ;;  %v307_v10 = vld [vmem:[%s2780_s1 + $0x918] sm:$0xff] }
  0x5b   :  { %1370 = vmatpush1.bf16.msra.mxu1 %v1369_v29  ;;  %1172 = vmatprep.subr.bf16.mxu0 %v1171_v30  ;;  %v1191_v29 = vpack.c.bf16 %v237_v22, %v233_v21  ;;  %v232_v30 = vld [vmem:[%s2780_s1 + $0x6c0] sm:$0xff]  ;;  %v277_v21 = vld [vmem:[%s2780_s1 + $0x828] sm:$0xff] }
  0x5c   :  { %1372 = vmatprep.subr.bf16.mxu1 %v1371_v34  ;;  %v238_v34 = vld [vmem:[%s2780_s1 + $0x6f0] sm:$0xff]  ;;  %v1193_v39 = vpack.c.bf16 %v236_v31, %v232_v30  ;;  %v2327_v22 = vld [vmem:[%s2781_s0 + $0x8] sm:$0x3f]  ;;  %v272_v30 = vld [vmem:[%s2780_s1 + $0x800] sm:$0xff] }
  0x5d   :  { %v276_v31 = vld [vmem:[%s2780_s1 + $0x820] sm:$0xff]  ;;  %v2355_v37 = vrot.slane %v2327_v22, %v1804_v11  ;;  %v309_v9 = vld [vmem:[%s2780_s1 + $0x928] sm:$0xff] }
  0x5e   :  { %1174 = vmatpush1.bf16.msra.mxu0 %v1173_v40  ;;  %v1393_v40 = vpack.c.bf16 %v238_v34, %v234_v32  ;;  %v274_v32 = vld [vmem:[%s2780_s1 + $0x810] sm:$0xff] }
  0x5f   :  { %1374 = vmatpush1.bf16.msra.mxu1 %v1373_v41  ;;  %1176 = vmatprep.subr.bf16.mxu0 %v1175_v42  ;;  %v1195_v41 = vpack.c.bf16 %v245_v36, %v241_v35  ;;  %v240_v42 = vld [vmem:[%s2780_s1 + $0x700] sm:$0xff]  ;;  %v278_v34 = vld [vmem:[%s2780_s1 + $0x830] sm:$0xff]  ;;  %v281_v35 = vld [vmem:[%s2780_s1 + $0x848] sm:$0xff]  ;;  %v472_v49 = vcombine.high %v2355_v37, %v2355_v37 }
  0x60   :  { %1376 = vmatprep.subr.bf16.mxu1 %v1375_v46  ;;  %v246_v46 = vld [vmem:[%s2780_s1 + $0x730] sm:$0xff]  ;;  %v1197_v50 = vpack.c.bf16 %v244_v43, %v240_v42  ;;  %v285_v36 = vld [vmem:[%s2780_s1 + $0x868] sm:$0xff]  ;;  %v280_v43 = vld [vmem:[%s2780_s1 + $0x840] sm:$0xff] }
  0x61   :  { %v1215_v42 = vpack.c.bf16 %v285_v36, %v281_v35  ;;  %v318_v35 = vld [vmem:[%s2780_s1 + $0x970] sm:$0xff]  ;;  %v321_v36 = vld [vmem:[%s2780_s1 + $0x988] sm:$0xff] }
  0x62   :  { %1178 = vmatpush1.bf16.msra.mxu0 %v1177_v51  ;;  %v1397_v51 = vpack.c.bf16 %v246_v46, %v242_v44  ;;  %v284_v44 = vld [vmem:[%s2780_s1 + $0x860] sm:$0xff] }
  0x63   :  { %1378 = vmatpush1.bf16.msra.mxu1 %v1377_v52  ;;  %1180 = vmatprep.subr.bf16.mxu0 %v1179_v53  ;;  %v1199_v52 = vpack.c.bf16 %v253_v25, %v249_v47  ;;  %v248_v53 = vld [vmem:[%s2780_s1 + $0x740] sm:$0xff]  ;;  %v286_v47 = vld [vmem:[%s2780_s1 + $0x870] sm:$0xff]  ;;  %v289_v25 = vld [vmem:[%s2780_s1 + $0x888] sm:$0xff] }
  0x64   :  { %1380 = vmatprep.subr.bf16.mxu1 %v1379_v57  ;;  %v254_v57 = vld [vmem:[%s2780_s1 + $0x770] sm:$0xff]  ;;  %v1201_v63 = vpack.c.bf16 %v252_v54, %v248_v53  ;;  %v1219_v54 = vpack.c.bf16 %v293_v48, %v289_v25  ;;  %v329_v48 = vld [vmem:[%s2780_s1 + $0x9c8] sm:$0xff] }
  0x65   :  { %v326_v25 = vld [vmem:[%s2780_s1 + $0x9b0] sm:$0xff] }
  0x66   :  { %1182 = vmatpush1.bf16.msra.mxu0 %v1181_v0  ;;  %v1401_v0 = vpack.c.bf16 %v254_v57, %v250_v55  ;;  %v288_v55 = vld [vmem:[%s2780_s1 + $0x880] sm:$0xff]  ;;  %v290_v57 = vld [vmem:[%s2780_s1 + $0x890] sm:$0xff] }
  0x67   :  { %1382 = vmatpush1.bf16.msra.mxu1 %v1381_v1  ;;  %1184 = vmatprep.subr.bf16.mxu0 %v1183_v2  ;;  %v1203_v1 = vpack.c.bf16 %v261_v59, %v257_v58  ;;  %v256_v2 = vld [vmem:[%s2780_s1 + $0x780] sm:$0xff]  ;;  %v297_v59 = vld [vmem:[%s2780_s1 + $0x8c8] sm:$0xff] }
  0x68   :  { %1384 = vmatprep.subr.bf16.mxu1 %v1383_v6  ;;  %v262_v6 = vld [vmem:[%s2780_s1 + $0x7b0] sm:$0xff]  ;;  %v1205_v12 = vpack.c.bf16 %v260_v3, %v256_v2  ;;  %v1223_v2 = vpack.c.bf16 %v301_v60, %v297_v59  ;;  %v296_v3 = vld [vmem:[%s2780_s1 + $0x8c0] sm:$0xff]  ;;  %v337_v59 = vld [vmem:[%s2780_s1 + $0xa08] sm:$0xff] }
  0x69   :  { %v341_v60 = vld [vmem:[%s2780_s1 + $0xa28] sm:$0xff] }
  0x6a   :  { %1186 = vmatpush1.bf16.msra.mxu0 %v1185_v13  ;;  %v1405_v13 = vpack.c.bf16 %v262_v6, %v258_v4  ;;  %v300_v4 = vld [vmem:[%s2780_s1 + $0x8e0] sm:$0xff] }
  0x6b   :  { %1386 = vmatpush1.bf16.msra.mxu1 %v1385_v14  ;;  %1188 = vmatprep.subr.bf16.mxu0 %v1187_v15  ;;  %v1207_v14 = vpack.c.bf16 %v269_v8, %v265_v7  ;;  %v264_v15 = vld [vmem:[%s2780_s1 + $0x7c0] sm:$0xff]  ;;  %v302_v7 = vld [vmem:[%s2780_s1 + $0x8f0] sm:$0xff]  ;;  %v305_v8 = vld [vmem:[%s2780_s1 + $0x908] sm:$0xff] }
  0x6c   :  { %1388 = vmatprep.subr.bf16.mxu1 %v1387_v19  ;;  %v270_v19 = vld [vmem:[%s2780_s1 + $0x7f0] sm:$0xff] }
  0x6e   :  { %1190 = vmatpush1.bf16.msra.mxu0 %v1189_v27  ;;  %v1209_v27 = vpack.c.bf16 %v268_v16, %v264_v15  ;;  %v1227_v15 = vpack.c.bf16 %v309_v9, %v305_v8  ;;  %v304_v16 = vld [vmem:[%s2780_s1 + $0x900] sm:$0xff]  ;;  %v345_v8 = vld [vmem:[%s2780_s1 + $0xa48] sm:$0xff] }
  0x6f   :  { %1390 = vmatpush1.bf16.msra.mxu1 %v1389_v28  ;;  %1192 = vmatprep.subr.bf16.mxu0 %v1191_v29  ;;  %v1409_v28 = vpack.c.bf16 %v270_v19, %v266_v17  ;;  %v1211_v29 = vpack.c.bf16 %v277_v21, %v273_v20  ;;  %v308_v17 = vld [vmem:[%s2780_s1 + $0x920] sm:$0xff]  ;;  %v310_v20 = vld [vmem:[%s2780_s1 + $0x930] sm:$0xff]  ;;  %v313_v21 = vld [vmem:[%s2780_s1 + $0x948] sm:$0xff] }
  0x70   :  { %1392 = vmatprep.subr.bf16.mxu1 %v1391_v33  ;;  %v1411_v33 = vpack.c.bf16 %v279_v26, %v275_v23  ;;  %v317_v23 = vld [vmem:[%s2780_s1 + $0x968] sm:$0xff]  ;;  %v315_v26 = vld [vmem:[%s2780_s1 + $0x958] sm:$0xff] }
  0x71   :  { %v349_v9 = vld [vmem:[%s2780_s1 + $0xa68] sm:$0xff] }
  0x72   :  { %1194 = vmatpush1.bf16.msra.mxu0 %v1193_v39  ;;  %v287_v39 = vld [vmem:[%s2780_s1 + $0x878] sm:$0xff] }
  0x73   :  { %1394 = vmatpush1.bf16.msra.mxu1 %v1393_v40  ;;  %1196 = vmatprep.subr.bf16.mxu0 %v1195_v41  ;;  %v1213_v40 = vpack.c.bf16 %v276_v31, %v272_v30  ;;  %v1413_v41 = vpack.c.bf16 %v278_v34, %v274_v32  ;;  %v1415_v46 = vpack.c.bf16 %v287_v39, %v283_v38  ;;  %v312_v31 = vld [vmem:[%s2780_s1 + $0x940] sm:$0xff]  ;;  %v325_v38 = vld [vmem:[%s2780_s1 + $0x9a8] sm:$0xff]  ;;  %v323_v39 = vld [vmem:[%s2780_s1 + $0x998] sm:$0xff] }
  0x74   :  { %1396 = vmatprep.subr.bf16.mxu1 %v1395_v45  ;;  %v282_v45 = vld [vmem:[%s2780_s1 + $0x850] sm:$0xff]  ;;  %v1231_v30 = vpack.c.bf16 %v317_v23, %v313_v21  ;;  %v316_v32 = vld [vmem:[%s2780_s1 + $0x960] sm:$0xff]  ;;  %v353_v21 = vld [vmem:[%s2780_s1 + $0xa88] sm:$0xff] }
  0x75   :  { %v1417_v53 = vpack.c.bf16 %v286_v47, %v282_v45  ;;  %v324_v45 = vld [vmem:[%s2780_s1 + $0x9a0] sm:$0xff]  ;;  %v357_v23 = vld [vmem:[%s2780_s1 + $0xaa8] sm:$0xff] }
  0x76   :  { %1198 = vmatpush1.bf16.msra.mxu0 %v1197_v50  ;;  %v291_v50 = vld [vmem:[%s2780_s1 + $0x898] sm:$0xff] }
  0x77   :  { %1398 = vmatpush1.bf16.msra.mxu1 %v1397_v51  ;;  %1200 = vmatprep.subr.bf16.mxu0 %v1199_v52  ;;  %v295_v51 = vld [vmem:[%s2780_s1 + $0x8b8] sm:$0xff]  ;;  %v1217_v52 = vpack.c.bf16 %v284_v44, %v280_v43  ;;  %v1235_v43 = vpack.c.bf16 %v325_v38, %v321_v36  ;;  %v320_v44 = vld [vmem:[%s2780_s1 + $0x980] sm:$0xff]  ;;  %v361_v36 = vld [vmem:[%s2780_s1 + $0xac8] sm:$0xff] }
  0x78   :  { %1400 = vmatprep.subr.bf16.mxu1 %v1399_v56  ;;  %v292_v56 = vld [vmem:[%s2780_s1 + $0x8a0] sm:$0xff]  ;;  %v1419_v58 = vpack.c.bf16 %v295_v51, %v291_v50  ;;  %v331_v50 = vld [vmem:[%s2780_s1 + $0x9d8] sm:$0xff]  ;;  %v365_v38 = vld [vmem:[%s2780_s1 + $0xae8] sm:$0xff] }
  0x79   :  { %v335_v51 = vld [vmem:[%s2780_s1 + $0x9f8] sm:$0xff] }
  0x7a   :  { %1202 = vmatpush1.bf16.msra.mxu0 %v1201_v63  ;;  %v303_v63 = vld [vmem:[%s2780_s1 + $0x8f8] sm:$0xff] }
  0x7b   :  { %1402 = vmatpush1.bf16.msra.mxu1 %v1401_v0  ;;  %1204 = vmatprep.subr.bf16.mxu0 %v1203_v1  ;;  %v1221_v0 = vpack.c.bf16 %v292_v56, %v288_v55  ;;  %v1423_v6 = vpack.c.bf16 %v303_v63, %v299_v62  ;;  %v328_v55 = vld [vmem:[%s2780_s1 + $0x9c0] sm:$0xff]  ;;  %v339_v62 = vld [vmem:[%s2780_s1 + $0xa18] sm:$0xff] }
  0x7c   :  { %1404 = vmatprep.subr.bf16.mxu1 %v1403_v5  ;;  %v298_v5 = vld [vmem:[%s2780_s1 + $0x8d0] sm:$0xff]  ;;  %v332_v56 = vld [vmem:[%s2780_s1 + $0x9e0] sm:$0xff]  ;;  %v343_v63 = vld [vmem:[%s2780_s1 + $0xa38] sm:$0xff] }
  0x7e   :  { %1206 = vmatpush1.bf16.msra.mxu0 %v1205_v12  ;;  %v311_v12 = vld [vmem:[%s2780_s1 + $0x938] sm:$0xff] }
  0x7f   :  { %1406 = vmatpush1.bf16.msra.mxu1 %v1405_v13  ;;  %1208 = vmatprep.subr.bf16.mxu0 %v1207_v14  ;;  %v1225_v13 = vpack.c.bf16 %v300_v4, %v296_v3  ;;  %v1425_v14 = vpack.c.bf16 %v302_v7, %v298_v5  ;;  %v1427_v19 = vpack.c.bf16 %v311_v12, %v307_v10  ;;  %v336_v3 = vld [vmem:[%s2780_s1 + $0xa00] sm:$0xff]  ;;  %v338_v5 = vld [vmem:[%s2780_s1 + $0xa10] sm:$0xff]  ;;  %v347_v10 = vld [vmem:[%s2780_s1 + $0xa58] sm:$0xff] }
  0x80   :  { %1408 = vmatprep.subr.bf16.mxu1 %v1407_v18  ;;  %v306_v18 = vld [vmem:[%s2780_s1 + $0x910] sm:$0xff]  ;;  %v340_v4 = vld [vmem:[%s2780_s1 + $0xa20] sm:$0xff]  ;;  %v351_v12 = vld [vmem:[%s2780_s1 + $0xa78] sm:$0xff] }
  0x81   :  { %v342_v7 = vld [vmem:[%s2780_s1 + $0xa30] sm:$0xff] }
  0x82   :  { %1210 = vmatpush1.bf16.msra.mxu0 %v1209_v27  ;;  %v319_v27 = vld [vmem:[%s2780_s1 + $0x978] sm:$0xff] }
  0x83   :  { %1410 = vmatpush1.bf16.msra.mxu1 %v1409_v28  ;;  %1212 = vmatprep.subr.bf16.mxu0 %v1211_v29  ;;  %v1229_v28 = vpack.c.bf16 %v308_v17, %v304_v16  ;;  %v1429_v29 = vpack.c.bf16 %v310_v20, %v306_v18  ;;  %v1431_v34 = vpack.c.bf16 %v319_v27, %v315_v26  ;;  %v344_v16 = vld [vmem:[%s2780_s1 + $0xa40] sm:$0xff]  ;;  %v346_v18 = vld [vmem:[%s2780_s1 + $0xa50] sm:$0xff]  ;;  %v355_v26 = vld [vmem:[%s2780_s1 + $0xa98] sm:$0xff] }
  0x84   :  { %1412 = vmatprep.subr.bf16.mxu1 %v1411_v33  ;;  %v314_v33 = vld [vmem:[%s2780_s1 + $0x950] sm:$0xff]  ;;  %v348_v17 = vld [vmem:[%s2780_s1 + $0xa60] sm:$0xff]  ;;  %v359_v27 = vld [vmem:[%s2780_s1 + $0xab8] sm:$0xff] }
  0x85   :  { %618 = vmatmul.mubr.f32.vlgmr.msra.gmra.mrb[0].mxu0 %v1958_v24  ;;  %v350_v20 = vld [vmem:[%s2780_s1 + $0xa70] sm:$0xff] }
  0x86   :  { %1214 = vmatpush1.bf16.msra.mxu0 %v1213_v40  ;;  %902 = vmatmul.mubr.f32.vlgmr.msra.gmra.mrb[0].mxu1 %v1958_v24  ;;  %v294_v24 = vld [vmem:[%s2780_s1 + $0x8b0] sm:$0xff]  ;;  %v327_v40 = vld [vmem:[%s2780_s1 + $0x9b8] sm:$0xff] }
  0x87   :  { %1414 = vmatpush1.bf16.msra.mxu1 %v1413_v41  ;;  %1216 = vmatprep.subr.bf16.mxu0 %v1215_v42  ;;  %v1421_v1 = vpack.c.bf16 %v294_v24, %v290_v57  ;;  %v1233_v41 = vpack.c.bf16 %v316_v32, %v312_v31  ;;  %v1433_v42 = vpack.c.bf16 %v318_v35, %v314_v33  ;;  %v330_v57 = vld [vmem:[%s2780_s1 + $0x9d0] sm:$0xff]  ;;  %v352_v31 = vld [vmem:[%s2780_s1 + $0xa80] sm:$0xff] }
  0x88   :  { %1416 = vmatprep.subr.bf16.mxu1 %v1415_v46  ;;  %688 = vmatprep.mubr.f32.mxu0 %v472_v49  ;;  %v322_v46 = vld [vmem:[%s2780_s1 + $0x990] sm:$0xff]  ;;  %v1435_v47 = vpack.c.bf16 %v327_v40, %v323_v39  ;;  %v356_v32 = vld [vmem:[%s2780_s1 + $0xaa0] sm:$0xff]  ;;  %v363_v39 = vld [vmem:[%s2780_s1 + $0xad8] sm:$0xff] }
  0x89   :  { %972 = vmatprep.mubr.f32.mxu1 %v472_v49  ;;  %v333_v49 = vld [vmem:[%s2780_s1 + $0x9e8] sm:$0xff]  ;;  %v334_v24 = vld [vmem:[%s2780_s1 + $0x9f0] sm:$0xff]  ;;  %v367_v40 = vld [vmem:[%s2780_s1 + $0xaf8] sm:$0xff] }
  0x8a   :  { %1218 = vmatpush1.bf16.msra.mxu0 %v1217_v52  ;;  %v1237_v52 = vpack.c.bf16 %v324_v45, %v320_v44  ;;  %v354_v33 = vld [vmem:[%s2780_s1 + $0xa90] sm:$0xff]  ;;  %v360_v44 = vld [vmem:[%s2780_s1 + $0xac0] sm:$0xff] }
  0x8b   :  { %1418 = vmatpush1.bf16.msra.mxu1 %v1417_v53  ;;  %1220 = vmatprep.subr.bf16.mxu0 %v1219_v54  ;;  %v1437_v53 = vpack.c.bf16 %v326_v25, %v322_v46  ;;  %v1239_v54 = vpack.c.bf16 %v333_v49, %v329_v48  ;;  %v358_v35 = vld [vmem:[%s2780_s1 + $0xab0] sm:$0xff]  ;;  %v364_v45 = vld [vmem:[%s2780_s1 + $0xae0] sm:$0xff]  ;;  %v369_v48 = vld [vmem:[%s2780_s1 + $0xb08] sm:$0xff] }
  0x8c   :  { %1420 = vmatprep.subr.bf16.mxu1 %v1419_v58  ;;  %v1439_v58 = vpack.c.bf16 %v335_v51, %v331_v50  ;;  %v362_v46 = vld [vmem:[%s2780_s1 + $0xad0] sm:$0xff]  ;;  %v373_v49 = vld [vmem:[%s2780_s1 + $0xb28] sm:$0xff]  ;;  %v371_v50 = vld [vmem:[%s2780_s1 + $0xb18] sm:$0xff] }
  0x8d   :  { %v366_v25 = vld [vmem:[%s2780_s1 + $0xaf0] sm:$0xff]  ;;  %v375_v51 = vld [vmem:[%s2780_s1 + $0xb38] sm:$0xff] }
  0x8e   :  { %1222 = vmatpush1.bf16.msra.mxu0 %v1221_v0  ;;  %v1241_v0 = vpack.c.bf16 %v332_v56, %v328_v55  ;;  %v368_v55 = vld [vmem:[%s2780_s1 + $0xb00] sm:$0xff] }
  0x8f   :  { %1422 = vmatpush1.bf16.msra.mxu1 %v1421_v1  ;;  %1224 = vmatprep.subr.bf16.mxu0 %v1223_v2  ;;  %v1441_v1 = vpack.c.bf16 %v334_v24, %v330_v57  ;;  %v1243_v2 = vpack.c.bf16 %v341_v60, %v337_v59  ;;  %v372_v56 = vld [vmem:[%s2780_s1 + $0xb20] sm:$0xff]  ;;  %v370_v57 = vld [vmem:[%s2780_s1 + $0xb10] sm:$0xff]  ;;  %v377_v59 = vld [vmem:[%s2780_s1 + $0xb48] sm:$0xff] }
  0x90   :  { %1424 = vmatprep.subr.bf16.mxu1 %v1423_v6  ;;  %v1443_v6 = vpack.c.bf16 %v343_v63, %v339_v62  ;;  %v374_v24 = vld [vmem:[%s2780_s1 + $0xb30] sm:$0xff]  ;;  %v381_v60 = vld [vmem:[%s2780_s1 + $0xb68] sm:$0xff]  ;;  %v379_v62 = vld [vmem:[%s2780_s1 + $0xb58] sm:$0xff] }
  0x91   :  { %v383_v63 = vld [vmem:[%s2780_s1 + $0xb78] sm:$0xff] }
  0x92   :  { %1226 = vmatpush1.bf16.msra.mxu0 %v1225_v13  ;;  %v1245_v13 = vpack.c.bf16 %v340_v4, %v336_v3  ;;  %v376_v3 = vld [vmem:[%s2780_s1 + $0xb40] sm:$0xff] }
  0x93   :  { %1426 = vmatpush1.bf16.msra.mxu1 %v1425_v14  ;;  %1228 = vmatprep.subr.bf16.mxu0 %v1227_v15  ;;  %v1445_v14 = vpack.c.bf16 %v342_v7, %v338_v5  ;;  %v1247_v15 = vpack.c.bf16 %v349_v9, %v345_v8  ;;  %v380_v4 = vld [vmem:[%s2780_s1 + $0xb60] sm:$0xff]  ;;  %v378_v5 = vld [vmem:[%s2780_s1 + $0xb50] sm:$0xff]  ;;  %v385_v8 = vld [vmem:[%s2780_s1 + $0xb88] sm:$0xff] }
  0x94   :  { %1428 = vmatprep.subr.bf16.mxu1 %v1427_v19  ;;  %v1447_v19 = vpack.c.bf16 %v351_v12, %v347_v10  ;;  %v382_v7 = vld [vmem:[%s2780_s1 + $0xb70] sm:$0xff]  ;;  %v389_v9 = vld [vmem:[%s2780_s1 + $0xba8] sm:$0xff]  ;;  %v387_v10 = vld [vmem:[%s2780_s1 + $0xb98] sm:$0xff] }
  0x95   :  { %v391_v12 = vld [vmem:[%s2780_s1 + $0xbb8] sm:$0xff] }
  0x96   :  { %1230 = vmatpush1.bf16.msra.mxu0 %v1229_v28  ;;  %v1249_v28 = vpack.c.bf16 %v348_v17, %v344_v16  ;;  %v384_v16 = vld [vmem:[%s2780_s1 + $0xb80] sm:$0xff] }
  0x97   :  { %1430 = vmatpush1.bf16.msra.mxu1 %v1429_v29  ;;  %1232 = vmatprep.subr.bf16.mxu0 %v1231_v30  ;;  %v1449_v29 = vpack.c.bf16 %v350_v20, %v346_v18  ;;  %v1251_v30 = vpack.c.bf16 %v357_v23, %v353_v21  ;;  %v388_v17 = vld [vmem:[%s2780_s1 + $0xba0] sm:$0xff]  ;;  %v386_v18 = vld [vmem:[%s2780_s1 + $0xb90] sm:$0xff]  ;;  %v393_v21 = vld [vmem:[%s2780_s1 + $0xbc8] sm:$0xff] }
  0x98   :  { %1432 = vmatprep.subr.bf16.mxu1 %v1431_v34  ;;  %v1451_v34 = vpack.c.bf16 %v359_v27, %v355_v26  ;;  %v390_v20 = vld [vmem:[%s2780_s1 + $0xbb0] sm:$0xff]  ;;  %v397_v23 = vld [vmem:[%s2780_s1 + $0xbe8] sm:$0xff]  ;;  %v395_v26 = vld [vmem:[%s2780_s1 + $0xbd8] sm:$0xff] }
  0x99   :  { %v399_v27 = vld [vmem:[%s2780_s1 + $0xbf8] sm:$0xff] }
  0x9a   :  { %1234 = vmatpush1.bf16.msra.mxu0 %v1233_v41  ;;  %v1253_v41 = vpack.c.bf16 %v356_v32, %v352_v31  ;;  %v392_v31 = vld [vmem:[%s2780_s1 + $0xbc0] sm:$0xff] }
  0x9b   :  { %1434 = vmatpush1.bf16.msra.mxu1 %v1433_v42  ;;  %1236 = vmatprep.subr.bf16.mxu0 %v1235_v43  ;;  %v1453_v42 = vpack.c.bf16 %v358_v35, %v354_v33  ;;  %v1255_v43 = vpack.c.bf16 %v365_v38, %v361_v36  ;;  %v396_v32 = vld [vmem:[%s2780_s1 + $0xbe0] sm:$0xff]  ;;  %v394_v33 = vld [vmem:[%s2780_s1 + $0xbd0] sm:$0xff]  ;;  %v401_v36 = vld [vmem:[%s2780_s1 + $0xc08] sm:$0xff] }
  0x9c   :  { %1436 = vmatprep.subr.bf16.mxu1 %v1435_v47  ;;  %v1455_v47 = vpack.c.bf16 %v367_v40, %v363_v39  ;;  %v398_v35 = vld [vmem:[%s2780_s1 + $0xbf0] sm:$0xff]  ;;  %v405_v38 = vld [vmem:[%s2780_s1 + $0xc28] sm:$0xff]  ;;  %v403_v39 = vld [vmem:[%s2780_s1 + $0xc18] sm:$0xff] }
  0x9d   :  { %v407_v40 = vld [vmem:[%s2780_s1 + $0xc38] sm:$0xff] }
  0x9e   :  { %1238 = vmatpush1.bf16.msra.mxu0 %v1237_v52  ;;  %v1257_v52 = vpack.c.bf16 %v364_v45, %v360_v44  ;;  %v400_v44 = vld [vmem:[%s2780_s1 + $0xc00] sm:$0xff] }
  0x9f   :  { %1438 = vmatpush1.bf16.msra.mxu1 %v1437_v53  ;;  %1240 = vmatprep.subr.bf16.mxu0 %v1239_v54  ;;  %v1457_v53 = vpack.c.bf16 %v366_v25, %v362_v46  ;;  %v1259_v54 = vpack.c.bf16 %v373_v49, %v369_v48  ;;  %v404_v45 = vld [vmem:[%s2780_s1 + $0xc20] sm:$0xff]  ;;  %v402_v46 = vld [vmem:[%s2780_s1 + $0xc10] sm:$0xff]  ;;  %v409_v48 = vld [vmem:[%s2780_s1 + $0xc48] sm:$0xff] }
  0xa0   :  { %1440 = vmatprep.subr.bf16.mxu1 %v1439_v58  ;;  %v1459_v58 = vpack.c.bf16 %v375_v51, %v371_v50  ;;  %v406_v25 = vld [vmem:[%s2780_s1 + $0xc30] sm:$0xff]  ;;  %v413_v49 = vld [vmem:[%s2780_s1 + $0xc68] sm:$0xff]  ;;  %v411_v50 = vld [vmem:[%s2780_s1 + $0xc58] sm:$0xff] }
  0xa1   :  { %v415_v51 = vld [vmem:[%s2780_s1 + $0xc78] sm:$0xff] }
  0xa2   :  { %1242 = vmatpush1.bf16.msra.mxu0 %v1241_v0  ;;  %v1261_v0 = vpack.c.bf16 %v372_v56, %v368_v55  ;;  %v408_v55 = vld [vmem:[%s2780_s1 + $0xc40] sm:$0xff] }
  0xa3   :  { %1442 = vmatpush1.bf16.msra.mxu1 %v1441_v1  ;;  %1244 = vmatprep.subr.bf16.mxu0 %v1243_v2  ;;  %v1461_v1 = vpack.c.bf16 %v374_v24, %v370_v57  ;;  %v1263_v2 = vpack.c.bf16 %v381_v60, %v377_v59  ;;  %v412_v56 = vld [vmem:[%s2780_s1 + $0xc60] sm:$0xff]  ;;  %v1479_v57 = vpack.c.bf16 %v415_v51, %v411_v50  ;;  %v414_v24 = vld [vmem:[%s2780_s1 + $0xc70] sm:$0xff] }
  0xa4   :  { %1444 = vmatprep.subr.bf16.mxu1 %v1443_v6  ;;  %v1463_v6 = vpack.c.bf16 %v383_v63, %v379_v62  ;;  %v457_v59 = vcombine.high %v2327_v22, %v2327_v22  ;;  %v1281_v60 = vpack.c.bf16 %v412_v56, %v408_v55  ;;  %v1504_v63 = vmov 0.0  }
  0xa5   :  { %v420_v22 = vsub.s32 0, %v1777_v61 }
  0xa6   :  { %1246 = vmatpush1.bf16.msra.mxu0 %v1245_v13  ;;  %v1265_v13 = vpack.c.bf16 %v380_v4, %v376_v3  ;;  %v432_v3 = vsub.s32 3, %v1777_v61 }
  0xa7   :  { %1446 = vmatpush1.bf16.msra.mxu1 %v1445_v14  ;;  %1248 = vmatprep.subr.bf16.mxu0 %v1247_v15  ;;  %v1465_v14 = vpack.c.bf16 %v382_v7, %v378_v5  ;;  %v1267_v15 = vpack.c.bf16 %v389_v9, %v385_v8 }
  0xa8   :  { %1448 = vmatprep.subr.bf16.mxu1 %v1447_v19  ;;  %v1467_v19 = vpack.c.bf16 %v391_v12, %v387_v10 }
  0xaa   :  { %1250 = vmatpush1.bf16.msra.mxu0 %v1249_v28  ;;  %v1269_v28 = vpack.c.bf16 %v388_v17, %v384_v16 }
  0xab   :  { %1450 = vmatpush1.bf16.msra.mxu1 %v1449_v29  ;;  %1252 = vmatprep.subr.bf16.mxu0 %v1251_v30  ;;  %v1469_v29 = vpack.c.bf16 %v390_v20, %v386_v18  ;;  %v1271_v30 = vpack.c.bf16 %v397_v23, %v393_v21 }
  0xac   :  { %1452 = vmatprep.subr.bf16.mxu1 %v1451_v34  ;;  %v1471_v34 = vpack.c.bf16 %v399_v27, %v395_v26 }
  0xae   :  { %1254 = vmatpush1.bf16.msra.mxu0 %v1253_v41  ;;  %v1273_v41 = vpack.c.bf16 %v396_v32, %v392_v31 }
  0xaf   :  { %1454 = vmatpush1.bf16.msra.mxu1 %v1453_v42  ;;  %1256 = vmatprep.subr.bf16.mxu0 %v1255_v43  ;;  %v1473_v42 = vpack.c.bf16 %v398_v35, %v394_v33  ;;  %v1275_v43 = vpack.c.bf16 %v405_v38, %v401_v36 }
  0xb0   :  { %1456 = vmatprep.subr.bf16.mxu1 %v1455_v47  ;;  %v1475_v47 = vpack.c.bf16 %v407_v40, %v403_v39 }
  0xb2   :  { %1258 = vmatpush1.bf16.msra.mxu0 %v1257_v52  ;;  %v1277_v52 = vpack.c.bf16 %v404_v45, %v400_v44 }
  0xb3   :  { %1458 = vmatpush1.bf16.msra.mxu1 %v1457_v53  ;;  %1260 = vmatprep.subr.bf16.mxu0 %v1259_v54  ;;  %v1477_v53 = vpack.c.bf16 %v406_v25, %v402_v46  ;;  %v1279_v54 = vpack.c.bf16 %v413_v49, %v409_v48 }
  0xb4   :  { %1460 = vmatprep.subr.bf16.mxu1 %v1459_v58  ;;  %v410_v58 = vld [vmem:[%s2780_s1 + $0xc50] sm:$0xff] }
  0xb5   :  { %v1481_v62 = vpack.c.bf16 %v414_v24, %v410_v58 }
  0xb6   :  { %1262 = vmatpush1.bf16.msra.mxu0 %v1261_v0  ;;  %v471_v0 = vrot.slane %v457_v59, %v1804_v11 }
  0xb7   :  { %1462 = vmatpush1.bf16.msra.mxu1 %v1461_v1  ;;  %1264 = vmatprep.subr.bf16.mxu0 %v1263_v2  ;;  %v428_v1 = vsub.s32 2, %v1777_v61  ;;  %v424_v2 = vsub.s32 1, %v1777_v61 }
  0xb8   :  { %1464 = vmatprep.subr.bf16.mxu1 %v1463_v6 }
  0xba   :  { %1266 = vmatpush1.bf16.msra.mxu0 %v1265_v13 }
  0xbb   :  { %1466 = vmatpush1.bf16.msra.mxu1 %v1465_v14  ;;  %1268 = vmatprep.subr.bf16.mxu0 %v1267_v15 }
  0xbc   :  { %1468 = vmatprep.subr.bf16.mxu1 %v1467_v19 }
  0xbe   :  { %1270 = vmatpush1.bf16.msra.mxu0 %v1269_v28 }
  0xbf   :  { %1470 = vmatpush1.bf16.msra.mxu1 %v1469_v29  ;;  %1272 = vmatprep.subr.bf16.mxu0 %v1271_v30 }
  0xc0   :  { %1472 = vmatprep.subr.bf16.mxu1 %v1471_v34 }
  0xc2   :  { %1274 = vmatpush1.bf16.msra.mxu0 %v1273_v41 }
  0xc3   :  { %1474 = vmatpush1.bf16.msra.mxu1 %v1473_v42  ;;  %1276 = vmatprep.subr.bf16.mxu0 %v1275_v43 }
  0xc4   :  { %1476 = vmatprep.subr.bf16.mxu1 %v1475_v47 }
  0xc5   :  { %689 = vmatmul.mubr.f32.vlgmr.msra.gmra.mrb[0].mxu0 %v2355_v37 }
  0xc6   :  { %973 = vmatmul.mubr.f32.vlgmr.msra.gmra.mrb[0].mxu1 %v2355_v37  ;;  %1278 = vmatpush1.bf16.msra.mxu0 %v1277_v52  ;;  %v416_v37 = vld [vmem:[%s2782_s2] sm:$0xf] }
  0xc7   :  { %1478 = vmatpush1.bf16.msra.mxu1 %v1477_v53  ;;  %1280 = vmatprep.subr.bf16.mxu0 %v1279_v54  ;;  %v421_v4 = vrot.slane %v416_v37, %v420_v22  ;;  %v429_v5 = vrot.slane %v416_v37, %v428_v1  ;;  %v425_v6 = vrot.slane %v416_v37, %v424_v2 }
  0xc8   :  { %1480 = vmatprep.subr.bf16.mxu1 %v1479_v57  ;;  %759 = vmatprep.mubr.f32.mxu0 %v1504_v63  ;;  %v433_v7 = vrot.slane %v416_v37, %v432_v3 }
  0xc9   :  { %1043 = vmatprep.mubr.f32.mxu1 %v1504_v63 }
  0xca   :  { %1282 = vmatpush1.bf16.msra.mxu0 %v1281_v60 }
  0xcb   :  { %1482 = vmatpush1.bf16.msra.mxu1 %v1481_v62 }
  0xcd   :  { %1081 = vmatmul.mubr.msk.f32.vlgmr.msra.gmra.mrb[0].mxu0 %vm479_vm0, %v471_v0 }
  0xce   :  { %1082 = vmatmul.mubr.msk.f32.vlgmr.msra.gmra.mrb[0].mxu1 %vm479_vm0, %v471_v0 }
 0x1a0   :  { %v761_v8 = vpop.f32.mrb[0].mxu0 }
 0x1a1   :  { %v1483_v9 = vadd.f32 %v761_v8, %v421_v4  ;;  %v1045_v10 = vpop.f32.mrb[0].mxu1  ;;  %v763_v12 = vpop.f32.mrb[1].mxu0 }
 0x1a2   :  { %v1485_v13 = vadd.f32 %v1045_v10, %v429_v5  ;;  %v1484_v14 = vadd.f32 %v763_v12, %v425_v6  ;;  %v1047_v15 = vpop.f32.mrb[1].mxu1 }
 0x1a3   :  { %v1050_v16 = vmax.f32 %v1483_v9, 0.0  ;;  %v1486_v17 = vadd.f32 %v1047_v15, %v433_v7 }
 0x1a4   :  { %v1052_v18 = vmax.f32 %v1485_v13, 0.0  ;;  %v1051_v19 = vmax.f32 %v1484_v14, 0.0 }
 0x1a5   :  { %v1053_v20 = vmax.f32 %v1486_v17, 0.0 }
 0x1a6   :  { %v1058_v21 = vcombine.low %v1050_v16, %v1051_v19 }
 0x1a7   :  { %v1059_v23 = vcombine.low %v1052_v18, %v1053_v20 }
 0x1a8   :  { %v1066_v61 = vrot.slane %v1058_v21, %v1804_v11 }
 0x1a9   :  { %v1073_v26 = vrot.slane %v1059_v23, %v1804_v11 }
 0x1ab   :  { %v1074_v27 = vcombine.low %v1066_v61, %v1073_v26 }
 0x1ad   :  { %1076 = vst [vmem:[%s2783_s3] sm:$0xff] %v1074_v27 }

</bundles_post_ra>
